<compile_context>
chip_gen: v7x
topology: tpu7x:2x2x1
jax: 0.10.0
libtpu: 0.0.40
codegen_flags: <defaults>
</compile_context>

<pallas_src>
import jax
import jax.numpy as jnp
import numpy as np
from jax.experimental import pallas as pl
from jax.experimental.pallas import tpu as pltpu
from jax.scipy.linalg import block_diag

SYM = 8            # sym_size (== flow input_size, already even)
LATENT = 1         # latent_size
HIDDEN = 32        # hidden_units
N_COUPLE = 6       # InvertibleNN builds mask.shape[0]//2 == 6 s-nets / t-nets
NEG_SLOPE = 0.01   # nn.LeakyReLU default negative_slope
NOISE_DIM = SYM - LATENT   # decode padding noise dims (sz = flow.size - latent)

MAX_TB = 1024      # cap on the per-grid-step batch (lane) tile
CHUNK = 256        # in-kernel lane sub-chunk (bounds live activation vregs)


def _leaky_relu(x):
    # max(x, a*x) == LeakyReLU(a)(x) exactly for 0 < a < 1.
    return jnp.maximum(x, NEG_SLOPE * x)


# ------------------------------- kernel --------------------------------------
def stacked_renorm_kernel(
    x_ref, nz_ref,                                          # (SYM, TB) each
    w1_ref, b1_ref, w2_ref, b2_ref, w3_ref, b3_ref,         # fused s/t nets
    dw1_ref, db1_ref, dw2_ref, db2_ref, dw3_ref, db3_ref,   # dynamics MLP
    y_ref, lat_ref,                                         # (SYM, TB), (2, TB)
):
    TB = x_ref.shape[1]
    C = min(CHUNK, TB)

    def st_net(i, v):
        # Fused s-net + t-net: one (64,8)->(64,64)->(16,64) MLP (block-diag
        # layers 2/3) instead of two separate 3-layer MLPs.
        h = jnp.dot(w1_ref[i], v, preferred_element_type=jnp.float32) + b1_ref[i]
        h = _leaky_relu(h)
        h = jnp.dot(w2_ref[i], h, preferred_element_type=jnp.float32) + b2_ref[i]
        h = _leaky_relu(h)
        o = jnp.dot(w3_ref[i], h, preferred_element_type=jnp.float32) + b3_ref[i]
        return jnp.tanh(o[:SYM, :]), o[SYM:, :]             # s, t : (SYM, C)

    # In-kernel coupling masks (no captured array constants).
    # mask1 = [0,0,0,0,1,1,1,1] for even coupling layers, complement for odd.
    ridx = jax.lax.broadcasted_iota(jnp.int32, (SYM, C), 0)
    m_hi = ridx >= (SYM // 2)          # True where mask == 1 (even layers)
    m_lo = jnp.logical_not(m_hi)       # True where mask == 1 (odd layers)
    first_row = ridx == 0

    # Walk the grid tile in independent lane sub-chunks: bounds the live
    # (2*HIDDEN, lanes) activation footprint while the compiler is free to
    # overlap chunks' serial matmul chains.
    for c in range(TB // C):
        sl = slice(c * C, (c + 1) * C)

        # ---- encoding: InvertibleNN.f (coupling layers reversed), tanh ------
        z = x_ref[:, sl]                                    # (SYM, C)
        for i in reversed(range(N_COUPLE)):
            mb = m_hi if i % 2 == 0 else m_lo
            z_m = jnp.where(mb, z, 0.0)                     # mask * z
            s, t = st_net(i, z_m)
            # (1-m)*(z-t)*exp(-s) + m*z  with 0/1 masks == select:
            z = jnp.where(mb, z, (z - t) * jnp.exp(-s))
        z = jnp.tanh(z)                                     # normalized_state
        s_lat = z[:LATENT, :]                               # (1, C)

        # ---- dynamics: residual MLP + tanh (layer 1 K=1 -> VPU broadcast) ---
        h = _leaky_relu(dw1_ref[...] * s_lat + db1_ref[...])        # (HIDDEN, C)
        h = _leaky_relu(jnp.dot(dw2_ref[...], h,
                                preferred_element_type=jnp.float32) + db2_ref[...])
        d = jnp.sum(dw3_ref[...] * h, axis=0, keepdims=True) + db3_ref[...]  # (1, C)
        s_next = jnp.tanh(d + s_lat)                        # (1, C)

        # lane-dense (2, TB) latent slab: two direct sub-row stores
        lat_ref[0:1, sl] = s_lat
        lat_ref[1:2, sl] = s_next

        # ---- decoding: concat(s_next, padding noise) then InvertibleNN.g ----
        xg = jnp.where(first_row,
                       jnp.broadcast_to(s_next, (SYM, C)),
                       nz_ref[:, sl])                       # row0=s_next, rows1..7=noise
        for i in range(N_COUPLE):
            mb = m_hi if i % 2 == 0 else m_lo
            x_m = jnp.where(mb, xg, 0.0)                    # mask * x
            s, t = st_net(i, x_m)
            # x_m + (1-m)*(x*exp(s)+t)  with 0/1 masks == select:
            xg = jnp.where(mb, xg, xg * jnp.exp(s) + t)
        y_ref[:, sl] = xg                                   # (SYM, C)


# ------------------------------- wrapper --------------------------------------
def _round_up(n, m):
    return (n + m - 1) // m * m


def _choose_tile(B):
    """Batch (lane) tile: multiple of 128 (and of CHUNK when >128), capped at
    MAX_TB, sized so large batches give >=2 grid tiles (v7x has 2 TCs)."""
    tb = max(pl.cdiv(B, 2), 128)
    tb = _round_up(tb, 128)
    if tb > 128:
        tb = _round_up(tb, CHUNK)
    return min(tb, MAX_TB)


def forward(x, pp, noise):
    """x: (B, SYM) f32; noise: (B, NOISE_DIM) decode padding noise (N(0,I)/3);
    pp: packed params from pack_params().  Returns (y, s, s_next)."""
    B = x.shape[0]
    TB = _choose_tile(B)
    B_pad = _round_up(B, TB)

    x_t = jnp.pad(x.astype(jnp.float32).T, ((0, 0), (0, B_pad - B)))   # (SYM, B_pad)
    nz = jnp.concatenate([jnp.zeros((LATENT, B), jnp.float32),
                          noise.astype(jnp.float32).T], axis=0)        # (SYM, B)
    nz = jnp.pad(nz, ((0, 0), (0, B_pad - B)))                         # (SYM, B_pad)

    batch_spec = lambda shape: pl.BlockSpec(shape, lambda i: (0, i))
    const3 = lambda shape: pl.BlockSpec(shape, lambda i: (0, 0, 0))
    const2 = lambda shape: pl.BlockSpec(shape, lambda i: (0, 0))

    y_t, lat = pl.pallas_call(
        stacked_renorm_kernel,
        grid=(B_pad // TB,),
        in_specs=[
            batch_spec((SYM, TB)),                      # x (transposed)
            batch_spec((SYM, TB)),                      # decode padding noise
            const3((N_COUPLE, 2 * HIDDEN, SYM)),        # fused layer-1 weights
            const3((N_COUPLE, 2 * HIDDEN, 1)),
            const3((N_COUPLE, 2 * HIDDEN, 2 * HIDDEN)), # block-diag layer 2
            const3((N_COUPLE, 2 * HIDDEN, 1)),
            const3((N_COUPLE, 2 * SYM, 2 * HIDDEN)),    # block-diag layer 3
            const3((N_COUPLE, 2 * SYM, 1)),
            const2((HIDDEN, 1)), const2((HIDDEN, 1)),
            const2((HIDDEN, HIDDEN)), const2((HIDDEN, 1)),
            const2((HIDDEN, 1)), const2((1, 1)),
        ],
        out_specs=(
            batch_spec((SYM, TB)),
            pl.BlockSpec((2, TB), lambda i: (0, i)),
        ),
        out_shape=(
            jax.ShapeDtypeStruct((SYM, B_pad), jnp.float32),   # decoded y (transposed)
            jax.ShapeDtypeStruct((2, B_pad), jnp.float32),     # [s; s_next]
        ),
        compiler_params=pltpu.CompilerParams(
            dimension_semantics=("parallel",),   # shard batch tiles over 2 TCs on v7x
            vmem_limit_bytes=32 * 1024 * 1024,   # usage << 1 MiB; safe on v5e/v6e/v7x
        ),
    )(
        x_t, nz,
        pp["w1"], pp["b1"], pp["w2"], pp["b2"], pp["w3"], pp["b3"],
        pp["dw1"], pp["db1"], pp["dw2"], pp["db2"], pp["dw3"], pp["db3"],
    )

    y = y_t[:, :B].T                        # (B, SYM)
    s = lat[0, :B][:, None]                 # (B, LATENT)
    s_next = lat[1, :B][:, None]            # (B, LATENT)
    return y, s, s_next


# ----------------------- deterministic parameter init -----------------------
def _linear_init(key, fan_in, fan_out):
    # Mimics torch.nn.Linear default U(-1/sqrt(fan_in), 1/sqrt(fan_in)).
    kw, kb = jax.random.split(key)
    bound = 1.0 / float(fan_in) ** 0.5
    w = jax.random.uniform(kw, (fan_in, fan_out), jnp.float32, -bound, bound)
    b = jax.random.uniform(kb, (fan_out,), jnp.float32, -bound, bound)
    return w, b


def init_params(key):
    keys = jax.random.split(key, 6 * N_COUPLE + 3)
    k = iter(keys)
    sw1, sb1, sw2, sb2, sw3, sb3 = [], [], [], [], [], []
    tw1, tb1, tw2, tb2, tw3, tb3 = [], [], [], [], [], []
    for _ in range(N_COUPLE):
        w, b = _linear_init(next(k), SYM, HIDDEN);    sw1.append(w); sb1.append(b)
        w, b = _linear_init(next(k), HIDDEN, HIDDEN); sw2.append(w); sb2.append(b)
        w, b = _linear_init(next(k), HIDDEN, SYM);    sw3.append(w); sb3.append(b)
        w, b = _linear_init(next(k), SYM, HIDDEN);    tw1.append(w); tb1.append(b)
        w, b = _linear_init(next(k), HIDDEN, HIDDEN); tw2.append(w); tb2.append(b)
        w, b = _linear_init(next(k), HIDDEN, SYM);    tw3.append(w); tb3.append(b)
    dw1, db1 = _linear_init(next(k), LATENT, HIDDEN)
    dw2, db2 = _linear_init(next(k), HIDDEN, HIDDEN)
    dw3, db3 = _linear_init(next(k), HIDDEN, LATENT)
    return {
        "sw1": jnp.stack(sw1), "sb1": jnp.stack(sb1),
        "sw2": jnp.stack(sw2), "sb2": jnp.stack(sb2),
        "sw3": jnp.stack(sw3), "sb3": jnp.stack(sb3),
        "tw1": jnp.stack(tw1), "tb1": jnp.stack(tb1),
        "tw2": jnp.stack(tw2), "tb2": jnp.stack(tb2),
        "tw3": jnp.stack(tw3), "tb3": jnp.stack(tb3),
        "dw1": dw1, "db1": db1[None, :],
        "dw2": dw2, "db2": db2[None, :],
        "dw3": dw3, "db3": db3[None, :],
    }


def pack_params(p):
    """One-time layout plumbing: repack (in,out) per-net weights into the
    fused, transposed (out,in) layout the kernel consumes."""
    w1, b1, w2, b2, w3, b3 = [], [], [], [], [], []
    for i in range(N_COUPLE):
        w1.append(jnp.concatenate([p["sw1"][i].T, p["tw1"][i].T], axis=0))   # (64, 8)
        b1.append(jnp.concatenate([p["sb1"][i], p["tb1"][i]])[:, None])      # (64, 1)
        w2.append(block_diag(p["sw2"][i].T, p["tw2"][i].T))                  # (64, 64)
        b2.append(jnp.concatenate([p["sb2"][i], p["tb2"][i]])[:, None])
        w3.append(block_diag(p["sw3"][i].T, p["tw3"][i].T))                  # (16, 64)
        b3.append(jnp.concatenate([p["sb3"][i], p["tb3"][i]])[:, None])
    return {
        "w1": jnp.stack(w1), "b1": jnp.stack(b1),
        "w2": jnp.stack(w2), "b2": jnp.stack(b2),
        "w3": jnp.stack(w3), "b3": jnp.stack(b3),
        "dw1": p["dw1"].T,          # (HIDDEN, 1)   broadcast weights (K=1 layer)
        "db1": p["db1"].T,          # (HIDDEN, 1)
        "dw2": p["dw2"].T,          # (HIDDEN, HIDDEN)  (out, in)
        "db2": p["db2"].T,          # (HIDDEN, 1)
        "dw3": p["dw3"],            # (HIDDEN, 1)   sublane-reduce weights
        "db3": p["db3"],            # (1, 1)
    }


# ------------------------- pure-JAX reference model --------------------------
_HP = jax.lax.Precision.HIGHEST


def _mlp3(v, w1, b1, w2, b2, w3, b3, final_tanh):
    h = _leaky_relu(jnp.dot(v, w1, precision=_HP) + b1)
    h = _leaky_relu(jnp.dot(h, w2, precision=_HP) + b2)
    o = jnp.dot(h, w3, precision=_HP) + b3
    return jnp.tanh(o) if final_tanh else o


def _ref_masks():
    m1 = np.concatenate([np.zeros(SYM // 2, np.float32), np.ones(SYM // 2, np.float32)])
    return jnp.asarray(np.stack([m1 if i % 2 == 0 else 1.0 - m1 for i in range(N_COUPLE)]))


def reference_forward(x, p, noise):
    mask = _ref_masks()

    def s_net(i, v):
        return _mlp3(v, p["sw1"][i], p["sb1"][i][None, :], p["sw2"][i],
                     p["sb2"][i][None, :], p["sw3"][i], p["sb3"][i][None, :], True)

    def t_net(i, v):
        return _mlp3(v, p["tw1"][i], p["tb1"][i][None, :], p["tw2"][i],
                     p["tb2"][i][None, :], p["tw3"][i], p["tb3"][i][None, :], False)

    # encoding: flow.f (reversed), tanh, slice to latent
    z = x
    for i in reversed(range(N_COUPLE)):
        m = mask[i][None, :]
        z_m = m * z
        s = s_net(i, z_m) * (1.0 - m)
        t = t_net(i, z_m) * (1.0 - m)
        z = (1.0 - m) * (z - t) * jnp.exp(-s) + z_m
    z = jnp.tanh(z)
    s_lat = z[:, :LATENT]
    # dynamics
    d = _mlp3(s_lat, p["dw1"], p["db1"], p["dw2"], p["db2"], p["dw3"], p["db3"], False)
    s_next = jnp.tanh(d + s_lat)
    # decoding: concat latent with padding noise (sz = SYM - LATENT), flow.g
    xg = jnp.concatenate([s_next, noise], axis=1)
    for i in range(N_COUPLE):
        m = mask[i][None, :]
        x_m = xg * m
        s = s_net(i, x_m) * (1.0 - m)
        t = t_net(i, x_m) * (1.0 - m)
        xg = x_m + (1.0 - m) * (xg * jnp.exp(s) + t)
    return xg, s_lat, s_next


# TODO(synk): the is_random Gaussian perturbation of s_next (torch.randn with
# learned sigmas) is dead code for this configuration (is_random=False) and is
# not emitted; the decode padding noise IS implemented (sampled in the wrapper
# and passed in, matching MultivariateNormal(0, I)/3 up to the RNG stream).

if __name__ == "__main__":
    key = jax.random.PRNGKey(0)
    kp, kx, kn = jax.random.split(key, 3)
    raw_params = init_params(kp)
    packed_params = pack_params(raw_params)

    fwd = jax.jit(forward)

    # small batch (single 128-lane tile) and a larger batch (2 grid tiles,
    # 2 in-kernel lane chunks each)
    for B in (8, 1000):
        x = jax.random.normal(jax.random.fold_in(kx, B), (B, SYM), jnp.float32)
        noise = jax.random.normal(jax.random.fold_in(kn, B),
                                  (B, NOISE_DIM), jnp.float32) / 3.0
        y, s, s_next = fwd(x, packed_params, noise)
        jax.block_until_ready((y, s, s_next))

        y_ref, s_ref, s_next_ref = reference_forward(x, raw_params, noise)
        assert np.allclose(np.asarray(s), np.asarray(s_ref), atol=1e-3, rtol=1e-3)
        assert np.allclose(np.asarray(s_next), np.asarray(s_next_ref), atol=1e-3, rtol=1e-3)
        assert np.allclose(np.asarray(y), np.asarray(y_ref), atol=1e-3, rtol=1e-3)

    print("KERNEL_OK")
</pallas_src>

<mosaic_0001>
module attributes {stable_mosaic.version = 11 : i64} {
  func.func @stacked_renorm_kernel(%arg0: i32, %arg1: memref<8x128xf32, #tpu.memory_space<vmem>>, %arg2: memref<8x128xf32, #tpu.memory_space<vmem>>, %arg3: memref<6x64x8xf32, #tpu.memory_space<vmem>>, %arg4: memref<6x64x1xf32, #tpu.memory_space<vmem>>, %arg5: memref<6x64x64xf32, #tpu.memory_space<vmem>>, %arg6: memref<6x64x1xf32, #tpu.memory_space<vmem>>, %arg7: memref<6x16x64xf32, #tpu.memory_space<vmem>>, %arg8: memref<6x16x1xf32, #tpu.memory_space<vmem>>, %arg9: memref<32x1xf32, #tpu.memory_space<vmem>>, %arg10: memref<32x1xf32, #tpu.memory_space<vmem>>, %arg11: memref<32x32xf32, #tpu.memory_space<vmem>>, %arg12: memref<32x1xf32, #tpu.memory_space<vmem>>, %arg13: memref<32x1xf32, #tpu.memory_space<vmem>>, %arg14: memref<1x1xf32, #tpu.memory_space<vmem>>, %arg15: memref<8x128xf32, #tpu.memory_space<vmem>>, %arg16: memref<2x128xf32, #tpu.memory_space<vmem>>) attributes {dimension_semantics = [#tpu.dimension_semantics<parallel>], iteration_bounds = array<i64: 1>, scalar_prefetch = 0 : i64, scratch_operands = 0 : i64, tpu.core_type = #tpu.core_type<tc>, window_params = [{transform_indices = @transform_0, window_bounds = array<i64: 8, 128>}, {transform_indices = @transform_1, window_bounds = array<i64: 8, 128>}, {pipeline_mode = #tpu.pipeline_mode<synchronous>, transform_indices = @transform_2, window_bounds = array<i64: 6, 64, 8>}, {pipeline_mode = #tpu.pipeline_mode<synchronous>, transform_indices = @transform_3, window_bounds = array<i64: 6, 64, 1>}, {pipeline_mode = #tpu.pipeline_mode<synchronous>, transform_indices = @transform_4, window_bounds = array<i64: 6, 64, 64>}, {pipeline_mode = #tpu.pipeline_mode<synchronous>, transform_indices = @transform_5, window_bounds = array<i64: 6, 64, 1>}, {pipeline_mode = #tpu.pipeline_mode<synchronous>, transform_indices = @transform_6, window_bounds = array<i64: 6, 16, 64>}, {pipeline_mode = #tpu.pipeline_mode<synchronous>, transform_indices = @transform_7, window_bounds = array<i64: 6, 16, 1>}, {pipeline_mode = #tpu.pipeline_mode<synchronous>, transform_indices = @transform_8, window_bounds = array<i64: 32, 1>}, {pipeline_mode = #tpu.pipeline_mode<synchronous>, transform_indices = @transform_9, window_bounds = array<i64: 32, 1>}, {pipeline_mode = #tpu.pipeline_mode<synchronous>, transform_indices = @transform_10, window_bounds = array<i64: 32, 32>}, {pipeline_mode = #tpu.pipeline_mode<synchronous>, transform_indices = @transform_11, window_bounds = array<i64: 32, 1>}, {pipeline_mode = #tpu.pipeline_mode<synchronous>, transform_indices = @transform_12, window_bounds = array<i64: 32, 1>}, {pipeline_mode = #tpu.pipeline_mode<synchronous>, transform_indices = @transform_13, window_bounds = array<i64: 1, 1>}, {transform_indices = @transform_14, window_bounds = array<i64: 8, 128>}, {transform_indices = @transform_15, window_bounds = array<i64: 2, 128>}]} {
    %0 = tpu.iota {dimensions = array<i32: 0>} : vector<8x128xi32>
    %c4_i32 = arith.constant 4 : i32
    %1 = vector.broadcast %c4_i32 : i32 to vector<8x128xi32>
    %2 = arith.cmpi sge, %0, %1 : vector<8x128xi32>
    %cst = arith.constant dense<true> : vector<8x128xi1>
    %3 = arith.xori %2, %cst : vector<8x128xi1>
    %c0_i32 = arith.constant 0 : i32
    %4 = vector.broadcast %c0_i32 : i32 to vector<8x128xi32>
    %5 = arith.cmpi eq, %0, %4 : vector<8x128xi32>
    %c0 = arith.constant 0 : index
    %c0_0 = arith.constant 0 : index
    %6 = vector.load %arg1[%c0, %c0_0] : memref<8x128xf32, #tpu.memory_space<vmem>>, vector<8x128xf32>
    %cst_1 = arith.constant 0.000000e+00 : f32
    %7 = vector.broadcast %cst_1 : f32 to vector<8x128xf32>
    %8 = arith.select %3, %6, %7 : vector<8x128xi1>, vector<8x128xf32>
    %c5 = arith.constant 5 : index
    %c0_2 = arith.constant 0 : index
    %c0_3 = arith.constant 0 : index
    %9 = vector.load %arg3[%c5, %c0_2, %c0_3] : memref<6x64x8xf32, #tpu.memory_space<vmem>>, vector<1x64x8xf32>
    %10 = vector.shape_cast %9 : vector<1x64x8xf32> to vector<64x8xf32>
    %cst_4 = arith.constant dense<0.000000e+00> : vector<64x128xf32>
    %11 = tpu.matmul %10, %8, %cst_4 {dimension_numbers = #tpu.dot_dimension_numbers<[1], [0], [0], [1], [0, 0, 1, 1], [], []>} : vector<64x8xf32>, vector<8x128xf32>, vector<64x128xf32> -> vector<64x128xf32>
    %c5_5 = arith.constant 5 : index
    %c0_6 = arith.constant 0 : index
    %c0_7 = arith.constant 0 : index
    %12 = vector.load %arg4[%c5_5, %c0_6, %c0_7] : memref<6x64x1xf32, #tpu.memory_space<vmem>>, vector<1x64x1xf32>
    %13 = vector.shape_cast %12 : vector<1x64x1xf32> to vector<64x1xf32>
    %14 = vector.broadcast %13 : vector<64x1xf32> to vector<64x128xf32>
    %15 = arith.addf %11, %14 : vector<64x128xf32>
    %cst_8 = arith.constant 0.00999999977 : f32
    %16 = vector.broadcast %cst_8 : f32 to vector<64x128xf32>
    %17 = arith.mulf %16, %15 : vector<64x128xf32>
    %18 = arith.maximumf %15, %17 : vector<64x128xf32>
    %c5_9 = arith.constant 5 : index
    %c0_10 = arith.constant 0 : index
    %c0_11 = arith.constant 0 : index
    %19 = vector.load %arg5[%c5_9, %c0_10, %c0_11] : memref<6x64x64xf32, #tpu.memory_space<vmem>>, vector<1x64x64xf32>
    %20 = vector.shape_cast %19 : vector<1x64x64xf32> to vector<64x64xf32>
    %cst_12 = arith.constant dense<0.000000e+00> : vector<64x128xf32>
    %21 = tpu.matmul %20, %18, %cst_12 {dimension_numbers = #tpu.dot_dimension_numbers<[1], [0], [0], [1], [0, 0, 1, 1], [], []>} : vector<64x64xf32>, vector<64x128xf32>, vector<64x128xf32> -> vector<64x128xf32>
    %c5_13 = arith.constant 5 : index
    %c0_14 = arith.constant 0 : index
    %c0_15 = arith.constant 0 : index
    %22 = vector.load %arg6[%c5_13, %c0_14, %c0_15] : memref<6x64x1xf32, #tpu.memory_space<vmem>>, vector<1x64x1xf32>
    %23 = vector.shape_cast %22 : vector<1x64x1xf32> to vector<64x1xf32>
    %24 = vector.broadcast %23 : vector<64x1xf32> to vector<64x128xf32>
    %25 = arith.addf %21, %24 : vector<64x128xf32>
    %cst_16 = arith.constant 0.00999999977 : f32
    %26 = vector.broadcast %cst_16 : f32 to vector<64x128xf32>
    %27 = arith.mulf %26, %25 : vector<64x128xf32>
    %28 = arith.maximumf %25, %27 : vector<64x128xf32>
    %c5_17 = arith.constant 5 : index
    %c0_18 = arith.constant 0 : index
    %c0_19 = arith.constant 0 : index
    %29 = vector.load %arg7[%c5_17, %c0_18, %c0_19] : memref<6x16x64xf32, #tpu.memory_space<vmem>>, vector<1x16x64xf32>
    %30 = vector.shape_cast %29 : vector<1x16x64xf32> to vector<16x64xf32>
    %cst_20 = arith.constant dense<0.000000e+00> : vector<16x128xf32>
    %31 = tpu.matmul %30, %28, %cst_20 {dimension_numbers = #tpu.dot_dimension_numbers<[1], [0], [0], [1], [0, 0, 1, 1], [], []>} : vector<16x64xf32>, vector<64x128xf32>, vector<16x128xf32> -> vector<16x128xf32>
    %c5_21 = arith.constant 5 : index
    %c0_22 = arith.constant 0 : index
    %c0_23 = arith.constant 0 : index
    %32 = vector.load %arg8[%c5_21, %c0_22, %c0_23] : memref<6x16x1xf32, #tpu.memory_space<vmem>>, vector<1x16x1xf32>
    %33 = vector.shape_cast %32 : vector<1x16x1xf32> to vector<16x1xf32>
    %34 = vector.broadcast %33 : vector<16x1xf32> to vector<16x128xf32>
    %35 = arith.addf %31, %34 : vector<16x128xf32>
    %36 = vector.extract_strided_slice %35 {offsets = [0, 0], sizes = [8, 128], strides = [1, 1]} : vector<16x128xf32> to vector<8x128xf32>
    %37 = math.tanh %36 : vector<8x128xf32>
    %38 = vector.extract_strided_slice %35 {offsets = [8, 0], sizes = [8, 128], strides = [1, 1]} : vector<16x128xf32> to vector<8x128xf32>
    %39 = arith.subf %6, %38 : vector<8x128xf32>
    %cst_24 = arith.constant 0.000000e+00 : f32
    %40 = vector.broadcast %cst_24 : f32 to vector<8x128xf32>
    %41 = arith.subf %40, %37 : vector<8x128xf32>
    %42 = math.exp %41 : vector<8x128xf32>
    %43 = arith.mulf %39, %42 : vector<8x128xf32>
    %44 = arith.select %3, %6, %43 : vector<8x128xi1>, vector<8x128xf32>
    %cst_25 = arith.constant 0.000000e+00 : f32
    %45 = vector.broadcast %cst_25 : f32 to vector<8x128xf32>
    %46 = arith.select %2, %44, %45 : vector<8x128xi1>, vector<8x128xf32>
    %c4 = arith.constant 4 : index
    %c0_26 = arith.constant 0 : index
    %c0_27 = arith.constant 0 : index
    %47 = vector.load %arg3[%c4, %c0_26, %c0_27] : memref<6x64x8xf32, #tpu.memory_space<vmem>>, vector<1x64x8xf32>
    %48 = vector.shape_cast %47 : vector<1x64x8xf32> to vector<64x8xf32>
    %cst_28 = arith.constant dense<0.000000e+00> : vector<64x128xf32>
    %49 = tpu.matmul %48, %46, %cst_28 {dimension_numbers = #tpu.dot_dimension_numbers<[1], [0], [0], [1], [0, 0, 1, 1], [], []>} : vector<64x8xf32>, vector<8x128xf32>, vector<64x128xf32> -> vector<64x128xf32>
    %c4_29 = arith.constant 4 : index
    %c0_30 = arith.constant 0 : index
    %c0_31 = arith.constant 0 : index
    %50 = vector.load %arg4[%c4_29, %c0_30, %c0_31] : memref<6x64x1xf32, #tpu.memory_space<vmem>>, vector<1x64x1xf32>
    %51 = vector.shape_cast %50 : vector<1x64x1xf32> to vector<64x1xf32>
    %52 = vector.broadcast %51 : vector<64x1xf32> to vector<64x128xf32>
    %53 = arith.addf %49, %52 : vector<64x128xf32>
    %cst_32 = arith.constant 0.00999999977 : f32
    %54 = vector.broadcast %cst_32 : f32 to vector<64x128xf32>
    %55 = arith.mulf %54, %53 : vector<64x128xf32>
    %56 = arith.maximumf %53, %55 : vector<64x128xf32>
    %c4_33 = arith.constant 4 : index
    %c0_34 = arith.constant 0 : index
    %c0_35 = arith.constant 0 : index
    %57 = vector.load %arg5[%c4_33, %c0_34, %c0_35] : memref<6x64x64xf32, #tpu.memory_space<vmem>>, vector<1x64x64xf32>
    %58 = vector.shape_cast %57 : vector<1x64x64xf32> to vector<64x64xf32>
    %cst_36 = arith.constant dense<0.000000e+00> : vector<64x128xf32>
    %59 = tpu.matmul %58, %56, %cst_36 {dimension_numbers = #tpu.dot_dimension_numbers<[1], [0], [0], [1], [0, 0, 1, 1], [], []>} : vector<64x64xf32>, vector<64x128xf32>, vector<64x128xf32> -> vector<64x128xf32>
    %c4_37 = arith.constant 4 : index
    %c0_38 = arith.constant 0 : index
    %c0_39 = arith.constant 0 : index
    %60 = vector.load %arg6[%c4_37, %c0_38, %c0_39] : memref<6x64x1xf32, #tpu.memory_space<vmem>>, vector<1x64x1xf32>
    %61 = vector.shape_cast %60 : vector<1x64x1xf32> to vector<64x1xf32>
    %62 = vector.broadcast %61 : vector<64x1xf32> to vector<64x128xf32>
    %63 = arith.addf %59, %62 : vector<64x128xf32>
    %cst_40 = arith.constant 0.00999999977 : f32
    %64 = vector.broadcast %cst_40 : f32 to vector<64x128xf32>
    %65 = arith.mulf %64, %63 : vector<64x128xf32>
    %66 = arith.maximumf %63, %65 : vector<64x128xf32>
    %c4_41 = arith.constant 4 : index
    %c0_42 = arith.constant 0 : index
    %c0_43 = arith.constant 0 : index
    %67 = vector.load %arg7[%c4_41, %c0_42, %c0_43] : memref<6x16x64xf32, #tpu.memory_space<vmem>>, vector<1x16x64xf32>
    %68 = vector.shape_cast %67 : vector<1x16x64xf32> to vector<16x64xf32>
    %cst_44 = arith.constant dense<0.000000e+00> : vector<16x128xf32>
    %69 = tpu.matmul %68, %66, %cst_44 {dimension_numbers = #tpu.dot_dimension_numbers<[1], [0], [0], [1], [0, 0, 1, 1], [], []>} : vector<16x64xf32>, vector<64x128xf32>, vector<16x128xf32> -> vector<16x128xf32>
    %c4_45 = arith.constant 4 : index
    %c0_46 = arith.constant 0 : index
    %c0_47 = arith.constant 0 : index
    %70 = vector.load %arg8[%c4_45, %c0_46, %c0_47] : memref<6x16x1xf32, #tpu.memory_space<vmem>>, vector<1x16x1xf32>
    %71 = vector.shape_cast %70 : vector<1x16x1xf32> to vector<16x1xf32>
    %72 = vector.broadcast %71 : vector<16x1xf32> to vector<16x128xf32>
    %73 = arith.addf %69, %72 : vector<16x128xf32>
    %74 = vector.extract_strided_slice %73 {offsets = [0, 0], sizes = [8, 128], strides = [1, 1]} : vector<16x128xf32> to vector<8x128xf32>
    %75 = math.tanh %74 : vector<8x128xf32>
    %76 = vector.extract_strided_slice %73 {offsets = [8, 0], sizes = [8, 128], strides = [1, 1]} : vector<16x128xf32> to vector<8x128xf32>
    %77 = arith.subf %44, %76 : vector<8x128xf32>
    %cst_48 = arith.constant 0.000000e+00 : f32
    %78 = vector.broadcast %cst_48 : f32 to vector<8x128xf32>
    %79 = arith.subf %78, %75 : vector<8x128xf32>
    %80 = math.exp %79 : vector<8x128xf32>
    %81 = arith.mulf %77, %80 : vector<8x128xf32>
    %82 = arith.select %2, %44, %81 : vector<8x128xi1>, vector<8x128xf32>
    %cst_49 = arith.constant 0.000000e+00 : f32
    %83 = vector.broadcast %cst_49 : f32 to vector<8x128xf32>
    %84 = arith.select %3, %82, %83 : vector<8x128xi1>, vector<8x128xf32>
    %c3 = arith.constant 3 : index
    %c0_50 = arith.constant 0 : index
    %c0_51 = arith.constant 0 : index
    %85 = vector.load %arg3[%c3, %c0_50, %c0_51] : memref<6x64x8xf32, #tpu.memory_space<vmem>>, vector<1x64x8xf32>
    %86 = vector.shape_cast %85 : vector<1x64x8xf32> to vector<64x8xf32>
    %cst_52 = arith.constant dense<0.000000e+00> : vector<64x128xf32>
    %87 = tpu.matmul %86, %84, %cst_52 {dimension_numbers = #tpu.dot_dimension_numbers<[1], [0], [0], [1], [0, 0, 1, 1], [], []>} : vector<64x8xf32>, vector<8x128xf32>, vector<64x128xf32> -> vector<64x128xf32>
    %c3_53 = arith.constant 3 : index
    %c0_54 = arith.constant 0 : index
    %c0_55 = arith.constant 0 : index
    %88 = vector.load %arg4[%c3_53, %c0_54, %c0_55] : memref<6x64x1xf32, #tpu.memory_space<vmem>>, vector<1x64x1xf32>
    %89 = vector.shape_cast %88 : vector<1x64x1xf32> to vector<64x1xf32>
    %90 = vector.broadcast %89 : vector<64x1xf32> to vector<64x128xf32>
    %91 = arith.addf %87, %90 : vector<64x128xf32>
    %cst_56 = arith.constant 0.00999999977 : f32
    %92 = vector.broadcast %cst_56 : f32 to vector<64x128xf32>
    %93 = arith.mulf %92, %91 : vector<64x128xf32>
    %94 = arith.maximumf %91, %93 : vector<64x128xf32>
    %c3_57 = arith.constant 3 : index
    %c0_58 = arith.constant 0 : index
    %c0_59 = arith.constant 0 : index
    %95 = vector.load %arg5[%c3_57, %c0_58, %c0_59] : memref<6x64x64xf32, #tpu.memory_space<vmem>>, vector<1x64x64xf32>
    %96 = vector.shape_cast %95 : vector<1x64x64xf32> to vector<64x64xf32>
    %cst_60 = arith.constant dense<0.000000e+00> : vector<64x128xf32>
    %97 = tpu.matmul %96, %94, %cst_60 {dimension_numbers = #tpu.dot_dimension_numbers<[1], [0], [0], [1], [0, 0, 1, 1], [], []>} : vector<64x64xf32>, vector<64x128xf32>, vector<64x128xf32> -> vector<64x128xf32>
    %c3_61 = arith.constant 3 : index
    %c0_62 = arith.constant 0 : index
    %c0_63 = arith.constant 0 : index
    %98 = vector.load %arg6[%c3_61, %c0_62, %c0_63] : memref<6x64x1xf32, #tpu.memory_space<vmem>>, vector<1x64x1xf32>
    %99 = vector.shape_cast %98 : vector<1x64x1xf32> to vector<64x1xf32>
    %100 = vector.broadcast %99 : vector<64x1xf32> to vector<64x128xf32>
    %101 = arith.addf %97, %100 : vector<64x128xf32>
    %cst_64 = arith.constant 0.00999999977 : f32
    %102 = vector.broadcast %cst_64 : f32 to vector<64x128xf32>
    %103 = arith.mulf %102, %101 : vector<64x128xf32>
    %104 = arith.maximumf %101, %103 : vector<64x128xf32>
    %c3_65 = arith.constant 3 : index
    %c0_66 = arith.constant 0 : index
    %c0_67 = arith.constant 0 : index
    %105 = vector.load %arg7[%c3_65, %c0_66, %c0_67] : memref<6x16x64xf32, #tpu.memory_space<vmem>>, vector<1x16x64xf32>
    %106 = vector.shape_cast %105 : vector<1x16x64xf32> to vector<16x64xf32>
    %cst_68 = arith.constant dense<0.000000e+00> : vector<16x128xf32>
    %107 = tpu.matmul %106, %104, %cst_68 {dimension_numbers = #tpu.dot_dimension_numbers<[1], [0], [0], [1], [0, 0, 1, 1], [], []>} : vector<16x64xf32>, vector<64x128xf32>, vector<16x128xf32> -> vector<16x128xf32>
    %c3_69 = arith.constant 3 : index
    %c0_70 = arith.constant 0 : index
    %c0_71 = arith.constant 0 : index
    %108 = vector.load %arg8[%c3_69, %c0_70, %c0_71] : memref<6x16x1xf32, #tpu.memory_space<vmem>>, vector<1x16x1xf32>
    %109 = vector.shape_cast %108 : vector<1x16x1xf32> to vector<16x1xf32>
    %110 = vector.broadcast %109 : vector<16x1xf32> to vector<16x128xf32>
    %111 = arith.addf %107, %110 : vector<16x128xf32>
    %112 = vector.extract_strided_slice %111 {offsets = [0, 0], sizes = [8, 128], strides = [1, 1]} : vector<16x128xf32> to vector<8x128xf32>
    %113 = math.tanh %112 : vector<8x128xf32>
    %114 = vector.extract_strided_slice %111 {offsets = [8, 0], sizes = [8, 128], strides = [1, 1]} : vector<16x128xf32> to vector<8x128xf32>
    %115 = arith.subf %82, %114 : vector<8x128xf32>
    %cst_72 = arith.constant 0.000000e+00 : f32
    %116 = vector.broadcast %cst_72 : f32 to vector<8x128xf32>
    %117 = arith.subf %116, %113 : vector<8x128xf32>
    %118 = math.exp %117 : vector<8x128xf32>
    %119 = arith.mulf %115, %118 : vector<8x128xf32>
    %120 = arith.select %3, %82, %119 : vector<8x128xi1>, vector<8x128xf32>
    %cst_73 = arith.constant 0.000000e+00 : f32
    %121 = vector.broadcast %cst_73 : f32 to vector<8x128xf32>
    %122 = arith.select %2, %120, %121 : vector<8x128xi1>, vector<8x128xf32>
    %c2 = arith.constant 2 : index
    %c0_74 = arith.constant 0 : index
    %c0_75 = arith.constant 0 : index
    %123 = vector.load %arg3[%c2, %c0_74, %c0_75] : memref<6x64x8xf32, #tpu.memory_space<vmem>>, vector<1x64x8xf32>
    %124 = vector.shape_cast %123 : vector<1x64x8xf32> to vector<64x8xf32>
    %cst_76 = arith.constant dense<0.000000e+00> : vector<64x128xf32>
    %125 = tpu.matmul %124, %122, %cst_76 {dimension_numbers = #tpu.dot_dimension_numbers<[1], [0], [0], [1], [0, 0, 1, 1], [], []>} : vector<64x8xf32>, vector<8x128xf32>, vector<64x128xf32> -> vector<64x128xf32>
    %c2_77 = arith.constant 2 : index
    %c0_78 = arith.constant 0 : index
    %c0_79 = arith.constant 0 : index
    %126 = vector.load %arg4[%c2_77, %c0_78, %c0_79] : memref<6x64x1xf32, #tpu.memory_space<vmem>>, vector<1x64x1xf32>
    %127 = vector.shape_cast %126 : vector<1x64x1xf32> to vector<64x1xf32>
    %128 = vector.broadcast %127 : vector<64x1xf32> to vector<64x128xf32>
    %129 = arith.addf %125, %128 : vector<64x128xf32>
    %cst_80 = arith.constant 0.00999999977 : f32
    %130 = vector.broadcast %cst_80 : f32 to vector<64x128xf32>
    %131 = arith.mulf %130, %129 : vector<64x128xf32>
    %132 = arith.maximumf %129, %131 : vector<64x128xf32>
    %c2_81 = arith.constant 2 : index
    %c0_82 = arith.constant 0 : index
    %c0_83 = arith.constant 0 : index
    %133 = vector.load %arg5[%c2_81, %c0_82, %c0_83] : memref<6x64x64xf32, #tpu.memory_space<vmem>>, vector<1x64x64xf32>
    %134 = vector.shape_cast %133 : vector<1x64x64xf32> to vector<64x64xf32>
    %cst_84 = arith.constant dense<0.000000e+00> : vector<64x128xf32>
    %135 = tpu.matmul %134, %132, %cst_84 {dimension_numbers = #tpu.dot_dimension_numbers<[1], [0], [0], [1], [0, 0, 1, 1], [], []>} : vector<64x64xf32>, vector<64x128xf32>, vector<64x128xf32> -> vector<64x128xf32>
    %c2_85 = arith.constant 2 : index
    %c0_86 = arith.constant 0 : index
    %c0_87 = arith.constant 0 : index
    %136 = vector.load %arg6[%c2_85, %c0_86, %c0_87] : memref<6x64x1xf32, #tpu.memory_space<vmem>>, vector<1x64x1xf32>
    %137 = vector.shape_cast %136 : vector<1x64x1xf32> to vector<64x1xf32>
    %138 = vector.broadcast %137 : vector<64x1xf32> to vector<64x128xf32>
    %139 = arith.addf %135, %138 : vector<64x128xf32>
    %cst_88 = arith.constant 0.00999999977 : f32
    %140 = vector.broadcast %cst_88 : f32 to vector<64x128xf32>
    %141 = arith.mulf %140, %139 : vector<64x128xf32>
    %142 = arith.maximumf %139, %141 : vector<64x128xf32>
    %c2_89 = arith.constant 2 : index
    %c0_90 = arith.constant 0 : index
    %c0_91 = arith.constant 0 : index
    %143 = vector.load %arg7[%c2_89, %c0_90, %c0_91] : memref<6x16x64xf32, #tpu.memory_space<vmem>>, vector<1x16x64xf32>
    %144 = vector.shape_cast %143 : vector<1x16x64xf32> to vector<16x64xf32>
    %cst_92 = arith.constant dense<0.000000e+00> : vector<16x128xf32>
    %145 = tpu.matmul %144, %142, %cst_92 {dimension_numbers = #tpu.dot_dimension_numbers<[1], [0], [0], [1], [0, 0, 1, 1], [], []>} : vector<16x64xf32>, vector<64x128xf32>, vector<16x128xf32> -> vector<16x128xf32>
    %c2_93 = arith.constant 2 : index
    %c0_94 = arith.constant 0 : index
    %c0_95 = arith.constant 0 : index
    %146 = vector.load %arg8[%c2_93, %c0_94, %c0_95] : memref<6x16x1xf32, #tpu.memory_space<vmem>>, vector<1x16x1xf32>
    %147 = vector.shape_cast %146 : vector<1x16x1xf32> to vector<16x1xf32>
    %148 = vector.broadcast %147 : vector<16x1xf32> to vector<16x128xf32>
    %149 = arith.addf %145, %148 : vector<16x128xf32>
    %150 = vector.extract_strided_slice %149 {offsets = [0, 0], sizes = [8, 128], strides = [1, 1]} : vector<16x128xf32> to vector<8x128xf32>
    %151 = math.tanh %150 : vector<8x128xf32>
    %152 = vector.extract_strided_slice %149 {offsets = [8, 0], sizes = [8, 128], strides = [1, 1]} : vector<16x128xf32> to vector<8x128xf32>
    %153 = arith.subf %120, %152 : vector<8x128xf32>
    %cst_96 = arith.constant 0.000000e+00 : f32
    %154 = vector.broadcast %cst_96 : f32 to vector<8x128xf32>
    %155 = arith.subf %154, %151 : vector<8x128xf32>
    %156 = math.exp %155 : vector<8x128xf32>
    %157 = arith.mulf %153, %156 : vector<8x128xf32>
    %158 = arith.select %2, %120, %157 : vector<8x128xi1>, vector<8x128xf32>
    %cst_97 = arith.constant 0.000000e+00 : f32
    %159 = vector.broadcast %cst_97 : f32 to vector<8x128xf32>
    %160 = arith.select %3, %158, %159 : vector<8x128xi1>, vector<8x128xf32>
    %c1 = arith.constant 1 : index
    %c0_98 = arith.constant 0 : index
    %c0_99 = arith.constant 0 : index
    %161 = vector.load %arg3[%c1, %c0_98, %c0_99] : memref<6x64x8xf32, #tpu.memory_space<vmem>>, vector<1x64x8xf32>
    %162 = vector.shape_cast %161 : vector<1x64x8xf32> to vector<64x8xf32>
    %cst_100 = arith.constant dense<0.000000e+00> : vector<64x128xf32>
    %163 = tpu.matmul %162, %160, %cst_100 {dimension_numbers = #tpu.dot_dimension_numbers<[1], [0], [0], [1], [0, 0, 1, 1], [], []>} : vector<64x8xf32>, vector<8x128xf32>, vector<64x128xf32> -> vector<64x128xf32>
    %c1_101 = arith.constant 1 : index
    %c0_102 = arith.constant 0 : index
    %c0_103 = arith.constant 0 : index
    %164 = vector.load %arg4[%c1_101, %c0_102, %c0_103] : memref<6x64x1xf32, #tpu.memory_space<vmem>>, vector<1x64x1xf32>
    %165 = vector.shape_cast %164 : vector<1x64x1xf32> to vector<64x1xf32>
    %166 = vector.broadcast %165 : vector<64x1xf32> to vector<64x128xf32>
    %167 = arith.addf %163, %166 : vector<64x128xf32>
    %cst_104 = arith.constant 0.00999999977 : f32
    %168 = vector.broadcast %cst_104 : f32 to vector<64x128xf32>
    %169 = arith.mulf %168, %167 : vector<64x128xf32>
    %170 = arith.maximumf %167, %169 : vector<64x128xf32>
    %c1_105 = arith.constant 1 : index
    %c0_106 = arith.constant 0 : index
    %c0_107 = arith.constant 0 : index
    %171 = vector.load %arg5[%c1_105, %c0_106, %c0_107] : memref<6x64x64xf32, #tpu.memory_space<vmem>>, vector<1x64x64xf32>
    %172 = vector.shape_cast %171 : vector<1x64x64xf32> to vector<64x64xf32>
    %cst_108 = arith.constant dense<0.000000e+00> : vector<64x128xf32>
    %173 = tpu.matmul %172, %170, %cst_108 {dimension_numbers = #tpu.dot_dimension_numbers<[1], [0], [0], [1], [0, 0, 1, 1], [], []>} : vector<64x64xf32>, vector<64x128xf32>, vector<64x128xf32> -> vector<64x128xf32>
    %c1_109 = arith.constant 1 : index
    %c0_110 = arith.constant 0 : index
    %c0_111 = arith.constant 0 : index
    %174 = vector.load %arg6[%c1_109, %c0_110, %c0_111] : memref<6x64x1xf32, #tpu.memory_space<vmem>>, vector<1x64x1xf32>
    %175 = vector.shape_cast %174 : vector<1x64x1xf32> to vector<64x1xf32>
    %176 = vector.broadcast %175 : vector<64x1xf32> to vector<64x128xf32>
    %177 = arith.addf %173, %176 : vector<64x128xf32>
    %cst_112 = arith.constant 0.00999999977 : f32
    %178 = vector.broadcast %cst_112 : f32 to vector<64x128xf32>
    %179 = arith.mulf %178, %177 : vector<64x128xf32>
    %180 = arith.maximumf %177, %179 : vector<64x128xf32>
    %c1_113 = arith.constant 1 : index
    %c0_114 = arith.constant 0 : index
    %c0_115 = arith.constant 0 : index
    %181 = vector.load %arg7[%c1_113, %c0_114, %c0_115] : memref<6x16x64xf32, #tpu.memory_space<vmem>>, vector<1x16x64xf32>
    %182 = vector.shape_cast %181 : vector<1x16x64xf32> to vector<16x64xf32>
    %cst_116 = arith.constant dense<0.000000e+00> : vector<16x128xf32>
    %183 = tpu.matmul %182, %180, %cst_116 {dimension_numbers = #tpu.dot_dimension_numbers<[1], [0], [0], [1], [0, 0, 1, 1], [], []>} : vector<16x64xf32>, vector<64x128xf32>, vector<16x128xf32> -> vector<16x128xf32>
    %c1_117 = arith.constant 1 : index
    %c0_118 = arith.constant 0 : index
    %c0_119 = arith.constant 0 : index
    %184 = vector.load %arg8[%c1_117, %c0_118, %c0_119] : memref<6x16x1xf32, #tpu.memory_space<vmem>>, vector<1x16x1xf32>
    %185 = vector.shape_cast %184 : vector<1x16x1xf32> to vector<16x1xf32>
    %186 = vector.broadcast %185 : vector<16x1xf32> to vector<16x128xf32>
    %187 = arith.addf %183, %186 : vector<16x128xf32>
    %188 = vector.extract_strided_slice %187 {offsets = [0, 0], sizes = [8, 128], strides = [1, 1]} : vector<16x128xf32> to vector<8x128xf32>
    %189 = math.tanh %188 : vector<8x128xf32>
    %190 = vector.extract_strided_slice %187 {offsets = [8, 0], sizes = [8, 128], strides = [1, 1]} : vector<16x128xf32> to vector<8x128xf32>
    %191 = arith.subf %158, %190 : vector<8x128xf32>
    %cst_120 = arith.constant 0.000000e+00 : f32
    %192 = vector.broadcast %cst_120 : f32 to vector<8x128xf32>
    %193 = arith.subf %192, %189 : vector<8x128xf32>
    %194 = math.exp %193 : vector<8x128xf32>
    %195 = arith.mulf %191, %194 : vector<8x128xf32>
    %196 = arith.select %3, %158, %195 : vector<8x128xi1>, vector<8x128xf32>
    %cst_121 = arith.constant 0.000000e+00 : f32
    %197 = vector.broadcast %cst_121 : f32 to vector<8x128xf32>
    %198 = arith.select %2, %196, %197 : vector<8x128xi1>, vector<8x128xf32>
    %c0_122 = arith.constant 0 : index
    %c0_123 = arith.constant 0 : index
    %c0_124 = arith.constant 0 : index
    %199 = vector.load %arg3[%c0_122, %c0_123, %c0_124] : memref<6x64x8xf32, #tpu.memory_space<vmem>>, vector<1x64x8xf32>
    %200 = vector.shape_cast %199 : vector<1x64x8xf32> to vector<64x8xf32>
    %cst_125 = arith.constant dense<0.000000e+00> : vector<64x128xf32>
    %201 = tpu.matmul %200, %198, %cst_125 {dimension_numbers = #tpu.dot_dimension_numbers<[1], [0], [0], [1], [0, 0, 1, 1], [], []>} : vector<64x8xf32>, vector<8x128xf32>, vector<64x128xf32> -> vector<64x128xf32>
    %c0_126 = arith.constant 0 : index
    %c0_127 = arith.constant 0 : index
    %c0_128 = arith.constant 0 : index
    %202 = vector.load %arg4[%c0_126, %c0_127, %c0_128] : memref<6x64x1xf32, #tpu.memory_space<vmem>>, vector<1x64x1xf32>
    %203 = vector.shape_cast %202 : vector<1x64x1xf32> to vector<64x1xf32>
    %204 = vector.broadcast %203 : vector<64x1xf32> to vector<64x128xf32>
    %205 = arith.addf %201, %204 : vector<64x128xf32>
    %cst_129 = arith.constant 0.00999999977 : f32
    %206 = vector.broadcast %cst_129 : f32 to vector<64x128xf32>
    %207 = arith.mulf %206, %205 : vector<64x128xf32>
    %208 = arith.maximumf %205, %207 : vector<64x128xf32>
    %c0_130 = arith.constant 0 : index
    %c0_131 = arith.constant 0 : index
    %c0_132 = arith.constant 0 : index
    %209 = vector.load %arg5[%c0_130, %c0_131, %c0_132] : memref<6x64x64xf32, #tpu.memory_space<vmem>>, vector<1x64x64xf32>
    %210 = vector.shape_cast %209 : vector<1x64x64xf32> to vector<64x64xf32>
    %cst_133 = arith.constant dense<0.000000e+00> : vector<64x128xf32>
    %211 = tpu.matmul %210, %208, %cst_133 {dimension_numbers = #tpu.dot_dimension_numbers<[1], [0], [0], [1], [0, 0, 1, 1], [], []>} : vector<64x64xf32>, vector<64x128xf32>, vector<64x128xf32> -> vector<64x128xf32>
    %c0_134 = arith.constant 0 : index
    %c0_135 = arith.constant 0 : index
    %c0_136 = arith.constant 0 : index
    %212 = vector.load %arg6[%c0_134, %c0_135, %c0_136] : memref<6x64x1xf32, #tpu.memory_space<vmem>>, vector<1x64x1xf32>
    %213 = vector.shape_cast %212 : vector<1x64x1xf32> to vector<64x1xf32>
    %214 = vector.broadcast %213 : vector<64x1xf32> to vector<64x128xf32>
    %215 = arith.addf %211, %214 : vector<64x128xf32>
    %cst_137 = arith.constant 0.00999999977 : f32
    %216 = vector.broadcast %cst_137 : f32 to vector<64x128xf32>
    %217 = arith.mulf %216, %215 : vector<64x128xf32>
    %218 = arith.maximumf %215, %217 : vector<64x128xf32>
    %c0_138 = arith.constant 0 : index
    %c0_139 = arith.constant 0 : index
    %c0_140 = arith.constant 0 : index
    %219 = vector.load %arg7[%c0_138, %c0_139, %c0_140] : memref<6x16x64xf32, #tpu.memory_space<vmem>>, vector<1x16x64xf32>
    %220 = vector.shape_cast %219 : vector<1x16x64xf32> to vector<16x64xf32>
    %cst_141 = arith.constant dense<0.000000e+00> : vector<16x128xf32>
    %221 = tpu.matmul %220, %218, %cst_141 {dimension_numbers = #tpu.dot_dimension_numbers<[1], [0], [0], [1], [0, 0, 1, 1], [], []>} : vector<16x64xf32>, vector<64x128xf32>, vector<16x128xf32> -> vector<16x128xf32>
    %c0_142 = arith.constant 0 : index
    %c0_143 = arith.constant 0 : index
    %c0_144 = arith.constant 0 : index
    %222 = vector.load %arg8[%c0_142, %c0_143, %c0_144] : memref<6x16x1xf32, #tpu.memory_space<vmem>>, vector<1x16x1xf32>
    %223 = vector.shape_cast %222 : vector<1x16x1xf32> to vector<16x1xf32>
    %224 = vector.broadcast %223 : vector<16x1xf32> to vector<16x128xf32>
    %225 = arith.addf %221, %224 : vector<16x128xf32>
    %226 = vector.extract_strided_slice %225 {offsets = [0, 0], sizes = [8, 128], strides = [1, 1]} : vector<16x128xf32> to vector<8x128xf32>
    %227 = math.tanh %226 : vector<8x128xf32>
    %228 = vector.extract_strided_slice %225 {offsets = [8, 0], sizes = [8, 128], strides = [1, 1]} : vector<16x128xf32> to vector<8x128xf32>
    %229 = arith.subf %196, %228 : vector<8x128xf32>
    %cst_145 = arith.constant 0.000000e+00 : f32
    %230 = vector.broadcast %cst_145 : f32 to vector<8x128xf32>
    %231 = arith.subf %230, %227 : vector<8x128xf32>
    %232 = math.exp %231 : vector<8x128xf32>
    %233 = arith.mulf %229, %232 : vector<8x128xf32>
    %234 = arith.select %2, %196, %233 : vector<8x128xi1>, vector<8x128xf32>
    %235 = math.tanh %234 : vector<8x128xf32>
    %236 = vector.extract_strided_slice %235 {offsets = [0, 0], sizes = [1, 128], strides = [1, 1]} : vector<8x128xf32> to vector<1x128xf32>
    %c0_146 = arith.constant 0 : index
    %c0_147 = arith.constant 0 : index
    %237 = vector.load %arg9[%c0_146, %c0_147] : memref<32x1xf32, #tpu.memory_space<vmem>>, vector<32x1xf32>
    %238 = vector.broadcast %237 : vector<32x1xf32> to vector<32x128xf32>
    %239 = vector.broadcast %236 : vector<1x128xf32> to vector<32x128xf32>
    %240 = arith.mulf %238, %239 : vector<32x128xf32>
    %c0_148 = arith.constant 0 : index
    %c0_149 = arith.constant 0 : index
    %241 = vector.load %arg10[%c0_148, %c0_149] : memref<32x1xf32, #tpu.memory_space<vmem>>, vector<32x1xf32>
    %242 = vector.broadcast %241 : vector<32x1xf32> to vector<32x128xf32>
    %243 = arith.addf %240, %242 : vector<32x128xf32>
    %cst_150 = arith.constant 0.00999999977 : f32
    %244 = vector.broadcast %cst_150 : f32 to vector<32x128xf32>
    %245 = arith.mulf %244, %243 : vector<32x128xf32>
    %246 = arith.maximumf %243, %245 : vector<32x128xf32>
    %c0_151 = arith.constant 0 : index
    %c0_152 = arith.constant 0 : index
    %247 = vector.load %arg11[%c0_151, %c0_152] : memref<32x32xf32, #tpu.memory_space<vmem>>, vector<32x32xf32>
    %cst_153 = arith.constant dense<0.000000e+00> : vector<32x128xf32>
    %248 = tpu.matmul %247, %246, %cst_153 {dimension_numbers = #tpu.dot_dimension_numbers<[1], [0], [0], [1], [0, 0, 1, 1], [], []>} : vector<32x32xf32>, vector<32x128xf32>, vector<32x128xf32> -> vector<32x128xf32>
    %c0_154 = arith.constant 0 : index
    %c0_155 = arith.constant 0 : index
    %249 = vector.load %arg12[%c0_154, %c0_155] : memref<32x1xf32, #tpu.memory_space<vmem>>, vector<32x1xf32>
    %250 = vector.broadcast %249 : vector<32x1xf32> to vector<32x128xf32>
    %251 = arith.addf %248, %250 : vector<32x128xf32>
    %cst_156 = arith.constant 0.00999999977 : f32
    %252 = vector.broadcast %cst_156 : f32 to vector<32x128xf32>
    %253 = arith.mulf %252, %251 : vector<32x128xf32>
    %254 = arith.maximumf %251, %253 : vector<32x128xf32>
    %c0_157 = arith.constant 0 : index
    %c0_158 = arith.constant 0 : index
    %255 = vector.load %arg13[%c0_157, %c0_158] : memref<32x1xf32, #tpu.memory_space<vmem>>, vector<32x1xf32>
    %256 = vector.broadcast %255 : vector<32x1xf32> to vector<32x128xf32>
    %257 = arith.mulf %256, %254 : vector<32x128xf32>
    %cst_159 = arith.constant dense<0.000000e+00> : vector<128xf32>
    %258 = vector.multi_reduction <add>, %257, %cst_159 [0] : vector<32x128xf32> to vector<128xf32>
    %259 = vector.shape_cast %258 : vector<128xf32> to vector<1x128xf32>
    %c0_160 = arith.constant 0 : index
    %c0_161 = arith.constant 0 : index
    %260 = vector.load %arg14[%c0_160, %c0_161] : memref<1x1xf32, #tpu.memory_space<vmem>>, vector<1x1xf32>
    %261 = vector.broadcast %260 : vector<1x1xf32> to vector<1x128xf32>
    %262 = arith.addf %259, %261 : vector<1x128xf32>
    %263 = arith.addf %262, %236 : vector<1x128xf32>
    %264 = math.tanh %263 : vector<1x128xf32>
    %c0_162 = arith.constant 0 : index
    %c0_163 = arith.constant 0 : index
    %265 = vector.load %arg16[%c0_162, %c0_163] : memref<2x128xf32, #tpu.memory_space<vmem>>, vector<1x128xf32>
    tpu.vector_store %arg16[%c0_162, %c0_163], %236 {strides = array<i32>} : memref<2x128xf32, #tpu.memory_space<vmem>>, vector<1x128xf32>,
    %c1_164 = arith.constant 1 : index
    %c0_165 = arith.constant 0 : index
    %266 = vector.load %arg16[%c1_164, %c0_165] : memref<2x128xf32, #tpu.memory_space<vmem>>, vector<1x128xf32>
    tpu.vector_store %arg16[%c1_164, %c0_165], %264 {strides = array<i32>} : memref<2x128xf32, #tpu.memory_space<vmem>>, vector<1x128xf32>,
    %267 = vector.shape_cast %264 : vector<1x128xf32> to vector<1x128xf32>
    %268 = vector.broadcast %267 : vector<1x128xf32> to vector<8x128xf32>
    %c0_166 = arith.constant 0 : index
    %c0_167 = arith.constant 0 : index
    %269 = vector.load %arg2[%c0_166, %c0_167] : memref<8x128xf32, #tpu.memory_space<vmem>>, vector<8x128xf32>
    %270 = arith.select %5, %268, %269 : vector<8x128xi1>, vector<8x128xf32>
    %cst_168 = arith.constant 0.000000e+00 : f32
    %271 = vector.broadcast %cst_168 : f32 to vector<8x128xf32>
    %272 = arith.select %2, %270, %271 : vector<8x128xi1>, vector<8x128xf32>
    %c0_169 = arith.constant 0 : index
    %c0_170 = arith.constant 0 : index
    %c0_171 = arith.constant 0 : index
    %273 = vector.load %arg3[%c0_169, %c0_170, %c0_171] : memref<6x64x8xf32, #tpu.memory_space<vmem>>, vector<1x64x8xf32>
    %274 = vector.shape_cast %273 : vector<1x64x8xf32> to vector<64x8xf32>
    %cst_172 = arith.constant dense<0.000000e+00> : vector<64x128xf32>
    %275 = tpu.matmul %274, %272, %cst_172 {dimension_numbers = #tpu.dot_dimension_numbers<[1], [0], [0], [1], [0, 0, 1, 1], [], []>} : vector<64x8xf32>, vector<8x128xf32>, vector<64x128xf32> -> vector<64x128xf32>
    %c0_173 = arith.constant 0 : index
    %c0_174 = arith.constant 0 : index
    %c0_175 = arith.constant 0 : index
    %276 = vector.load %arg4[%c0_173, %c0_174, %c0_175] : memref<6x64x1xf32, #tpu.memory_space<vmem>>, vector<1x64x1xf32>
    %277 = vector.shape_cast %276 : vector<1x64x1xf32> to vector<64x1xf32>
    %278 = vector.broadcast %277 : vector<64x1xf32> to vector<64x128xf32>
    %279 = arith.addf %275, %278 : vector<64x128xf32>
    %cst_176 = arith.constant 0.00999999977 : f32
    %280 = vector.broadcast %cst_176 : f32 to vector<64x128xf32>
    %281 = arith.mulf %280, %279 : vector<64x128xf32>
    %282 = arith.maximumf %279, %281 : vector<64x128xf32>
    %c0_177 = arith.constant 0 : index
    %c0_178 = arith.constant 0 : index
    %c0_179 = arith.constant 0 : index
    %283 = vector.load %arg5[%c0_177, %c0_178, %c0_179] : memref<6x64x64xf32, #tpu.memory_space<vmem>>, vector<1x64x64xf32>
    %284 = vector.shape_cast %283 : vector<1x64x64xf32> to vector<64x64xf32>
    %cst_180 = arith.constant dense<0.000000e+00> : vector<64x128xf32>
    %285 = tpu.matmul %284, %282, %cst_180 {dimension_numbers = #tpu.dot_dimension_numbers<[1], [0], [0], [1], [0, 0, 1, 1], [], []>} : vector<64x64xf32>, vector<64x128xf32>, vector<64x128xf32> -> vector<64x128xf32>
    %c0_181 = arith.constant 0 : index
    %c0_182 = arith.constant 0 : index
    %c0_183 = arith.constant 0 : index
    %286 = vector.load %arg6[%c0_181, %c0_182, %c0_183] : memref<6x64x1xf32, #tpu.memory_space<vmem>>, vector<1x64x1xf32>
    %287 = vector.shape_cast %286 : vector<1x64x1xf32> to vector<64x1xf32>
    %288 = vector.broadcast %287 : vector<64x1xf32> to vector<64x128xf32>
    %289 = arith.addf %285, %288 : vector<64x128xf32>
    %cst_184 = arith.constant 0.00999999977 : f32
    %290 = vector.broadcast %cst_184 : f32 to vector<64x128xf32>
    %291 = arith.mulf %290, %289 : vector<64x128xf32>
    %292 = arith.maximumf %289, %291 : vector<64x128xf32>
    %c0_185 = arith.constant 0 : index
    %c0_186 = arith.constant 0 : index
    %c0_187 = arith.constant 0 : index
    %293 = vector.load %arg7[%c0_185, %c0_186, %c0_187] : memref<6x16x64xf32, #tpu.memory_space<vmem>>, vector<1x16x64xf32>
    %294 = vector.shape_cast %293 : vector<1x16x64xf32> to vector<16x64xf32>
    %cst_188 = arith.constant dense<0.000000e+00> : vector<16x128xf32>
    %295 = tpu.matmul %294, %292, %cst_188 {dimension_numbers = #tpu.dot_dimension_numbers<[1], [0], [0], [1], [0, 0, 1, 1], [], []>} : vector<16x64xf32>, vector<64x128xf32>, vector<16x128xf32> -> vector<16x128xf32>
    %c0_189 = arith.constant 0 : index
    %c0_190 = arith.constant 0 : index
    %c0_191 = arith.constant 0 : index
    %296 = vector.load %arg8[%c0_189, %c0_190, %c0_191] : memref<6x16x1xf32, #tpu.memory_space<vmem>>, vector<1x16x1xf32>
    %297 = vector.shape_cast %296 : vector<1x16x1xf32> to vector<16x1xf32>
    %298 = vector.broadcast %297 : vector<16x1xf32> to vector<16x128xf32>
    %299 = arith.addf %295, %298 : vector<16x128xf32>
    %300 = vector.extract_strided_slice %299 {offsets = [0, 0], sizes = [8, 128], strides = [1, 1]} : vector<16x128xf32> to vector<8x128xf32>
    %301 = math.tanh %300 : vector<8x128xf32>
    %302 = vector.extract_strided_slice %299 {offsets = [8, 0], sizes = [8, 128], strides = [1, 1]} : vector<16x128xf32> to vector<8x128xf32>
    %303 = math.exp %301 : vector<8x128xf32>
    %304 = arith.mulf %270, %303 : vector<8x128xf32>
    %305 = arith.addf %304, %302 : vector<8x128xf32>
    %306 = arith.select %2, %270, %305 : vector<8x128xi1>, vector<8x128xf32>
    %cst_192 = arith.constant 0.000000e+00 : f32
    %307 = vector.broadcast %cst_192 : f32 to vector<8x128xf32>
    %308 = arith.select %3, %306, %307 : vector<8x128xi1>, vector<8x128xf32>
    %c1_193 = arith.constant 1 : index
    %c0_194 = arith.constant 0 : index
    %c0_195 = arith.constant 0 : index
    %309 = vector.load %arg3[%c1_193, %c0_194, %c0_195] : memref<6x64x8xf32, #tpu.memory_space<vmem>>, vector<1x64x8xf32>
    %310 = vector.shape_cast %309 : vector<1x64x8xf32> to vector<64x8xf32>
    %cst_196 = arith.constant dense<0.000000e+00> : vector<64x128xf32>
    %311 = tpu.matmul %310, %308, %cst_196 {dimension_numbers = #tpu.dot_dimension_numbers<[1], [0], [0], [1], [0, 0, 1, 1], [], []>} : vector<64x8xf32>, vector<8x128xf32>, vector<64x128xf32> -> vector<64x128xf32>
    %c1_197 = arith.constant 1 : index
    %c0_198 = arith.constant 0 : index
    %c0_199 = arith.constant 0 : index
    %312 = vector.load %arg4[%c1_197, %c0_198, %c0_199] : memref<6x64x1xf32, #tpu.memory_space<vmem>>, vector<1x64x1xf32>
    %313 = vector.shape_cast %312 : vector<1x64x1xf32> to vector<64x1xf32>
    %314 = vector.broadcast %313 : vector<64x1xf32> to vector<64x128xf32>
    %315 = arith.addf %311, %314 : vector<64x128xf32>
    %cst_200 = arith.constant 0.00999999977 : f32
    %316 = vector.broadcast %cst_200 : f32 to vector<64x128xf32>
    %317 = arith.mulf %316, %315 : vector<64x128xf32>
    %318 = arith.maximumf %315, %317 : vector<64x128xf32>
    %c1_201 = arith.constant 1 : index
    %c0_202 = arith.constant 0 : index
    %c0_203 = arith.constant 0 : index
    %319 = vector.load %arg5[%c1_201, %c0_202, %c0_203] : memref<6x64x64xf32, #tpu.memory_space<vmem>>, vector<1x64x64xf32>
    %320 = vector.shape_cast %319 : vector<1x64x64xf32> to vector<64x64xf32>
    %cst_204 = arith.constant dense<0.000000e+00> : vector<64x128xf32>
    %321 = tpu.matmul %320, %318, %cst_204 {dimension_numbers = #tpu.dot_dimension_numbers<[1], [0], [0], [1], [0, 0, 1, 1], [], []>} : vector<64x64xf32>, vector<64x128xf32>, vector<64x128xf32> -> vector<64x128xf32>
    %c1_205 = arith.constant 1 : index
    %c0_206 = arith.constant 0 : index
    %c0_207 = arith.constant 0 : index
    %322 = vector.load %arg6[%c1_205, %c0_206, %c0_207] : memref<6x64x1xf32, #tpu.memory_space<vmem>>, vector<1x64x1xf32>
    %323 = vector.shape_cast %322 : vector<1x64x1xf32> to vector<64x1xf32>
    %324 = vector.broadcast %323 : vector<64x1xf32> to vector<64x128xf32>
    %325 = arith.addf %321, %324 : vector<64x128xf32>
    %cst_208 = arith.constant 0.00999999977 : f32
    %326 = vector.broadcast %cst_208 : f32 to vector<64x128xf32>
    %327 = arith.mulf %326, %325 : vector<64x128xf32>
    %328 = arith.maximumf %325, %327 : vector<64x128xf32>
    %c1_209 = arith.constant 1 : index
    %c0_210 = arith.constant 0 : index
    %c0_211 = arith.constant 0 : index
    %329 = vector.load %arg7[%c1_209, %c0_210, %c0_211] : memref<6x16x64xf32, #tpu.memory_space<vmem>>, vector<1x16x64xf32>
    %330 = vector.shape_cast %329 : vector<1x16x64xf32> to vector<16x64xf32>
    %cst_212 = arith.constant dense<0.000000e+00> : vector<16x128xf32>
    %331 = tpu.matmul %330, %328, %cst_212 {dimension_numbers = #tpu.dot_dimension_numbers<[1], [0], [0], [1], [0, 0, 1, 1], [], []>} : vector<16x64xf32>, vector<64x128xf32>, vector<16x128xf32> -> vector<16x128xf32>
    %c1_213 = arith.constant 1 : index
    %c0_214 = arith.constant 0 : index
    %c0_215 = arith.constant 0 : index
    %332 = vector.load %arg8[%c1_213, %c0_214, %c0_215] : memref<6x16x1xf32, #tpu.memory_space<vmem>>, vector<1x16x1xf32>
    %333 = vector.shape_cast %332 : vector<1x16x1xf32> to vector<16x1xf32>
    %334 = vector.broadcast %333 : vector<16x1xf32> to vector<16x128xf32>
    %335 = arith.addf %331, %334 : vector<16x128xf32>
    %336 = vector.extract_strided_slice %335 {offsets = [0, 0], sizes = [8, 128], strides = [1, 1]} : vector<16x128xf32> to vector<8x128xf32>
    %337 = math.tanh %336 : vector<8x128xf32>
    %338 = vector.extract_strided_slice %335 {offsets = [8, 0], sizes = [8, 128], strides = [1, 1]} : vector<16x128xf32> to vector<8x128xf32>
    %339 = math.exp %337 : vector<8x128xf32>
    %340 = arith.mulf %306, %339 : vector<8x128xf32>
    %341 = arith.addf %340, %338 : vector<8x128xf32>
    %342 = arith.select %3, %306, %341 : vector<8x128xi1>, vector<8x128xf32>
    %cst_216 = arith.constant 0.000000e+00 : f32
    %343 = vector.broadcast %cst_216 : f32 to vector<8x128xf32>
    %344 = arith.select %2, %342, %343 : vector<8x128xi1>, vector<8x128xf32>
    %c2_217 = arith.constant 2 : index
    %c0_218 = arith.constant 0 : index
    %c0_219 = arith.constant 0 : index
    %345 = vector.load %arg3[%c2_217, %c0_218, %c0_219] : memref<6x64x8xf32, #tpu.memory_space<vmem>>, vector<1x64x8xf32>
    %346 = vector.shape_cast %345 : vector<1x64x8xf32> to vector<64x8xf32>
    %cst_220 = arith.constant dense<0.000000e+00> : vector<64x128xf32>
    %347 = tpu.matmul %346, %344, %cst_220 {dimension_numbers = #tpu.dot_dimension_numbers<[1], [0], [0], [1], [0, 0, 1, 1], [], []>} : vector<64x8xf32>, vector<8x128xf32>, vector<64x128xf32> -> vector<64x128xf32>
    %c2_221 = arith.constant 2 : index
    %c0_222 = arith.constant 0 : index
    %c0_223 = arith.constant 0 : index
    %348 = vector.load %arg4[%c2_221, %c0_222, %c0_223] : memref<6x64x1xf32, #tpu.memory_space<vmem>>, vector<1x64x1xf32>
    %349 = vector.shape_cast %348 : vector<1x64x1xf32> to vector<64x1xf32>
    %350 = vector.broadcast %349 : vector<64x1xf32> to vector<64x128xf32>
    %351 = arith.addf %347, %350 : vector<64x128xf32>
    %cst_224 = arith.constant 0.00999999977 : f32
    %352 = vector.broadcast %cst_224 : f32 to vector<64x128xf32>
    %353 = arith.mulf %352, %351 : vector<64x128xf32>
    %354 = arith.maximumf %351, %353 : vector<64x128xf32>
    %c2_225 = arith.constant 2 : index
    %c0_226 = arith.constant 0 : index
    %c0_227 = arith.constant 0 : index
    %355 = vector.load %arg5[%c2_225, %c0_226, %c0_227] : memref<6x64x64xf32, #tpu.memory_space<vmem>>, vector<1x64x64xf32>
    %356 = vector.shape_cast %355 : vector<1x64x64xf32> to vector<64x64xf32>
    %cst_228 = arith.constant dense<0.000000e+00> : vector<64x128xf32>
    %357 = tpu.matmul %356, %354, %cst_228 {dimension_numbers = #tpu.dot_dimension_numbers<[1], [0], [0], [1], [0, 0, 1, 1], [], []>} : vector<64x64xf32>, vector<64x128xf32>, vector<64x128xf32> -> vector<64x128xf32>
    %c2_229 = arith.constant 2 : index
    %c0_230 = arith.constant 0 : index
    %c0_231 = arith.constant 0 : index
    %358 = vector.load %arg6[%c2_229, %c0_230, %c0_231] : memref<6x64x1xf32, #tpu.memory_space<vmem>>, vector<1x64x1xf32>
    %359 = vector.shape_cast %358 : vector<1x64x1xf32> to vector<64x1xf32>
    %360 = vector.broadcast %359 : vector<64x1xf32> to vector<64x128xf32>
    %361 = arith.addf %357, %360 : vector<64x128xf32>
    %cst_232 = arith.constant 0.00999999977 : f32
    %362 = vector.broadcast %cst_232 : f32 to vector<64x128xf32>
    %363 = arith.mulf %362, %361 : vector<64x128xf32>
    %364 = arith.maximumf %361, %363 : vector<64x128xf32>
    %c2_233 = arith.constant 2 : index
    %c0_234 = arith.constant 0 : index
    %c0_235 = arith.constant 0 : index
    %365 = vector.load %arg7[%c2_233, %c0_234, %c0_235] : memref<6x16x64xf32, #tpu.memory_space<vmem>>, vector<1x16x64xf32>
    %366 = vector.shape_cast %365 : vector<1x16x64xf32> to vector<16x64xf32>
    %cst_236 = arith.constant dense<0.000000e+00> : vector<16x128xf32>
    %367 = tpu.matmul %366, %364, %cst_236 {dimension_numbers = #tpu.dot_dimension_numbers<[1], [0], [0], [1], [0, 0, 1, 1], [], []>} : vector<16x64xf32>, vector<64x128xf32>, vector<16x128xf32> -> vector<16x128xf32>
    %c2_237 = arith.constant 2 : index
    %c0_238 = arith.constant 0 : index
    %c0_239 = arith.constant 0 : index
    %368 = vector.load %arg8[%c2_237, %c0_238, %c0_239] : memref<6x16x1xf32, #tpu.memory_space<vmem>>, vector<1x16x1xf32>
    %369 = vector.shape_cast %368 : vector<1x16x1xf32> to vector<16x1xf32>
    %370 = vector.broadcast %369 : vector<16x1xf32> to vector<16x128xf32>
    %371 = arith.addf %367, %370 : vector<16x128xf32>
    %372 = vector.extract_strided_slice %371 {offsets = [0, 0], sizes = [8, 128], strides = [1, 1]} : vector<16x128xf32> to vector<8x128xf32>
    %373 = math.tanh %372 : vector<8x128xf32>
    %374 = vector.extract_strided_slice %371 {offsets = [8, 0], sizes = [8, 128], strides = [1, 1]} : vector<16x128xf32> to vector<8x128xf32>
    %375 = math.exp %373 : vector<8x128xf32>
    %376 = arith.mulf %342, %375 : vector<8x128xf32>
    %377 = arith.addf %376, %374 : vector<8x128xf32>
    %378 = arith.select %2, %342, %377 : vector<8x128xi1>, vector<8x128xf32>
    %cst_240 = arith.constant 0.000000e+00 : f32
    %379 = vector.broadcast %cst_240 : f32 to vector<8x128xf32>
    %380 = arith.select %3, %378, %379 : vector<8x128xi1>, vector<8x128xf32>
    %c3_241 = arith.constant 3 : index
    %c0_242 = arith.constant 0 : index
    %c0_243 = arith.constant 0 : index
    %381 = vector.load %arg3[%c3_241, %c0_242, %c0_243] : memref<6x64x8xf32, #tpu.memory_space<vmem>>, vector<1x64x8xf32>
    %382 = vector.shape_cast %381 : vector<1x64x8xf32> to vector<64x8xf32>
    %cst_244 = arith.constant dense<0.000000e+00> : vector<64x128xf32>
    %383 = tpu.matmul %382, %380, %cst_244 {dimension_numbers = #tpu.dot_dimension_numbers<[1], [0], [0], [1], [0, 0, 1, 1], [], []>} : vector<64x8xf32>, vector<8x128xf32>, vector<64x128xf32> -> vector<64x128xf32>
    %c3_245 = arith.constant 3 : index
    %c0_246 = arith.constant 0 : index
    %c0_247 = arith.constant 0 : index
    %384 = vector.load %arg4[%c3_245, %c0_246, %c0_247] : memref<6x64x1xf32, #tpu.memory_space<vmem>>, vector<1x64x1xf32>
    %385 = vector.shape_cast %384 : vector<1x64x1xf32> to vector<64x1xf32>
    %386 = vector.broadcast %385 : vector<64x1xf32> to vector<64x128xf32>
    %387 = arith.addf %383, %386 : vector<64x128xf32>
    %cst_248 = arith.constant 0.00999999977 : f32
    %388 = vector.broadcast %cst_248 : f32 to vector<64x128xf32>
    %389 = arith.mulf %388, %387 : vector<64x128xf32>
    %390 = arith.maximumf %387, %389 : vector<64x128xf32>
    %c3_249 = arith.constant 3 : index
    %c0_250 = arith.constant 0 : index
    %c0_251 = arith.constant 0 : index
    %391 = vector.load %arg5[%c3_249, %c0_250, %c0_251] : memref<6x64x64xf32, #tpu.memory_space<vmem>>, vector<1x64x64xf32>
    %392 = vector.shape_cast %391 : vector<1x64x64xf32> to vector<64x64xf32>
    %cst_252 = arith.constant dense<0.000000e+00> : vector<64x128xf32>
    %393 = tpu.matmul %392, %390, %cst_252 {dimension_numbers = #tpu.dot_dimension_numbers<[1], [0], [0], [1], [0, 0, 1, 1], [], []>} : vector<64x64xf32>, vector<64x128xf32>, vector<64x128xf32> -> vector<64x128xf32>
    %c3_253 = arith.constant 3 : index
    %c0_254 = arith.constant 0 : index
    %c0_255 = arith.constant 0 : index
    %394 = vector.load %arg6[%c3_253, %c0_254, %c0_255] : memref<6x64x1xf32, #tpu.memory_space<vmem>>, vector<1x64x1xf32>
    %395 = vector.shape_cast %394 : vector<1x64x1xf32> to vector<64x1xf32>
    %396 = vector.broadcast %395 : vector<64x1xf32> to vector<64x128xf32>
    %397 = arith.addf %393, %396 : vector<64x128xf32>
    %cst_256 = arith.constant 0.00999999977 : f32
    %398 = vector.broadcast %cst_256 : f32 to vector<64x128xf32>
    %399 = arith.mulf %398, %397 : vector<64x128xf32>
    %400 = arith.maximumf %397, %399 : vector<64x128xf32>
    %c3_257 = arith.constant 3 : index
    %c0_258 = arith.constant 0 : index
    %c0_259 = arith.constant 0 : index
    %401 = vector.load %arg7[%c3_257, %c0_258, %c0_259] : memref<6x16x64xf32, #tpu.memory_space<vmem>>, vector<1x16x64xf32>
    %402 = vector.shape_cast %401 : vector<1x16x64xf32> to vector<16x64xf32>
    %cst_260 = arith.constant dense<0.000000e+00> : vector<16x128xf32>
    %403 = tpu.matmul %402, %400, %cst_260 {dimension_numbers = #tpu.dot_dimension_numbers<[1], [0], [0], [1], [0, 0, 1, 1], [], []>} : vector<16x64xf32>, vector<64x128xf32>, vector<16x128xf32> -> vector<16x128xf32>
    %c3_261 = arith.constant 3 : index
    %c0_262 = arith.constant 0 : index
    %c0_263 = arith.constant 0 : index
    %404 = vector.load %arg8[%c3_261, %c0_262, %c0_263] : memref<6x16x1xf32, #tpu.memory_space<vmem>>, vector<1x16x1xf32>
    %405 = vector.shape_cast %404 : vector<1x16x1xf32> to vector<16x1xf32>
    %406 = vector.broadcast %405 : vector<16x1xf32> to vector<16x128xf32>
    %407 = arith.addf %403, %406 : vector<16x128xf32>
    %408 = vector.extract_strided_slice %407 {offsets = [0, 0], sizes = [8, 128], strides = [1, 1]} : vector<16x128xf32> to vector<8x128xf32>
    %409 = math.tanh %408 : vector<8x128xf32>
    %410 = vector.extract_strided_slice %407 {offsets = [8, 0], sizes = [8, 128], strides = [1, 1]} : vector<16x128xf32> to vector<8x128xf32>
    %411 = math.exp %409 : vector<8x128xf32>
    %412 = arith.mulf %378, %411 : vector<8x128xf32>
    %413 = arith.addf %412, %410 : vector<8x128xf32>
    %414 = arith.select %3, %378, %413 : vector<8x128xi1>, vector<8x128xf32>
    %cst_264 = arith.constant 0.000000e+00 : f32
    %415 = vector.broadcast %cst_264 : f32 to vector<8x128xf32>
    %416 = arith.select %2, %414, %415 : vector<8x128xi1>, vector<8x128xf32>
    %c4_265 = arith.constant 4 : index
    %c0_266 = arith.constant 0 : index
    %c0_267 = arith.constant 0 : index
    %417 = vector.load %arg3[%c4_265, %c0_266, %c0_267] : memref<6x64x8xf32, #tpu.memory_space<vmem>>, vector<1x64x8xf32>
    %418 = vector.shape_cast %417 : vector<1x64x8xf32> to vector<64x8xf32>
    %cst_268 = arith.constant dense<0.000000e+00> : vector<64x128xf32>
    %419 = tpu.matmul %418, %416, %cst_268 {dimension_numbers = #tpu.dot_dimension_numbers<[1], [0], [0], [1], [0, 0, 1, 1], [], []>} : vector<64x8xf32>, vector<8x128xf32>, vector<64x128xf32> -> vector<64x128xf32>
    %c4_269 = arith.constant 4 : index
    %c0_270 = arith.constant 0 : index
    %c0_271 = arith.constant 0 : index
    %420 = vector.load %arg4[%c4_269, %c0_270, %c0_271] : memref<6x64x1xf32, #tpu.memory_space<vmem>>, vector<1x64x1xf32>
    %421 = vector.shape_cast %420 : vector<1x64x1xf32> to vector<64x1xf32>
    %422 = vector.broadcast %421 : vector<64x1xf32> to vector<64x128xf32>
    %423 = arith.addf %419, %422 : vector<64x128xf32>
    %cst_272 = arith.constant 0.00999999977 : f32
    %424 = vector.broadcast %cst_272 : f32 to vector<64x128xf32>
    %425 = arith.mulf %424, %423 : vector<64x128xf32>
    %426 = arith.maximumf %423, %425 : vector<64x128xf32>
    %c4_273 = arith.constant 4 : index
    %c0_274 = arith.constant 0 : index
    %c0_275 = arith.constant 0 : index
    %427 = vector.load %arg5[%c4_273, %c0_274, %c0_275] : memref<6x64x64xf32, #tpu.memory_space<vmem>>, vector<1x64x64xf32>
    %428 = vector.shape_cast %427 : vector<1x64x64xf32> to vector<64x64xf32>
    %cst_276 = arith.constant dense<0.000000e+00> : vector<64x128xf32>
    %429 = tpu.matmul %428, %426, %cst_276 {dimension_numbers = #tpu.dot_dimension_numbers<[1], [0], [0], [1], [0, 0, 1, 1], [], []>} : vector<64x64xf32>, vector<64x128xf32>, vector<64x128xf32> -> vector<64x128xf32>
    %c4_277 = arith.constant 4 : index
    %c0_278 = arith.constant 0 : index
    %c0_279 = arith.constant 0 : index
    %430 = vector.load %arg6[%c4_277, %c0_278, %c0_279] : memref<6x64x1xf32, #tpu.memory_space<vmem>>, vector<1x64x1xf32>
    %431 = vector.shape_cast %430 : vector<1x64x1xf32> to vector<64x1xf32>
    %432 = vector.broadcast %431 : vector<64x1xf32> to vector<64x128xf32>
    %433 = arith.addf %429, %432 : vector<64x128xf32>
    %cst_280 = arith.constant 0.00999999977 : f32
    %434 = vector.broadcast %cst_280 : f32 to vector<64x128xf32>
    %435 = arith.mulf %434, %433 : vector<64x128xf32>
    %436 = arith.maximumf %433, %435 : vector<64x128xf32>
    %c4_281 = arith.constant 4 : index
    %c0_282 = arith.constant 0 : index
    %c0_283 = arith.constant 0 : index
    %437 = vector.load %arg7[%c4_281, %c0_282, %c0_283] : memref<6x16x64xf32, #tpu.memory_space<vmem>>, vector<1x16x64xf32>
    %438 = vector.shape_cast %437 : vector<1x16x64xf32> to vector<16x64xf32>
    %cst_284 = arith.constant dense<0.000000e+00> : vector<16x128xf32>
    %439 = tpu.matmul %438, %436, %cst_284 {dimension_numbers = #tpu.dot_dimension_numbers<[1], [0], [0], [1], [0, 0, 1, 1], [], []>} : vector<16x64xf32>, vector<64x128xf32>, vector<16x128xf32> -> vector<16x128xf32>
    %c4_285 = arith.constant 4 : index
    %c0_286 = arith.constant 0 : index
    %c0_287 = arith.constant 0 : index
    %440 = vector.load %arg8[%c4_285, %c0_286, %c0_287] : memref<6x16x1xf32, #tpu.memory_space<vmem>>, vector<1x16x1xf32>
    %441 = vector.shape_cast %440 : vector<1x16x1xf32> to vector<16x1xf32>
    %442 = vector.broadcast %441 : vector<16x1xf32> to vector<16x128xf32>
    %443 = arith.addf %439, %442 : vector<16x128xf32>
    %444 = vector.extract_strided_slice %443 {offsets = [0, 0], sizes = [8, 128], strides = [1, 1]} : vector<16x128xf32> to vector<8x128xf32>
    %445 = math.tanh %444 : vector<8x128xf32>
    %446 = vector.extract_strided_slice %443 {offsets = [8, 0], sizes = [8, 128], strides = [1, 1]} : vector<16x128xf32> to vector<8x128xf32>
    %447 = math.exp %445 : vector<8x128xf32>
    %448 = arith.mulf %414, %447 : vector<8x128xf32>
    %449 = arith.addf %448, %446 : vector<8x128xf32>
    %450 = arith.select %2, %414, %449 : vector<8x128xi1>, vector<8x128xf32>
    %cst_288 = arith.constant 0.000000e+00 : f32
    %451 = vector.broadcast %cst_288 : f32 to vector<8x128xf32>
    %452 = arith.select %3, %450, %451 : vector<8x128xi1>, vector<8x128xf32>
    %c5_289 = arith.constant 5 : index
    %c0_290 = arith.constant 0 : index
    %c0_291 = arith.constant 0 : index
    %453 = vector.load %arg3[%c5_289, %c0_290, %c0_291] : memref<6x64x8xf32, #tpu.memory_space<vmem>>, vector<1x64x8xf32>
    %454 = vector.shape_cast %453 : vector<1x64x8xf32> to vector<64x8xf32>
    %cst_292 = arith.constant dense<0.000000e+00> : vector<64x128xf32>
    %455 = tpu.matmul %454, %452, %cst_292 {dimension_numbers = #tpu.dot_dimension_numbers<[1], [0], [0], [1], [0, 0, 1, 1], [], []>} : vector<64x8xf32>, vector<8x128xf32>, vector<64x128xf32> -> vector<64x128xf32>
    %c5_293 = arith.constant 5 : index
    %c0_294 = arith.constant 0 : index
    %c0_295 = arith.constant 0 : index
    %456 = vector.load %arg4[%c5_293, %c0_294, %c0_295] : memref<6x64x1xf32, #tpu.memory_space<vmem>>, vector<1x64x1xf32>
    %457 = vector.shape_cast %456 : vector<1x64x1xf32> to vector<64x1xf32>
    %458 = vector.broadcast %457 : vector<64x1xf32> to vector<64x128xf32>
    %459 = arith.addf %455, %458 : vector<64x128xf32>
    %cst_296 = arith.constant 0.00999999977 : f32
    %460 = vector.broadcast %cst_296 : f32 to vector<64x128xf32>
    %461 = arith.mulf %460, %459 : vector<64x128xf32>
    %462 = arith.maximumf %459, %461 : vector<64x128xf32>
    %c5_297 = arith.constant 5 : index
    %c0_298 = arith.constant 0 : index
    %c0_299 = arith.constant 0 : index
    %463 = vector.load %arg5[%c5_297, %c0_298, %c0_299] : memref<6x64x64xf32, #tpu.memory_space<vmem>>, vector<1x64x64xf32>
    %464 = vector.shape_cast %463 : vector<1x64x64xf32> to vector<64x64xf32>
    %cst_300 = arith.constant dense<0.000000e+00> : vector<64x128xf32>
    %465 = tpu.matmul %464, %462, %cst_300 {dimension_numbers = #tpu.dot_dimension_numbers<[1], [0], [0], [1], [0, 0, 1, 1], [], []>} : vector<64x64xf32>, vector<64x128xf32>, vector<64x128xf32> -> vector<64x128xf32>
    %c5_301 = arith.constant 5 : index
    %c0_302 = arith.constant 0 : index
    %c0_303 = arith.constant 0 : index
    %466 = vector.load %arg6[%c5_301, %c0_302, %c0_303] : memref<6x64x1xf32, #tpu.memory_space<vmem>>, vector<1x64x1xf32>
    %467 = vector.shape_cast %466 : vector<1x64x1xf32> to vector<64x1xf32>
    %468 = vector.broadcast %467 : vector<64x1xf32> to vector<64x128xf32>
    %469 = arith.addf %465, %468 : vector<64x128xf32>
    %cst_304 = arith.constant 0.00999999977 : f32
    %470 = vector.broadcast %cst_304 : f32 to vector<64x128xf32>
    %471 = arith.mulf %470, %469 : vector<64x128xf32>
    %472 = arith.maximumf %469, %471 : vector<64x128xf32>
    %c5_305 = arith.constant 5 : index
    %c0_306 = arith.constant 0 : index
    %c0_307 = arith.constant 0 : index
    %473 = vector.load %arg7[%c5_305, %c0_306, %c0_307] : memref<6x16x64xf32, #tpu.memory_space<vmem>>, vector<1x16x64xf32>
    %474 = vector.shape_cast %473 : vector<1x16x64xf32> to vector<16x64xf32>
    %cst_308 = arith.constant dense<0.000000e+00> : vector<16x128xf32>
    %475 = tpu.matmul %474, %472, %cst_308 {dimension_numbers = #tpu.dot_dimension_numbers<[1], [0], [0], [1], [0, 0, 1, 1], [], []>} : vector<16x64xf32>, vector<64x128xf32>, vector<16x128xf32> -> vector<16x128xf32>
    %c5_309 = arith.constant 5 : index
    %c0_310 = arith.constant 0 : index
    %c0_311 = arith.constant 0 : index
    %476 = vector.load %arg8[%c5_309, %c0_310, %c0_311] : memref<6x16x1xf32, #tpu.memory_space<vmem>>, vector<1x16x1xf32>
    %477 = vector.shape_cast %476 : vector<1x16x1xf32> to vector<16x1xf32>
    %478 = vector.broadcast %477 : vector<16x1xf32> to vector<16x128xf32>
    %479 = arith.addf %475, %478 : vector<16x128xf32>
    %480 = vector.extract_strided_slice %479 {offsets = [0, 0], sizes = [8, 128], strides = [1, 1]} : vector<16x128xf32> to vector<8x128xf32>
    %481 = math.tanh %480 : vector<8x128xf32>
    %482 = vector.extract_strided_slice %479 {offsets = [8, 0], sizes = [8, 128], strides = [1, 1]} : vector<16x128xf32> to vector<8x128xf32>
    %483 = math.exp %481 : vector<8x128xf32>
    %484 = arith.mulf %450, %483 : vector<8x128xf32>
    %485 = arith.addf %484, %482 : vector<8x128xf32>
    %486 = arith.select %3, %450, %485 : vector<8x128xi1>, vector<8x128xf32>
    %c0_312 = arith.constant 0 : index
    %c0_313 = arith.constant 0 : index
    %487 = vector.load %arg15[%c0_312, %c0_313] : memref<8x128xf32, #tpu.memory_space<vmem>>, vector<8x128xf32>
    tpu.vector_store %arg15[%c0_312, %c0_313], %486 {strides = array<i32>} : memref<8x128xf32, #tpu.memory_space<vmem>>, vector<8x128xf32>,
    return
  }
  func.func @transform_0(%arg0: i32) -> (i32, i32) {
    %c0_i32 = arith.constant 0 : i32
    %c0_i32_0 = arith.constant 0 : i32
    return %c0_i32, %arg0 : i32, i32
  }
  func.func @transform_1(%arg0: i32) -> (i32, i32) {
    %c0_i32 = arith.constant 0 : i32
    %c0_i32_0 = arith.constant 0 : i32
    return %c0_i32, %arg0 : i32, i32
  }
  func.func @transform_2(%arg0: i32) -> (i32, i32, i32) {
    %c0_i32 = arith.constant 0 : i32
    %c0_i32_0 = arith.constant 0 : i32
    %c0_i32_1 = arith.constant 0 : i32
    %c0_i32_2 = arith.constant 0 : i32
    return %c0_i32, %c0_i32_0, %c0_i32_1 : i32, i32, i32
  }
  func.func @transform_3(%arg0: i32) -> (i32, i32, i32) {
    %c0_i32 = arith.constant 0 : i32
    %c0_i32_0 = arith.constant 0 : i32
    %c0_i32_1 = arith.constant 0 : i32
    %c0_i32_2 = arith.constant 0 : i32
    return %c0_i32, %c0_i32_0, %c0_i32_1 : i32, i32, i32
  }
  func.func @transform_4(%arg0: i32) -> (i32, i32, i32) {
    %c0_i32 = arith.constant 0 : i32
    %c0_i32_0 = arith.constant 0 : i32
    %c0_i32_1 = arith.constant 0 : i32
    %c0_i32_2 = arith.constant 0 : i32
    return %c0_i32, %c0_i32_0, %c0_i32_1 : i32, i32, i32
  }
  func.func @transform_5(%arg0: i32) -> (i32, i32, i32) {
    %c0_i32 = arith.constant 0 : i32
    %c0_i32_0 = arith.constant 0 : i32
    %c0_i32_1 = arith.constant 0 : i32
    %c0_i32_2 = arith.constant 0 : i32
    return %c0_i32, %c0_i32_0, %c0_i32_1 : i32, i32, i32
  }
  func.func @transform_6(%arg0: i32) -> (i32, i32, i32) {
    %c0_i32 = arith.constant 0 : i32
    %c0_i32_0 = arith.constant 0 : i32
    %c0_i32_1 = arith.constant 0 : i32
    %c0_i32_2 = arith.constant 0 : i32
    return %c0_i32, %c0_i32_0, %c0_i32_1 : i32, i32, i32
  }
  func.func @transform_7(%arg0: i32) -> (i32, i32, i32) {
    %c0_i32 = arith.constant 0 : i32
    %c0_i32_0 = arith.constant 0 : i32
    %c0_i32_1 = arith.constant 0 : i32
    %c0_i32_2 = arith.constant 0 : i32
    return %c0_i32, %c0_i32_0, %c0_i32_1 : i32, i32, i32
  }
  func.func @transform_8(%arg0: i32) -> (i32, i32) {
    %c0_i32 = arith.constant 0 : i32
    %c0_i32_0 = arith.constant 0 : i32
    %c0_i32_1 = arith.constant 0 : i32
    return %c0_i32, %c0_i32_0 : i32, i32
  }
  func.func @transform_9(%arg0: i32) -> (i32, i32) {
    %c0_i32 = arith.constant 0 : i32
    %c0_i32_0 = arith.constant 0 : i32
    %c0_i32_1 = arith.constant 0 : i32
    return %c0_i32, %c0_i32_0 : i32, i32
  }
  func.func @transform_10(%arg0: i32) -> (i32, i32) {
    %c0_i32 = arith.constant 0 : i32
    %c0_i32_0 = arith.constant 0 : i32
    %c0_i32_1 = arith.constant 0 : i32
    return %c0_i32, %c0_i32_0 : i32, i32
  }
  func.func @transform_11(%arg0: i32) -> (i32, i32) {
    %c0_i32 = arith.constant 0 : i32
    %c0_i32_0 = arith.constant 0 : i32
    %c0_i32_1 = arith.constant 0 : i32
    return %c0_i32, %c0_i32_0 : i32, i32
  }
  func.func @transform_12(%arg0: i32) -> (i32, i32) {
    %c0_i32 = arith.constant 0 : i32
    %c0_i32_0 = arith.constant 0 : i32
    %c0_i32_1 = arith.constant 0 : i32
    return %c0_i32, %c0_i32_0 : i32, i32
  }
  func.func @transform_13(%arg0: i32) -> (i32, i32) {
    %c0_i32 = arith.constant 0 : i32
    %c0_i32_0 = arith.constant 0 : i32
    %c0_i32_1 = arith.constant 0 : i32
    return %c0_i32, %c0_i32_0 : i32, i32
  }
  func.func @transform_14(%arg0: i32) -> (i32, i32) {
    %c0_i32 = arith.constant 0 : i32
    %c0_i32_0 = arith.constant 0 : i32
    return %c0_i32, %arg0 : i32, i32
  }
  func.func @transform_15(%arg0: i32) -> (i32, i32) {
    %c0_i32 = arith.constant 0 : i32
    %c0_i32_0 = arith.constant 0 : i32
    return %c0_i32, %arg0 : i32, i32
  }
}

</mosaic_0001>

<bundles_post_ra>
// kernel: forward.1
= control target key start
LH: loop header
LB: loop body
LE: loop exit
PB: predicated region body
PF: predicated region fallthrough
CT: control target
= control target key end

     0   :  { %v51_v0 = vlaneseq  ;;  %vm116_vm0 = vcmask 64512   ;;  %v8628_v1 = vmov 0   ;;  %vm8629_vm2 = vmmov 1   ;;  %s10979_s3 = inlined_call_operand.vmem [shape: f32[6,64,1], index: 3, kind: input, shape index: {}]   ;;  %s10980_s2 = inlined_call_operand.vmem [shape: f32[6,64,8], index: 2, kind: input, shape index: {}]   ;;  %s10981_s0 = inlined_call_operand.vmem [shape: f32[8,128], index: 0, kind: input, shape index: {}]   ;;  %s10982_s5 = inlined_call_operand.vmem [shape: f32[6,64,1], index: 5, kind: input, shape index: {}]   ;;  %s10983_s7 = inlined_call_operand.vmem [shape: f32[6,16,1], index: 7, kind: input, shape index: {}]   ;;  %s10984_s13 = inlined_call_operand.<no memory space> [shape: f32[1,1], index: 13, kind: input, shape index: {}]   ;;  %s10985_s4 = inlined_call_operand.vmem [shape: f32[6,64,64], index: 4, kind: input, shape index: {}]   ;;  %s10986_s8 = inlined_call_operand.vmem [shape: f32[32,1], index: 8, kind: input, shape index: {}]   ;;  %s10987_s9 = inlined_call_operand.vmem [shape: f32[32,1], index: 9, kind: input, shape index: {}]   ;;  %s10988_s11 = inlined_call_operand.vmem [shape: f32[32,1], index: 11, kind: input, shape index: {}]   ;;  %s10989_s12 = inlined_call_operand.vmem [shape: f32[32,1], index: 12, kind: input, shape index: {}]   ;;  %s10990_s6 = inlined_call_operand.vmem [shape: f32[6,16,64], index: 6, kind: input, shape index: {}]   ;;  %s10991_s10 = inlined_call_operand.vmem [shape: f32[32,32], index: 10, kind: input, shape index: {}]   ;;  %s10992_s15 = inlined_call_operand.vmem [shape: f32[2,128], index: 15, kind: output, shape index: {1}]   ;;  %s10993_s1 = inlined_call_operand.vmem [shape: f32[8,128], index: 1, kind: input, shape index: {}]   ;;  %s10994_s14 = inlined_call_operand.vmem [shape: f32[8,128], index: 14, kind: output, shape index: {0}]  }
   0x1   :  { %8574 = vset.pattern.permute.xlu1 %v8628_v1  ;;  %8573 = vset.pattern.permute.xlu0 %v8628_v1  ;;  %v6423_v2 = vld [vmem:[%s10979_s3 + $0x150] sm:$0xff]  ;;  %v6421_v3 = vld [vmem:[%s10979_s3 + $0x140] sm:$0xff]  ;;  %v6424_v6 = vld [vmem:[%s10979_s3 + $0x158] sm:$0xff]  ;;  %v11032_v9 = vmov 0  ;;  %vm320_vm4 = vcmask 523264   ;;  %vm3216_vm5 = vcmask 261120  }
   0x2   :  { %88 = vperm.xlu1 %8574, %v6423_v2   ;;  %78 = vperm.xlu0 %8573, %v6421_v3   ;;  %v8716_v4 = vshrl.u32 %v51_v0, 7  ;;  %v6413_v5 = vld [vmem:[%s10980_s2 + $0x140] sm:$0xff]  ;;  %v6422_v7 = vld [vmem:[%s10979_s3 + $0x148] sm:$0xff]  ;;  %v6415_v13 = vld [vmem:[%s10980_s2 + $0x150] sm:$0xff] }
   0x3   :  { %7435 = vmatprep.mubr.msk.f32.mxu1 %vm116_vm0, %v6413_v5  ;;  %v56_v8 = vld [vmem:[%s10981_s0] sm:$0xff]  ;;  %v6414_v10 = vld [vmem:[%s10980_s2 + $0x148] sm:$0xff]  ;;  %v6416_v14 = vld [vmem:[%s10980_s2 + $0x158] sm:$0xff] }
   0x4   :  { %11031 = vst [vmem:[#allocation3_spill] sm:$0xff] %v8716_v4  ;;  %vm53_vm1 = vcmp.ge.s32.totalorder %v8716_v4, 4  ;;  %v6426_v11 = vld [vmem:[%s10979_s3 + $0x168] sm:$0xff]  ;;  %v6425_v12 = vld [vmem:[%s10979_s3 + $0x160] sm:$0xff]  ;;  %v6428_v15 = vld [vmem:[%s10979_s3 + $0x178] sm:$0xff] }
   0x5   :  { %vm8734_vm3 = vmxor %vm53_vm1, %vm8629_vm2  ;;  %v6427_v16 = vld [vmem:[%s10979_s3 + $0x170] sm:$0xff]  ;;  %v6417_v17 = vld [vmem:[%s10980_s2 + $0x160] sm:$0xff] }
   0x6   :  { %v11033_v9 = vsel %vm8734_vm3, 4294967295, %v11032_v9  ;;  %93 = vperm.xlu1 %8574, %v6424_v6   ;;  %83 = vperm.xlu0 %8573, %v6422_v7   ;;  %v6418_v18 = vld [vmem:[%s10980_s2 + $0x168] sm:$0xff]  ;;  %v6446_v20 = vld [vmem:[%s10982_s5 + $0x140] sm:$0xff]  ;;  %v6419_v21 = vld [vmem:[%s10980_s2 + $0x170] sm:$0xff] }
   0x7   :  { %11034 = vst [vmem:[#allocation4_spill] sm:$0xff] %v11033_v9  ;;  %7433 = vmatprep.subr.msk.mxu1 %vm8734_vm3, %v56_v8  ;;  %v6447_v19 = vld [vmem:[%s10982_s5 + $0x148] sm:$0xff]  ;;  %v6420_v22 = vld [vmem:[%s10980_s2 + $0x178] sm:$0xff]  ;;  %v6448_v24 = vld [vmem:[%s10982_s5 + $0x150] sm:$0xff] }
   0x8   :  { %7434 = vmatpush3.msk.msra.mxu1 %vm8734_vm3, %v56_v8  ;;  %v6449_v23 = vld [vmem:[%s10982_s5 + $0x158] sm:$0xff]  ;;  %v6451_v25 = vld [vmem:[%s10982_s5 + $0x168] sm:$0xff]  ;;  %v6450_v26 = vld [vmem:[%s10982_s5 + $0x160] sm:$0xff]  ;;  %v21_v8 = vstv %s10984_s13 }
   0x9   :  { %7436 = vmatmul.mubr.msk.f32.vlgmr.msra.gmra.mrb[0].mxu1 %vm116_vm0, %v6414_v10  ;;  %v6453_v27 = vld [vmem:[%s10982_s5 + $0x178] sm:$0xff]  ;;  %v6452_v28 = vld [vmem:[%s10982_s5 + $0x170] sm:$0xff]  ;;  %v6477_v31 = vld [vmem:[%s10979_s3 + $0x108] sm:$0xff]  ;;  %22 = vst [vmem:[#allocation2] sm:$0x1] %v21_v8 }
   0xa   :  { %103 = vperm.xlu1 %8574, %v6426_v11   ;;  %98 = vperm.xlu0 %8573, %v6425_v12   ;;  %v6465_v29 = vld [vmem:[%s10983_s7 + $0x58] sm:$0xff]  ;;  %v6464_v30 = vld [vmem:[%s10983_s7 + $0x50] sm:$0xff]  ;;  %v6476_v32 = vld [vmem:[%s10979_s3 + $0x100] sm:$0xff] }
   0xb   :  { %7438 = vmatprep.mubr.msk.f32.mxu1 %vm116_vm0, %v6415_v13  ;;  %v6479_v33 = vld [vmem:[%s10979_s3 + $0x118] sm:$0xff]  ;;  %v6478_v34 = vld [vmem:[%s10979_s3 + $0x110] sm:$0xff]  ;;  %v6481_v35 = vld [vmem:[%s10979_s3 + $0x128] sm:$0xff] }
   0xc   :  { %v6480_v36 = vld [vmem:[%s10979_s3 + $0x120] sm:$0xff]  ;;  %v6483_v37 = vld [vmem:[%s10979_s3 + $0x138] sm:$0xff]  ;;  %v6482_v38 = vld [vmem:[%s10979_s3 + $0x130] sm:$0xff] }
   0xd   :  { %7439 = vmatmul.mubr.msk.f32.gmra.mrb[2].mxu1 %vm116_vm0, %v6416_v14  ;;  %v6502_v39 = vld [vmem:[%s10982_s5 + $0x108] sm:$0xff]  ;;  %v6501_v40 = vld [vmem:[%s10982_s5 + $0x100] sm:$0xff]  ;;  %v6504_v41 = vld [vmem:[%s10982_s5 + $0x118] sm:$0xff] }
   0xe   :  { %113 = vperm.xlu1 %8574, %v6428_v15   ;;  %108 = vperm.xlu0 %8573, %v6427_v16   ;;  %v6503_v42 = vld [vmem:[%s10982_s5 + $0x110] sm:$0xff]  ;;  %v6506_v43 = vld [vmem:[%s10982_s5 + $0x128] sm:$0xff]  ;;  %v6505_v44 = vld [vmem:[%s10982_s5 + $0x120] sm:$0xff] }
   0xf   :  { %7441 = vmatprep.mubr.msk.f32.mxu1 %vm116_vm0, %v6417_v17  ;;  %v6508_v45 = vld [vmem:[%s10982_s5 + $0x138] sm:$0xff]  ;;  %v6507_v46 = vld [vmem:[%s10982_s5 + $0x130] sm:$0xff]  ;;  %v6520_v47 = vld [vmem:[%s10983_s7 + $0x48] sm:$0xff] }
  0x10   :  { %v6519_v48 = vld [vmem:[%s10983_s7 + $0x40] sm:$0xff]  ;;  %v8869_v49 = vld [vmem:[%s10979_s3 + $0xc8] sm:$0xff]  ;;  %v8881_v51 = vld [vmem:[%s10979_s3 + $0xd8] sm:$0xff] }
  0x11   :  { %7442 = vmatmul.mubr.msk.f32.gmra.mrb[4].mxu1 %vm116_vm0, %v6418_v18  ;;  %11035 = vst [vmem:[#allocation5_spill] sm:$0xff] %v8869_v49  ;;  %v8874_v50 = vld [vmem:[%s10979_s3 + $0xc0] sm:$0xff]  ;;  %11037 = vst [vmem:[#allocation7_spill] sm:$0xff] %v8881_v51  ;;  %v8886_v52 = vld [vmem:[%s10979_s3 + $0xd0] sm:$0xff] }
  0x12   :  { %287 = vperm.xlu1 %8574, %v6447_v19   ;;  %282 = vperm.xlu0 %8573, %v6446_v20   ;;  %11036 = vst [vmem:[#allocation6_spill] sm:$0xff] %v8874_v50  ;;  %11038 = vst [vmem:[#allocation8_spill] sm:$0xff] %v8886_v52  ;;  %v8893_v53 = vld [vmem:[%s10979_s3 + $0xe8] sm:$0xff]  ;;  %v8898_v54 = vld [vmem:[%s10979_s3 + $0xe0] sm:$0xff] }
  0x13   :  { %7444 = vmatprep.mubr.msk.f32.mxu1 %vm116_vm0, %v6419_v21  ;;  %11039 = vst [vmem:[#allocation9_spill] sm:$0xff] %v8893_v53  ;;  %11040 = vst [vmem:[#allocation10_spill] sm:$0xff] %v8898_v54  ;;  %v8905_v55 = vld [vmem:[%s10979_s3 + $0xf8] sm:$0xff]  ;;  %v8910_v56 = vld [vmem:[%s10979_s3 + $0xf0] sm:$0xff] }
  0x14   :  { %11041 = vst [vmem:[#allocation11_spill] sm:$0xff] %v8905_v55  ;;  %11042 = vst [vmem:[#allocation12_spill] sm:$0xff] %v8910_v56  ;;  %v8917_v57 = vld [vmem:[%s10982_s5 + $0xc8] sm:$0xff]  ;;  %v8922_v58 = vld [vmem:[%s10982_s5 + $0xc0] sm:$0xff] }
  0x15   :  { %7445 = vmatmul.mubr.msk.f32.gmra.mrb[6].mxu1 %vm116_vm0, %v6420_v22  ;;  %11043 = vst [vmem:[#allocation13_spill] sm:$0xff] %v8917_v57  ;;  %11044 = vst [vmem:[#allocation14_spill] sm:$0xff] %v8922_v58  ;;  %v8929_v59 = vld [vmem:[%s10982_s5 + $0xd8] sm:$0xff]  ;;  %v8934_v60 = vld [vmem:[%s10982_s5 + $0xd0] sm:$0xff] }
  0x16   :  { %297 = vperm.xlu1 %8574, %v6449_v23   ;;  %292 = vperm.xlu0 %8573, %v6448_v24   ;;  %11045 = vst [vmem:[#allocation15_spill] sm:$0xff] %v8929_v59  ;;  %11046 = vst [vmem:[#allocation16_spill] sm:$0xff] %v8934_v60  ;;  %v8941_v61 = vld [vmem:[%s10982_s5 + $0xe8] sm:$0xff]  ;;  %v8946_v62 = vld [vmem:[%s10982_s5 + $0xe0] sm:$0xff] }
  0x17   :  { %11047 = vst [vmem:[#allocation17_spill] sm:$0xff] %v8941_v61  ;;  %11048 = vst [vmem:[#allocation18_spill] sm:$0xff] %v8946_v62  ;;  %v8953_v63 = vld [vmem:[%s10982_s5 + $0xf8] sm:$0xff]  ;;  %v8958_v0 = vld [vmem:[%s10982_s5 + $0xf0] sm:$0xff] }
  0x18   :  { %11049 = vst [vmem:[#allocation19_spill] sm:$0xff] %v8953_v63  ;;  %11050 = vst [vmem:[#allocation20_spill] sm:$0xff] %v8958_v0  ;;  %v8965_v1 = vld [vmem:[%s10983_s7 + $0x38] sm:$0xff]  ;;  %v8970_v2 = vld [vmem:[%s10983_s7 + $0x30] sm:$0xff] }
  0x19   :  { %11051 = vst [vmem:[#allocation21_spill] sm:$0xff] %v8965_v1  ;;  %11052 = vst [vmem:[#allocation22_spill] sm:$0xff] %v8970_v2  ;;  %v8977_v3 = vld [vmem:[%s10979_s3 + $0x88] sm:$0xff]  ;;  %v8982_v5 = vld [vmem:[%s10979_s3 + $0x80] sm:$0xff] }
  0x1a   :  { %307 = vperm.xlu1 %8574, %v6451_v25   ;;  %302 = vperm.xlu0 %8573, %v6450_v26   ;;  %v8989_v6 = vld [vmem:[%s10979_s3 + $0x98] sm:$0xff]  ;;  %v8994_v7 = vld [vmem:[%s10979_s3 + $0x90] sm:$0xff]  ;;  %v9004_v10 = vld [vmem:[%s10979_s3 + $0xa8] sm:$0xff] }
  0x1b   :  { %11053 = vst [vmem:[#allocation23_spill] sm:$0xff] %v8989_v6  ;;  %11054 = vst [vmem:[#allocation24_spill] sm:$0xff] %v9004_v10  ;;  %v9009_v11 = vld [vmem:[%s10979_s3 + $0xa0] sm:$0xff]  ;;  %v9020_v13 = vld [vmem:[%s10979_s3 + $0xb8] sm:$0xff] }
  0x1c   :  { %v6438_v12 = vld [vmem:[%s10985_s4 + $0x140] sm:$0xff]  ;;  %11055 = vst [vmem:[#allocation25_spill] sm:$0xff] %v9020_v13  ;;  %v9025_v14 = vld [vmem:[%s10979_s3 + $0xb0] sm:$0xff]  ;;  %v9032_v15 = vld [vmem:[%s10982_s5 + $0x88] sm:$0xff] }
  0x1d   :  { %7463 = vmatprep.mubr.msk.f32.mxu1 %vm320_vm4, %v6438_v12  ;;  %11056 = vst [vmem:[#allocation26_spill] sm:$0xff] %v9025_v14  ;;  %11057 = vst [vmem:[#allocation27_spill] sm:$0xff] %v9032_v15  ;;  %v9037_v16 = vld [vmem:[%s10982_s5 + $0x80] sm:$0xff]  ;;  %v9044_v17 = vld [vmem:[%s10982_s5 + $0x98] sm:$0xff] }
  0x1e   :  { %317 = vperm.xlu1 %8574, %v6453_v27   ;;  %312 = vperm.xlu0 %8573, %v6452_v28   ;;  %11058 = vst [vmem:[#allocation28_spill] sm:$0xff] %v9037_v16  ;;  %11059 = vst [vmem:[#allocation29_spill] sm:$0xff] %v9044_v17  ;;  %v9049_v18 = vld [vmem:[%s10982_s5 + $0x90] sm:$0xff]  ;;  %v9060_v21 = vld [vmem:[%s10982_s5 + $0xa8] sm:$0xff] }
  0x1f   :  { %11060 = vst [vmem:[#allocation30_spill] sm:$0xff] %v9049_v18  ;;  %11061 = vst [vmem:[#allocation31_spill] sm:$0xff] %v9060_v21  ;;  %v9065_v22 = vld [vmem:[%s10982_s5 + $0xa0] sm:$0xff]  ;;  %v9076_v25 = vld [vmem:[%s10982_s5 + $0xb8] sm:$0xff] }
  0x20   :  { %11062 = vst [vmem:[#allocation32_spill] sm:$0xff] %v9065_v22  ;;  %11063 = vst [vmem:[#allocation33_spill] sm:$0xff] %v9076_v25  ;;  %v9081_v26 = vld [vmem:[%s10982_s5 + $0xb0] sm:$0xff]  ;;  %v9172_v8 = vld [vmem:[%s10982_s5 + $0x48] sm:$0xff] }
  0x21   :  { %11064 = vst [vmem:[#allocation34_spill] sm:$0xff] %v9081_v26  ;;  %v9177_v12 = vld [vmem:[%s10982_s5 + $0x40] sm:$0xff] }
  0x22   :  { %479 = vperm.xlu1 %8574, %v6465_v29   ;;  %474 = vperm.xlu0 %8573, %v6464_v30   ;;  %v9092_v29 = vld [vmem:[%s10983_s7 + $0x28] sm:$0xff]  ;;  %v9097_v30 = vld [vmem:[%s10983_s7 + $0x20] sm:$0xff] }
  0x23   :  { %11065 = vst [vmem:[#allocation35_spill] sm:$0xff] %v9092_v29  ;;  %11066 = vst [vmem:[#allocation36_spill] sm:$0xff] %v9097_v30 }
  0x26   :  { %596 = vperm.xlu1 %8574, %v6477_v31   ;;  %591 = vperm.xlu0 %8573, %v6476_v32  }
  0x2a   :  { %606 = vperm.xlu1 %8574, %v6479_v33   ;;  %601 = vperm.xlu0 %8573, %v6478_v34   ;;  %v9108_v33 = vld [vmem:[%s10979_s3 + $0x48] sm:$0xff]  ;;  %v9113_v34 = vld [vmem:[%s10979_s3 + $0x40] sm:$0xff] }
  0x2e   :  { %616 = vperm.xlu1 %8574, %v6481_v35   ;;  %611 = vperm.xlu0 %8573, %v6480_v36  }
  0x32   :  { %626 = vperm.xlu1 %8574, %v6483_v37   ;;  %621 = vperm.xlu0 %8573, %v6482_v38   ;;  %v9124_v37 = vld [vmem:[%s10979_s3 + $0x58] sm:$0xff]  ;;  %v9129_v38 = vld [vmem:[%s10979_s3 + $0x50] sm:$0xff] }
  0x36   :  { %799 = vperm.xlu1 %8574, %v6502_v39   ;;  %794 = vperm.xlu0 %8573, %v6501_v40  }
  0x3a   :  { %809 = vperm.xlu1 %8574, %v6504_v41   ;;  %804 = vperm.xlu0 %8573, %v6503_v42   ;;  %v9140_v41 = vld [vmem:[%s10979_s3 + $0x68] sm:$0xff]  ;;  %v9145_v42 = vld [vmem:[%s10979_s3 + $0x60] sm:$0xff] }
  0x3e   :  { %819 = vperm.xlu1 %8574, %v6506_v43   ;;  %814 = vperm.xlu0 %8573, %v6505_v44  }
  0x42   :  { %829 = vperm.xlu1 %8574, %v6508_v45   ;;  %824 = vperm.xlu0 %8573, %v6507_v46   ;;  %v9156_v45 = vld [vmem:[%s10979_s3 + $0x78] sm:$0xff]  ;;  %v9161_v46 = vld [vmem:[%s10979_s3 + $0x70] sm:$0xff] }
  0x46   :  { %990 = vperm.xlu1 %8574, %v6520_v47   ;;  %985 = vperm.xlu0 %8573, %v6519_v48  }
  0x4a   :  { %1107 = vperm.xlu1 %8574, %v8869_v49   ;;  %1102 = vperm.xlu0 %8573, %v8874_v50  }
  0x4e   :  { %1117 = vperm.xlu1 %8574, %v8881_v51   ;;  %1112 = vperm.xlu0 %8573, %v8886_v52  }
  0x52   :  { %1127 = vperm.xlu1 %8574, %v8893_v53   ;;  %1122 = vperm.xlu0 %8573, %v8898_v54  }
  0x56   :  { %1137 = vperm.xlu1 %8574, %v8905_v55   ;;  %1132 = vperm.xlu0 %8573, %v8910_v56  }
  0x5a   :  { %1310 = vperm.xlu1 %8574, %v8917_v57   ;;  %1305 = vperm.xlu0 %8573, %v8922_v58  }
  0x5e   :  { %1320 = vperm.xlu1 %8574, %v8929_v59   ;;  %1315 = vperm.xlu0 %8573, %v8934_v60  }
  0x62   :  { %1330 = vperm.xlu1 %8574, %v8941_v61   ;;  %1325 = vperm.xlu0 %8573, %v8946_v62  }
  0x66   :  { %1340 = vperm.xlu1 %8574, %v8953_v63   ;;  %1335 = vperm.xlu0 %8573, %v8958_v0  }
  0x6a   :  { %1501 = vperm.xlu1 %8574, %v8965_v1   ;;  %1496 = vperm.xlu0 %8573, %v8970_v2  }
  0x6e   :  { %1618 = vperm.xlu1 %8574, %v8977_v3   ;;  %1613 = vperm.xlu0 %8573, %v8982_v5  }
  0x72   :  { %1628 = vperm.xlu1 %8574, %v8989_v6   ;;  %1623 = vperm.xlu0 %8573, %v8994_v7  }
  0x76   :  { %1638 = vperm.xlu1 %8574, %v9004_v10   ;;  %1633 = vperm.xlu0 %8573, %v9009_v11   ;;  %v3155_v10 = vld [vmem:[%s10987_s9 + $0x18] sm:$0xff] }
  0x7a   :  { %1648 = vperm.xlu1 %8574, %v9020_v13   ;;  %1643 = vperm.xlu0 %8573, %v9025_v14  }
  0x7e   :  { %1821 = vperm.xlu1 %8574, %v9032_v15   ;;  %1816 = vperm.xlu0 %8573, %v9037_v16  }
  0x81   :  { %v9051_v19 = vpop.permute.xlu1 %88  ;;  %v9053_v20 = vpop.permute.xlu0 %78 }
  0x82   :  { %1831 = vperm.xlu1 %8574, %v9044_v17   ;;  %1826 = vperm.xlu0 %8573, %v9049_v18  }
  0x85   :  { %v9067_v23 = vpop.permute.xlu1 %93  ;;  %v9069_v24 = vpop.permute.xlu0 %83 }
  0x86   :  { %1841 = vperm.xlu1 %8574, %v9060_v21   ;;  %1836 = vperm.xlu0 %8573, %v9065_v22  }
  0x89   :  { %v9083_v27 = vpop.permute.xlu1 %103  ;;  %v9085_v28 = vpop.permute.xlu0 %98 }
  0x8a   :  { %1851 = vperm.xlu1 %8574, %v9076_v25   ;;  %1846 = vperm.xlu0 %8573, %v9081_v26  }
  0x8d   :  { %v9099_v31 = vpop.permute.xlu1 %113  ;;  %v9101_v32 = vpop.permute.xlu0 %108 }
  0x8e   :  { %2012 = vperm.xlu1 %8574, %v9092_v29   ;;  %2007 = vperm.xlu0 %8573, %v9097_v30  }
  0x91   :  { %v9115_v35 = vpop.permute.xlu1 %287  ;;  %v9117_v36 = vpop.permute.xlu0 %282 }
  0x92   :  { %11067 = vst [vmem:[#allocation37_spill] sm:$0xff] %v9115_v35  ;;  %11068 = vst [vmem:[#allocation38_spill] sm:$0xff] %v9117_v36  ;;  %2129 = vperm.xlu1 %8574, %v9108_v33   ;;  %2124 = vperm.xlu0 %8573, %v9113_v34  }
  0x95   :  { %v9131_v39 = vpop.permute.xlu1 %297  ;;  %v9133_v40 = vpop.permute.xlu0 %292 }
  0x96   :  { %11069 = vst [vmem:[#allocation39_spill] sm:$0xff] %v9131_v39  ;;  %11070 = vst [vmem:[#allocation40_spill] sm:$0xff] %v9133_v40  ;;  %2139 = vperm.xlu1 %8574, %v9124_v37   ;;  %2134 = vperm.xlu0 %8573, %v9129_v38  }
  0x99   :  { %v9147_v43 = vpop.permute.xlu1 %307  ;;  %v9149_v44 = vpop.permute.xlu0 %302 }
  0x9a   :  { %11071 = vst [vmem:[#allocation41_spill] sm:$0xff] %v9147_v43  ;;  %11072 = vst [vmem:[#allocation42_spill] sm:$0xff] %v9149_v44  ;;  %2149 = vperm.xlu1 %8574, %v9140_v41   ;;  %2144 = vperm.xlu0 %8573, %v9145_v42  }
  0x9d   :  { %v9163_v47 = vpop.permute.xlu1 %317  ;;  %v9165_v48 = vpop.permute.xlu0 %312 }
  0x9e   :  { %11073 = vst [vmem:[#allocation43_spill] sm:$0xff] %v9163_v47  ;;  %11074 = vst [vmem:[#allocation44_spill] sm:$0xff] %v9165_v48  ;;  %2159 = vperm.xlu1 %8574, %v9156_v45   ;;  %2154 = vperm.xlu0 %8573, %v9161_v46   ;;  %v9188_v48 = vld [vmem:[%s10982_s5 + $0x58] sm:$0xff]  ;;  %v9193_v47 = vld [vmem:[%s10982_s5 + $0x50] sm:$0xff] }
  0xa1   :  { %v9179_v4 = vpop.permute.xlu1 %479  ;;  %v9181_v9 = vpop.permute.xlu0 %474 }
  0xa2   :  { %11075 = vst [vmem:[#allocation45_spill] sm:$0xff] %v9179_v4  ;;  %11076 = vst [vmem:[#allocation46_spill] sm:$0xff] %v9181_v9  ;;  %2332 = vperm.xlu1 %8574, %v9172_v8   ;;  %2327 = vperm.xlu0 %8573, %v9177_v12   ;;  %v9204_v4 = vld [vmem:[%s10982_s5 + $0x68] sm:$0xff]  ;;  %v9209_v9 = vld [vmem:[%s10982_s5 + $0x60] sm:$0xff] }
  0xa5   :  { %v9195_v44 = vpop.permute.xlu1 %596  ;;  %v9197_v43 = vpop.permute.xlu0 %591 }
  0xa6   :  { %11077 = vst [vmem:[#allocation47_spill] sm:$0xff] %v9195_v44  ;;  %11078 = vst [vmem:[#allocation48_spill] sm:$0xff] %v9197_v43  ;;  %2342 = vperm.xlu1 %8574, %v9188_v48   ;;  %2337 = vperm.xlu0 %8573, %v9193_v47   ;;  %v9220_v43 = vld [vmem:[%s10982_s5 + $0x78] sm:$0xff]  ;;  %v9225_v44 = vld [vmem:[%s10982_s5 + $0x70] sm:$0xff] }
  0xa9   :  { %v9211_v40 = vpop.permute.xlu1 %606  ;;  %v9213_v39 = vpop.permute.xlu0 %601 }
  0xaa   :  { %11079 = vst [vmem:[#allocation49_spill] sm:$0xff] %v9211_v40  ;;  %11080 = vst [vmem:[#allocation50_spill] sm:$0xff] %v9213_v39  ;;  %2352 = vperm.xlu1 %8574, %v9204_v4   ;;  %2347 = vperm.xlu0 %8573, %v9209_v9   ;;  %v9236_v39 = vld [vmem:[%s10983_s7 + $0x18] sm:$0xff]  ;;  %v9241_v40 = vld [vmem:[%s10983_s7 + $0x10] sm:$0xff] }
  0xad   :  { %v9227_v36 = vpop.permute.xlu1 %616  ;;  %v9229_v35 = vpop.permute.xlu0 %611 }
  0xae   :  { %11081 = vst [vmem:[#allocation51_spill] sm:$0xff] %v9227_v36  ;;  %11082 = vst [vmem:[#allocation52_spill] sm:$0xff] %v9229_v35  ;;  %2362 = vperm.xlu1 %8574, %v9220_v43   ;;  %2357 = vperm.xlu0 %8573, %v9225_v44   ;;  %v9252_v35 = vld [vmem:[%s10979_s3 + $0x8] sm:$0xff]  ;;  %v9257_v36 = vld [vmem:[%s10979_s3] sm:$0xff] }
  0xb1   :  { %v9243_v1 = vpop.permute.xlu1 %626  ;;  %v9245_v63 = vpop.permute.xlu0 %621 }
  0xb2   :  { %11083 = vst [vmem:[#allocation53_spill] sm:$0xff] %v9243_v1  ;;  %11084 = vst [vmem:[#allocation54_spill] sm:$0xff] %v9245_v63  ;;  %2523 = vperm.xlu1 %8574, %v9236_v39   ;;  %2518 = vperm.xlu0 %8573, %v9241_v40   ;;  %v9268_v63 = vld [vmem:[%s10979_s3 + $0x18] sm:$0xff]  ;;  %v9273_v1 = vld [vmem:[%s10979_s3 + $0x10] sm:$0xff] }
  0xb5   :  { %v9259_v2 = vpop.permute.xlu1 %799  ;;  %v9261_v61 = vpop.permute.xlu0 %794 }
  0xb6   :  { %11085 = vst [vmem:[#allocation55_spill] sm:$0xff] %v9259_v2  ;;  %11086 = vst [vmem:[#allocation56_spill] sm:$0xff] %v9261_v61  ;;  %2638 = vperm.xlu1 %8574, %v9252_v35   ;;  %2633 = vperm.xlu0 %8573, %v9257_v36   ;;  %v9284_v61 = vld [vmem:[%s10979_s3 + $0x28] sm:$0xff]  ;;  %v9289_v2 = vld [vmem:[%s10979_s3 + $0x20] sm:$0xff] }
  0xb9   :  { %v9275_v0 = vpop.permute.xlu1 %809  ;;  %v9277_v59 = vpop.permute.xlu0 %804 }
  0xba   :  { %11087 = vst [vmem:[#allocation57_spill] sm:$0xff] %v9275_v0  ;;  %11088 = vst [vmem:[#allocation58_spill] sm:$0xff] %v9277_v59  ;;  %2648 = vperm.xlu1 %8574, %v9268_v63   ;;  %2643 = vperm.xlu0 %8573, %v9273_v1   ;;  %v9300_v59 = vld [vmem:[%s10979_s3 + $0x38] sm:$0xff]  ;;  %v9305_v0 = vld [vmem:[%s10979_s3 + $0x30] sm:$0xff] }
  0xbd   :  { %v9291_v62 = vpop.permute.xlu1 %819  ;;  %v9293_v57 = vpop.permute.xlu0 %814 }
  0xbe   :  { %11089 = vst [vmem:[#allocation59_spill] sm:$0xff] %v9291_v62  ;;  %11090 = vst [vmem:[#allocation60_spill] sm:$0xff] %v9293_v57  ;;  %2658 = vperm.xlu1 %8574, %v9284_v61   ;;  %2653 = vperm.xlu0 %8573, %v9289_v2   ;;  %v9316_v57 = vld [vmem:[%s10982_s5 + $0x8] sm:$0xff]  ;;  %v9321_v62 = vld [vmem:[%s10982_s5] sm:$0xff] }
  0xc1   :  { %v9307_v60 = vpop.permute.xlu1 %829  ;;  %v9309_v55 = vpop.permute.xlu0 %824 }
  0xc2   :  { %11091 = vst [vmem:[#allocation61_spill] sm:$0xff] %v9307_v60  ;;  %11092 = vst [vmem:[#allocation62_spill] sm:$0xff] %v9309_v55  ;;  %2668 = vperm.xlu1 %8574, %v9300_v59   ;;  %2663 = vperm.xlu0 %8573, %v9305_v0   ;;  %v9332_v55 = vld [vmem:[%s10982_s5 + $0x18] sm:$0xff]  ;;  %v9337_v60 = vld [vmem:[%s10982_s5 + $0x10] sm:$0xff] }
  0xc5   :  { %v9323_v58 = vpop.permute.xlu1 %990  ;;  %v9325_v53 = vpop.permute.xlu0 %985 }
  0xc6   :  { %11093 = vst [vmem:[#allocation63_spill] sm:$0xff] %v9323_v58  ;;  %11094 = vst [vmem:[#allocation64_spill] sm:$0xff] %v9325_v53  ;;  %2839 = vperm.xlu1 %8574, %v9316_v57   ;;  %2834 = vperm.xlu0 %8573, %v9321_v62   ;;  %v9348_v58 = vld [vmem:[%s10982_s5 + $0x28] sm:$0xff]  ;;  %v9353_v53 = vld [vmem:[%s10982_s5 + $0x20] sm:$0xff] }
  0xc9   :  { %v9339_v56 = vpop.permute.xlu1 %1107  ;;  %v9341_v51 = vpop.permute.xlu0 %1102 }
  0xca   :  { %11095 = vst [vmem:[#allocation65_spill] sm:$0xff] %v9339_v56  ;;  %11096 = vst [vmem:[#allocation66_spill] sm:$0xff] %v9341_v51  ;;  %2849 = vperm.xlu1 %8574, %v9332_v55   ;;  %2844 = vperm.xlu0 %8573, %v9337_v60   ;;  %v9364_v51 = vld [vmem:[%s10982_s5 + $0x38] sm:$0xff]  ;;  %v9369_v56 = vld [vmem:[%s10982_s5 + $0x30] sm:$0xff] }
  0xcd   :  { %v9355_v54 = vpop.permute.xlu1 %1117  ;;  %v9357_v49 = vpop.permute.xlu0 %1112 }
  0xce   :  { %11097 = vst [vmem:[#allocation67_spill] sm:$0xff] %v9355_v54  ;;  %11098 = vst [vmem:[#allocation68_spill] sm:$0xff] %v9357_v49  ;;  %2859 = vperm.xlu1 %8574, %v9348_v58   ;;  %2854 = vperm.xlu0 %8573, %v9353_v53   ;;  %v9380_v49 = vld [vmem:[%s10983_s7 + $0x8] sm:$0xff]  ;;  %v9385_v54 = vld [vmem:[%s10983_s7] sm:$0xff] }
  0xd1   :  { %v9371_v52 = vpop.permute.xlu1 %1127  ;;  %v9373_v29 = vpop.permute.xlu0 %1122 }
  0xd2   :  { %11099 = vst [vmem:[#allocation69_spill] sm:$0xff] %v9371_v52  ;;  %11100 = vst [vmem:[#allocation70_spill] sm:$0xff] %v9373_v29  ;;  %2869 = vperm.xlu1 %8574, %v9364_v51   ;;  %2864 = vperm.xlu0 %8573, %v9369_v56   ;;  %v3121_v29 = vld [vmem:[%s10986_s8 + $0x8] sm:$0xff]  ;;  %v3120_v52 = vld [vmem:[%s10986_s8] sm:$0xff] }
  0xd5   :  { %v9387_v50 = vpop.permute.xlu1 %1137  ;;  %v9389_v25 = vpop.permute.xlu0 %1132 }
  0xd6   :  { %11101 = vst [vmem:[#allocation71_spill] sm:$0xff] %v9387_v50  ;;  %11102 = vst [vmem:[#allocation72_spill] sm:$0xff] %v9389_v25  ;;  %3028 = vperm.xlu1 %8574, %v9380_v49   ;;  %3023 = vperm.xlu0 %8573, %v9385_v54   ;;  %v3153_v25 = vld [vmem:[%s10987_s9 + $0x8] sm:$0xff]  ;;  %v3152_v50 = vld [vmem:[%s10987_s9] sm:$0xff] }
  0xd9   :  { %v9399_v30 = vpop.permute.xlu1 %1310  ;;  %v9401_v21 = vpop.permute.xlu0 %1305 }
  0xda   :  { %11103 = vst [vmem:[#allocation73_spill] sm:$0xff] %v9399_v30  ;;  %11104 = vst [vmem:[#allocation74_spill] sm:$0xff] %v9401_v21  ;;  %3131 = vperm.xlu1 %8574, %v3121_v29   ;;  %3126 = vperm.xlu0 %8573, %v3120_v52   ;;  %v3123_v29 = vld [vmem:[%s10986_s8 + $0x18] sm:$0xff]  ;;  %v3122_v21 = vld [vmem:[%s10986_s8 + $0x10] sm:$0xff] }
  0xdc   :  { %v7437_v26 = vpop.f32.mrb[0].mxu1 }
  0xdd   :  { %v213_v17 = vadd.f32 %v7437_v26, %v9069_v24  ;;  %v207_v22 = vpop.f32.mrb[1].mxu1  ;;  %v9410_v15 = vpop.permute.xlu1 %1320 }
  0xde   :  { %11105 = vst [vmem:[#allocation75_spill] sm:$0xff] %v9410_v15  ;;  %v208_v30 = vadd.f32 %v207_v22, %v9053_v20  ;;  %v9413_v18 = vpop.permute.xlu0 %1315  ;;  %3163 = vperm.xlu1 %8574, %v3153_v25   ;;  %3158 = vperm.xlu0 %8573, %v3152_v50  }
  0xdf   :  { %11106 = vst [vmem:[#allocation76_spill] sm:$0xff] %v9413_v18  ;;  %v247_v52 = vmul.f32 0.01, %v213_v17 }
  0xe0   :  { %v246_v13 = vmul.f32 0.01, %v208_v30  ;;  %v7440_v24 = vpop.f32.mrb[2].mxu1 }
  0xe1   :  { %v255_v26 = vmax.f32 %v213_v17, %v247_v52  ;;  %v223_v15 = vadd.f32 %v7440_v24, %v9067_v23  ;;  %v217_v16 = vpop.f32.mrb[3].mxu1  ;;  %v9422_v20 = vpop.permute.xlu1 %1330  ;;  %v3154_v23 = vld [vmem:[%s10987_s9 + $0x10] sm:$0xff] }
  0xe2   :  { %v254_v22 = vmax.f32 %v208_v30, %v246_v13  ;;  %v218_v50 = vadd.f32 %v217_v16, %v9051_v19  ;;  %v9425_v25 = vpop.permute.xlu0 %1325  ;;  %3141 = vperm.xlu1 %8574, %v3123_v29   ;;  %3136 = vperm.xlu0 %8573, %v3122_v21  }
  0xe3   :  { %v249_v18 = vmul.f32 0.01, %v223_v15 }
  0xe4   :  { %v248_v14 = vmul.f32 0.01, %v218_v50  ;;  %v7443_v6 = vpop.f32.mrb[4].mxu1  ;;  %v8179_v17 = vpack.c.bf16 %v255_v26, %v254_v22  ;;  %v3193_v26 = vld [vmem:[%s10988_s11 + $0x8] sm:$0xff] }
  0xe5   :  { %v257_v52 = vmax.f32 %v223_v15, %v249_v18  ;;  %v233_v13 = vadd.f32 %v7443_v6, %v9083_v27  ;;  %v227_v16 = vpop.f32.mrb[5].mxu1  ;;  %v9434_v19 = vpop.permute.xlu1 %1340 }
  0xe6   :  { %v256_v30 = vmax.f32 %v218_v50, %v248_v14  ;;  %v228_v21 = vadd.f32 %v227_v16, %v9085_v28  ;;  %v9437_v29 = vpop.permute.xlu0 %1335  ;;  %8180 = vmatprep.subr.bf16.mxu1 %v8179_v17  ;;  %3173 = vperm.xlu1 %8574, %v3155_v10   ;;  %v3192_v14 = vld [vmem:[%s10988_s11] sm:$0xff] }
  0xe7   :  { %v251_v24 = vmul.f32 0.01, %v233_v13  ;;  %3168 = vperm.xlu0 %8573, %v3154_v23   ;;  %8182 = vmatpush3.bf16.msra.mxu1 %v8179_v17 }
  0xe8   :  { %v250_v15 = vmul.f32 0.01, %v228_v21  ;;  %v7446_v18 = vpop.f32.mrb[6].mxu1  ;;  %v8183_v6 = vpack.c.bf16 %v257_v52, %v256_v30  ;;  %v3195_v52 = vld [vmem:[%s10988_s11 + $0x18] sm:$0xff] }
  0xe9   :  { %v259_v27 = vmax.f32 %v233_v13, %v251_v24  ;;  %v243_v28 = vadd.f32 %v7446_v18, %v9099_v31  ;;  %v237_v22 = vpop.f32.mrb[7].mxu1  ;;  %v9446_v50 = vpop.permute.xlu1 %1501  ;;  %v3194_v31 = vld [vmem:[%s10988_s11 + $0x10] sm:$0xff] }
  0xea   :  { %v258_v10 = vmax.f32 %v228_v21, %v250_v15  ;;  %v238_v17 = vadd.f32 %v237_v22, %v9101_v32  ;;  %v9449_v23 = vpop.permute.xlu0 %1496  ;;  %8184 = vmatprep.subr.bf16.mxu1 %v8183_v6  ;;  %3203 = vperm.xlu1 %8574, %v3193_v26   ;;  %v3323_v26 = vld [vmem:[%s10989_s12 + $0x8] sm:$0xff]  ;;  %v3325_v22 = vld [vmem:[%s10989_s12 + $0x18] sm:$0xff] }
  0xeb   :  { %v253_v16 = vmul.f32 0.01, %v243_v28  ;;  %3198 = vperm.xlu0 %8573, %v3192_v14   ;;  %8186 = vmatpush3.bf16.msra.mxu1 %v8183_v6  ;;  %v3322_v6 = vld [vmem:[%s10989_s12] sm:$0xff] }
  0xec   :  { %v252_v13 = vmul.f32 0.01, %v238_v17  ;;  %v8187_v30 = vpack.c.bf16 %v259_v27, %v258_v10  ;;  %v3324_v10 = vld [vmem:[%s10989_s12 + $0x10] sm:$0xff] }
  0xed   :  { %v261_v21 = vmax.f32 %v243_v28, %v253_v16  ;;  %v9457_v24 = vpop.permute.xlu1 %1618  ;;  %v6439_v28 = vld [vmem:[%s10985_s4 + $0x148] sm:$0xff] }
  0xee   :  { %v260_v32 = vmax.f32 %v238_v17, %v252_v13  ;;  %v9459_v15 = vpop.permute.xlu0 %1613  ;;  %8188 = vmatprep.subr.bf16.mxu1 %v8187_v30  ;;  %3213 = vperm.xlu1 %8574, %v3195_v52   ;;  %v6440_v17 = vld [vmem:[%s10985_s4 + $0x150] sm:$0xff]  ;;  %v6441_v13 = vld [vmem:[%s10985_s4 + $0x158] sm:$0xff] }
  0xef   :  { %3208 = vperm.xlu0 %8573, %v3194_v31   ;;  %8190 = vmatpush3.bf16.msra.mxu1 %v8187_v30  ;;  %v3359_v30 = vld [vmem:[#allocation2] sm:$0x1] }
  0xf0   :  { %v8191_v18 = vpack.c.bf16 %v261_v21, %v260_v32  ;;  %v6442_v31 = vld [vmem:[%s10985_s4 + $0x160] sm:$0xff] }
  0xf1   :  { %v9467_v14 = vpop.permute.xlu1 %1628 }
  0xf2   :  { %v9469_v27 = vpop.permute.xlu0 %1623  ;;  %8192 = vmatprep.subr.bf16.mxu1 %v8191_v18  ;;  %3333 = vperm.xlu1 %8574, %v3323_v26   ;;  %v6443_v26 = vld [vmem:[%s10985_s4 + $0x168] sm:$0xff] }
  0xf3   :  { %3328 = vperm.xlu0 %8573, %v3322_v6   ;;  %8194 = vmatpush3.bf16.msra.mxu1 %v8191_v18  ;;  %v6444_v18 = vld [vmem:[%s10985_s4 + $0x170] sm:$0xff] }
  0xf5   :  { %v9483_v16 = vpop.permute.xlu1 %1638 }
  0xf6   :  { %v9485_v52 = vpop.permute.xlu0 %1633  ;;  %7464 = vmatmul.mubr.msk.f32.vlgmr.msra.gmra.mrb[8].mxu1 %vm320_vm4, %v6439_v28  ;;  %3343 = vperm.xlu1 %8574, %v3325_v22  }
  0xf7   :  { %3338 = vperm.xlu0 %8573, %v3324_v10   ;;  %7466 = vmatprep.mubr.msk.f32.mxu1 %vm320_vm4, %v6440_v17 }
  0xf9   :  { %v9495_v21 = vpop.permute.xlu1 %1648 }
  0xfa   :  { %v9497_v32 = vpop.permute.xlu0 %1643  ;;  %7467 = vmatmul.mubr.msk.f32.gmra.mrb[10].mxu1 %vm320_vm4, %v6441_v13  ;;  %3399 = vperm.xlu1 %8574, %v9257_v36   ;;  %v6445_v36 = vld [vmem:[%s10985_s4 + $0x178] sm:$0xff] }
  0xfb   :  { %3362 = vperm.xlu0 %8573, %v3359_v30   ;;  %7469 = vmatprep.mubr.msk.f32.mxu1 %vm320_vm4, %v6442_v31  ;;  %v6462_v31 = vld [vmem:[%s10990_s6 + $0x50] sm:$0xff] }
  0xfc   :  { %7491 = vmatprep.mubr.msk.f32.mxu0 %vm320_vm4, %v6462_v31 }
  0xfd   :  { %v9508_v6 = vpop.permute.xlu1 %1821 }
  0xfe   :  { %v9510_v28 = vpop.permute.xlu0 %1816  ;;  %7470 = vmatmul.mubr.msk.f32.gmra.mrb[12].mxu1 %vm320_vm4, %v6443_v26  ;;  %3409 = vperm.xlu1 %8574, %v9273_v1  }
  0xff   :  { %3404 = vperm.xlu0 %8573, %v9252_v35   ;;  %7472 = vmatprep.mubr.msk.f32.mxu1 %vm320_vm4, %v6444_v18  ;;  %v11132_v18 = vld [vmem:[#allocation36_spill] sm:$0xff] }
 0x101   :  { %v9519_v22 = vpop.permute.xlu1 %1831 }
 0x102   :  { %v9521_v10 = vpop.permute.xlu0 %1826  ;;  %7473 = vmatmul.mubr.msk.f32.gmra.mrb[14].mxu1 %vm320_vm4, %v6445_v36  ;;  %3419 = vperm.xlu1 %8574, %v9289_v2   ;;  %v11133_v36 = vld [vmem:[#allocation33_spill] sm:$0xff] }
 0x103   :  { %3414 = vperm.xlu0 %8573, %v9268_v63  }
 0x105   :  { %v9530_v35 = vpop.permute.xlu1 %1841 }
 0x106   :  { %3429 = vperm.xlu1 %8574, %v9305_v0   ;;  %v9527_v1 = vpop.permute.xlu0 %1836 }
 0x107   :  { %3424 = vperm.xlu0 %8573, %v9284_v61  }
 0x109   :  { %v9536_v13 = vpop.permute.xlu1 %1851 }
 0x10a   :  { %3600 = vperm.xlu1 %8574, %v9321_v62   ;;  %v9534_v17 = vpop.permute.xlu0 %1846 }
 0x10b   :  { %3434 = vperm.xlu0 %8573, %v9300_v59  }
 0x10d   :  { %v9544_v61 = vpop.permute.xlu1 %2012 }
 0x10e   :  { %3610 = vperm.xlu1 %8574, %v9337_v60   ;;  %v9541_v63 = vpop.permute.xlu0 %2007 }
 0x10f   :  { %3605 = vperm.xlu0 %8573, %v9316_v57  }
 0x111   :  { %v9550_v62 = vpop.permute.xlu1 %2129 }
 0x112   :  { %3620 = vperm.xlu1 %8574, %v9353_v53   ;;  %v9548_v59 = vpop.permute.xlu0 %2124 }
 0x113   :  { %3615 = vperm.xlu0 %8573, %v9332_v55  }
 0x115   :  { %v9558_v55 = vpop.permute.xlu1 %2139 }
 0x116   :  { %3630 = vperm.xlu1 %8574, %v9369_v56   ;;  %v9555_v53 = vpop.permute.xlu0 %2134 }
 0x117   :  { %3625 = vperm.xlu0 %8573, %v9348_v58  }
 0x119   :  { %v9564_v57 = vpop.permute.xlu1 %2149 }
 0x11a   :  { %3789 = vperm.xlu1 %8574, %v9385_v54   ;;  %v9562_v56 = vpop.permute.xlu0 %2144 }
 0x11b   :  { %3635 = vperm.xlu0 %8573, %v9364_v51  }
 0x11e   :  { %3903 = vperm.xlu1 %8574, %v9113_v34   ;;  %v9569_v51 = vpop.permute.xlu0 %2154 }
 0x11f   :  { %3794 = vperm.xlu0 %8573, %v9380_v49   ;;  %v9572_v49 = vpop.permute.xlu1 %2159 }
 0x122   :  { %3913 = vperm.xlu1 %8574, %v9129_v38   ;;  %v9576_v54 = vpop.permute.xlu0 %2327  ;;  %v11113_v38 = vld [vmem:[#allocation23_spill] sm:$0xff] }
 0x123   :  { %3908 = vperm.xlu0 %8573, %v9108_v33   ;;  %v9578_v58 = vpop.permute.xlu1 %2332 }
 0x126   :  { %3923 = vperm.xlu1 %8574, %v9145_v42   ;;  %v9583_v60 = vpop.permute.xlu0 %2337  ;;  %v11118_v42 = vld [vmem:[#allocation28_spill] sm:$0xff] }
 0x127   :  { %3918 = vperm.xlu0 %8573, %v9124_v37   ;;  %v9586_v0 = vpop.permute.xlu1 %2342 }
 0x12a   :  { %3933 = vperm.xlu1 %8574, %v9161_v46   ;;  %v9590_v2 = vpop.permute.xlu0 %2347 }
 0x12b   :  { %3928 = vperm.xlu0 %8573, %v9140_v41   ;;  %11107 = vst [vmem:[#allocation77_spill] sm:$0xff] %v9590_v2  ;;  %v9592_v33 = vpop.permute.xlu1 %2352  ;;  %v11116_v41 = vld [vmem:[#allocation24_spill] sm:$0xff] }
 0x12c   :  { %11108 = vst [vmem:[#allocation78_spill] sm:$0xff] %v9592_v33  ;;  %v11209_v33 = vld [vmem:[#allocation54_spill] sm:$0xff] }
 0x12e   :  { %4104 = vperm.xlu1 %8574, %v9177_v12   ;;  %v11129_v12 = vld [vmem:[#allocation31_spill] sm:$0xff] }
 0x12f   :  { %3938 = vperm.xlu0 %8573, %v9156_v45   ;;  %v9600_v34 = vpop.permute.xlu1 %2362  ;;  %v11124_v45 = vld [vmem:[#allocation32_spill] sm:$0xff] }
 0x130   :  { %11110 = vst [vmem:[#allocation80_spill] sm:$0xff] %v9600_v34 }
 0x132   :  { %4114 = vperm.xlu1 %8574, %v9193_v47   ;;  %v11126_v47 = vld [vmem:[#allocation29_spill] sm:$0xff] }
 0x133   :  { %4109 = vperm.xlu0 %8573, %v9172_v8   ;;  %v9606_v37 = vpop.permute.xlu1 %2523  ;;  %v11128_v8 = vld [vmem:[#allocation34_spill] sm:$0xff] }
 0x134   :  { %11112 = vst [vmem:[#allocation82_spill] sm:$0xff] %v9606_v37  ;;  %v11196_v37 = vld [vmem:[#allocation43_spill] sm:$0xff] }
 0x136   :  { %4124 = vperm.xlu1 %8574, %v9209_v9   ;;  %v9597_v9 = vpop.permute.xlu0 %2357 }
 0x137   :  { %4119 = vperm.xlu0 %8573, %v9188_v48   ;;  %11109 = vst [vmem:[#allocation79_spill] sm:$0xff] %v9597_v9  ;;  %v11206_v9 = vld [vmem:[#allocation51_spill] sm:$0xff] }
 0x13a   :  { %4134 = vperm.xlu1 %8574, %v9225_v44   ;;  %v11122_v44 = vld [vmem:[#allocation30_spill] sm:$0xff] }
 0x13b   :  { %4129 = vperm.xlu0 %8573, %v9204_v4   ;;  %v9604_v4 = vpop.permute.xlu0 %2518 }
 0x13c   :  { %11111 = vst [vmem:[#allocation81_spill] sm:$0xff] %v9604_v4 }
 0x13e   :  { %4293 = vperm.xlu1 %8574, %v9241_v40   ;;  %v11114_v40 = vld [vmem:[#allocation26_spill] sm:$0xff] }
 0x13f   :  { %4139 = vperm.xlu0 %8573, %v9220_v43  }
 0x142   :  { %4407 = vperm.xlu1 %8574, %v8982_v5   ;;  %v9611_v5 = vpop.permute.xlu0 %2633 }
 0x143   :  { %4298 = vperm.xlu0 %8573, %v9236_v39   ;;  %11115 = vst [vmem:[#allocation23_spill] sm:$0xff] %v9611_v5  ;;  %v9614_v39 = vpop.permute.xlu1 %2638 }
 0x144   :  { %11117 = vst [vmem:[#allocation26_spill] sm:$0xff] %v9614_v39  ;;  %v11193_v39 = vld [vmem:[#allocation41_spill] sm:$0xff] }
 0x146   :  { %4417 = vperm.xlu1 %8574, %v8994_v7   ;;  %v11119_v7 = vld [vmem:[#allocation25_spill] sm:$0xff] }
 0x147   :  { %4412 = vperm.xlu0 %8573, %v8977_v3   ;;  %v9618_v3 = vpop.permute.xlu0 %2643  ;;  %v9620_v43 = vpop.permute.xlu1 %2648 }
 0x148   :  { %11120 = vst [vmem:[#allocation24_spill] sm:$0xff] %v9618_v3  ;;  %11121 = vst [vmem:[#allocation28_spill] sm:$0xff] %v9620_v43 }
 0x14a   :  { %4427 = vperm.xlu1 %8574, %v9009_v11   ;;  %v11123_v11 = vld [vmem:[#allocation27_spill] sm:$0xff] }
 0x14b   :  { %4422 = vperm.xlu0 %8573, %v11113_v38   ;;  %v9625_v46 = vpop.permute.xlu0 %2653  ;;  %v9628_v48 = vpop.permute.xlu1 %2658  ;;  %v11134_v38 = vld [vmem:[#allocation6_spill] sm:$0xff] }
 0x14c   :  { %11125 = vst [vmem:[#allocation25_spill] sm:$0xff] %v9625_v46  ;;  %11127 = vst [vmem:[#allocation30_spill] sm:$0xff] %v9628_v48  ;;  %v7002_v48 = vld [vmem:[%s10983_s7 + $0x58] sm:$0xff] }
 0x14e   :  { %4437 = vperm.xlu1 %8574, %v11114_v40  }
 0x14f   :  { %4432 = vperm.xlu0 %8573, %v11116_v41   ;;  %v9632_v30 = vpop.permute.xlu0 %2663  ;;  %v9637_v26 = vpop.permute.xlu1 %2668  ;;  %v11136_v41 = vld [vmem:[#allocation35_spill] sm:$0xff] }
 0x150   :  { %11130 = vst [vmem:[#allocation27_spill] sm:$0xff] %v9632_v30  ;;  %11131 = vst [vmem:[#allocation32_spill] sm:$0xff] %v9637_v26 }
 0x152   :  { %4608 = vperm.xlu1 %8574, %v11118_v42  }
 0x153   :  { %4442 = vperm.xlu0 %8573, %v11119_v7   ;;  %v9643_v40 = vpop.permute.xlu0 %2834  ;;  %v9646_v42 = vpop.permute.xlu1 %2839  ;;  %v11138_v7 = vld [vmem:[#allocation8_spill] sm:$0xff] }
 0x154   :  { %11135 = vst [vmem:[#allocation29_spill] sm:$0xff] %v9643_v40  ;;  %11137 = vst [vmem:[#allocation34_spill] sm:$0xff] %v9646_v42 }
 0x156   :  { %4618 = vperm.xlu1 %8574, %v11122_v44   ;;  %v11139_v44 = vld [vmem:[#allocation5_spill] sm:$0xff] }
 0x157   :  { %4613 = vperm.xlu0 %8573, %v11123_v11   ;;  %v9650_v11 = vpop.permute.xlu0 %2844 }
 0x158   :  { %11140 = vst [vmem:[#allocation31_spill] sm:$0xff] %v9650_v11  ;;  %v11152_v11 = vld [vmem:[#allocation16_spill] sm:$0xff] }
 0x15a   :  { %4628 = vperm.xlu1 %8574, %v11124_v45   ;;  %v9652_v45 = vpop.permute.xlu1 %2849 }
 0x15b   :  { %4623 = vperm.xlu0 %8573, %v11126_v47   ;;  %11141 = vst [vmem:[#allocation36_spill] sm:$0xff] %v9652_v45  ;;  %v11142_v47 = vld [vmem:[#allocation10_spill] sm:$0xff]  ;;  %v9657_v31 = vpop.permute.xlu0 %2854 }
 0x15c   :  { %11145 = vst [vmem:[#allocation33_spill] sm:$0xff] %v9657_v31  ;;  %v11156_v31 = vld [vmem:[#allocation15_spill] sm:$0xff] }
 0x15e   :  { %4638 = vperm.xlu1 %8574, %v11128_v8   ;;  %v11143_v8 = vld [vmem:[#allocation7_spill] sm:$0xff] }
 0x15f   :  { %4633 = vperm.xlu0 %8573, %v11129_v12   ;;  %v11144_v12 = vld [vmem:[#allocation12_spill] sm:$0xff] }
 0x162   :  { %4797 = vperm.xlu1 %8574, %v11132_v18   ;;  %v11146_v18 = vld [vmem:[#allocation9_spill] sm:$0xff] }
 0x163   :  { %4643 = vperm.xlu0 %8573, %v11133_v36   ;;  %v9660_v36 = vpop.permute.xlu1 %2859 }
 0x164   :  { %11147 = vst [vmem:[#allocation6_spill] sm:$0xff] %v9660_v36  ;;  %v11158_v36 = vld [vmem:[#allocation20_spill] sm:$0xff] }
 0x166   :  { %4911 = vperm.xlu1 %8574, %v11134_v38   ;;  %v11148_v38 = vld [vmem:[#allocation14_spill] sm:$0xff] }
 0x167   :  { %4802 = vperm.xlu0 %8573, %v11136_v41   ;;  %v11149_v41 = vld [vmem:[#allocation11_spill] sm:$0xff] }
 0x16a   :  { %4921 = vperm.xlu1 %8574, %v11138_v7   ;;  %v9664_v7 = vpop.permute.xlu0 %2864 }
 0x16b   :  { %4916 = vperm.xlu0 %8573, %v11139_v44   ;;  %11150 = vst [vmem:[#allocation35_spill] sm:$0xff] %v9664_v7  ;;  %v9666_v44 = vpop.permute.xlu1 %2869 }
 0x16c   :  { %11151 = vst [vmem:[#allocation8_spill] sm:$0xff] %v9666_v44  ;;  %v11162_v44 = vld [vmem:[#allocation22_spill] sm:$0xff] }
 0x16e   :  { %4931 = vperm.xlu1 %8574, %v11142_v47   ;;  %v11153_v47 = vld [vmem:[#allocation13_spill] sm:$0xff] }
 0x16f   :  { %4926 = vperm.xlu0 %8573, %v11143_v8   ;;  %v11154_v8 = vld [vmem:[#allocation18_spill] sm:$0xff] }
 0x172   :  { %4941 = vperm.xlu1 %8574, %v11144_v12   ;;  %v9671_v12 = vpop.permute.xlu0 %3023 }
 0x173   :  { %4936 = vperm.xlu0 %8573, %v11146_v18   ;;  %11155 = vst [vmem:[#allocation5_spill] sm:$0xff] %v9671_v12  ;;  %v9674_v18 = vpop.permute.xlu1 %3028  ;;  %v11188_v12 = vld [vmem:[#allocation38_spill] sm:$0xff] }
 0x174   :  { %11157 = vst [vmem:[#allocation10_spill] sm:$0xff] %v9674_v18 }
 0x176   :  { %5112 = vperm.xlu1 %8574, %v11148_v38   ;;  %v11159_v38 = vld [vmem:[#allocation17_spill] sm:$0xff] }
 0x177   :  { %4946 = vperm.xlu0 %8573, %v11149_v41   ;;  %v9678_v41 = vpop.permute.xlu0 %3126  ;;  %v9680_v7 = vpop.permute.xlu1 %3131 }
 0x178   :  { %11160 = vst [vmem:[#allocation7_spill] sm:$0xff] %v9678_v41  ;;  %11161 = vst [vmem:[#allocation12_spill] sm:$0xff] %v9680_v7 }
 0x17a   :  { %5122 = vperm.xlu1 %8574, %v11152_v11   ;;  %v11163_v11 = vld [vmem:[#allocation19_spill] sm:$0xff] }
 0x17b   :  { %5117 = vperm.xlu0 %8573, %v11153_v47   ;;  %v6903_v47 = vld [vmem:[%s10979_s3 + $0x100] sm:$0xff] }
 0x17e   :  { %5132 = vperm.xlu1 %8574, %v11154_v8   ;;  %v11165_v8 = vld [vmem:[#allocation21_spill] sm:$0xff] }
 0x17f   :  { %5127 = vperm.xlu0 %8573, %v11156_v31   ;;  %v9687_v31 = vpop.permute.xlu0 %3158 }
 0x180   :  { %11164 = vst [vmem:[#allocation9_spill] sm:$0xff] %v9687_v31 }
 0x182   :  { %5142 = vperm.xlu1 %8574, %v11158_v36   ;;  %v6905_v36 = vld [vmem:[%s10979_s3 + $0x110] sm:$0xff] }
 0x183   :  { %5137 = vperm.xlu0 %8573, %v11159_v38   ;;  %v9693_v38 = vpop.permute.xlu1 %3163 }
 0x184   :  { %11166 = vst [vmem:[#allocation14_spill] sm:$0xff] %v9693_v38  ;;  %v6909_v38 = vld [vmem:[%s10979_s3 + $0x130] sm:$0xff] }
 0x186   :  { %5301 = vperm.xlu1 %8574, %v11162_v44   ;;  %v6904_v44 = vld [vmem:[%s10979_s3 + $0x108] sm:$0xff] }
 0x187   :  { %5147 = vperm.xlu0 %8573, %v11163_v11   ;;  %v6907_v11 = vld [vmem:[%s10979_s3 + $0x120] sm:$0xff]  ;;  %v9706_v31 = vpop.permute.xlu1 %3141 }
 0x188   :  { %11168 = vst [vmem:[#allocation16_spill] sm:$0xff] %v9706_v31 }
 0x18a   :  { %5415 = vperm.xlu1 %8574, %v6903_v47   ;;  %v6906_v47 = vld [vmem:[%s10979_s3 + $0x118] sm:$0xff] }
 0x18b   :  { %5306 = vperm.xlu0 %8573, %v11165_v8   ;;  %v9704_v8 = vpop.permute.xlu0 %3136  ;;  %v9719_v7 = vpop.permute.xlu1 %3173 }
 0x18c   :  { %11167 = vst [vmem:[#allocation11_spill] sm:$0xff] %v9704_v8  ;;  %v6928_v8 = vld [vmem:[%s10982_s5 + $0x100] sm:$0xff]  ;;  %11170 = vst [vmem:[#allocation18_spill] sm:$0xff] %v9719_v7 }
 0x18d   :  { %v6932_v7 = vld [vmem:[%s10982_s5 + $0x120] sm:$0xff] }
 0x18e   :  { %5425 = vperm.xlu1 %8574, %v6905_v36   ;;  %v6908_v36 = vld [vmem:[%s10979_s3 + $0x128] sm:$0xff] }
 0x18f   :  { %5420 = vperm.xlu0 %8573, %v6904_v44   ;;  %v9714_v44 = vpop.permute.xlu0 %3168 }
 0x190   :  { %11169 = vst [vmem:[#allocation13_spill] sm:$0xff] %v9714_v44  ;;  %v9732_v44 = vpop.permute.xlu1 %3203 }
 0x191   :  { %11172 = vst [vmem:[#allocation20_spill] sm:$0xff] %v9732_v44 }
 0x192   :  { %5435 = vperm.xlu1 %8574, %v6907_v11   ;;  %v6910_v11 = vld [vmem:[%s10979_s3 + $0x138] sm:$0xff] }
 0x193   :  { %5430 = vperm.xlu0 %8573, %v6906_v47   ;;  %v6930_v47 = vld [vmem:[%s10982_s5 + $0x110] sm:$0xff] }
 0x194   :  { %v9745_v31 = vpop.permute.xlu1 %3213 }
 0x195   :  { %11174 = vst [vmem:[#allocation22_spill] sm:$0xff] %v9745_v31  ;;  %v6958_v31 = vld [vmem:[%s10979_s3 + $0x140] sm:$0xff] }
 0x196   :  { %5445 = vperm.xlu1 %8574, %v6909_v38   ;;  %v6929_v38 = vld [vmem:[%s10982_s5 + $0x108] sm:$0xff] }
 0x197   :  { %5440 = vperm.xlu0 %8573, %v6908_v36   ;;  %v9730_v36 = vpop.permute.xlu0 %3198 }
 0x198   :  { %11171 = vst [vmem:[#allocation15_spill] sm:$0xff] %v9730_v36  ;;  %v6934_v36 = vld [vmem:[%s10982_s5 + $0x130] sm:$0xff] }
 0x19a   :  { %5616 = vperm.xlu1 %8574, %v6928_v8   ;;  %v6931_v8 = vld [vmem:[%s10982_s5 + $0x118] sm:$0xff] }
 0x19b   :  { %5450 = vperm.xlu0 %8573, %v6910_v11   ;;  %v9740_v11 = vpop.permute.xlu0 %3208 }
 0x19c   :  { %11173 = vst [vmem:[#allocation17_spill] sm:$0xff] %v9740_v11  ;;  %v9758_v11 = vpop.permute.xlu1 %3333 }
 0x19d   :  { %11176 = vst [vmem:[#allocation21_spill] sm:$0xff] %v9758_v11 }
 0x19e   :  { %5626 = vperm.xlu1 %8574, %v6930_v47   ;;  %v6933_v47 = vld [vmem:[%s10982_s5 + $0x128] sm:$0xff] }
 0x19f   :  { %5621 = vperm.xlu0 %8573, %v6929_v38   ;;  %v6946_v38 = vld [vmem:[%s10983_s7 + $0x40] sm:$0xff] }
 0x1a0   :  { %v9771_v44 = vpop.permute.xlu1 %3343 }
 0x1a1   :  { %11178 = vst [vmem:[#allocation84_spill] sm:$0xff] %v9771_v44  ;;  %v6964_v44 = vld [vmem:[%s10979_s3 + $0x170] sm:$0xff] }
 0x1a2   :  { %5636 = vperm.xlu1 %8574, %v6932_v7   ;;  %v6935_v7 = vld [vmem:[%s10982_s5 + $0x138] sm:$0xff] }
 0x1a3   :  { %5631 = vperm.xlu0 %8573, %v6931_v8   ;;  %v9756_v8 = vpop.permute.xlu0 %3328 }
 0x1a4   :  { %11175 = vst [vmem:[#allocation19_spill] sm:$0xff] %v9756_v8  ;;  %v6960_v8 = vld [vmem:[%s10979_s3 + $0x150] sm:$0xff] }
 0x1a6   :  { %5646 = vperm.xlu1 %8574, %v6934_v36   ;;  %v6947_v36 = vld [vmem:[%s10983_s7 + $0x48] sm:$0xff] }
 0x1a7   :  { %5641 = vperm.xlu0 %8573, %v6933_v47   ;;  %v9766_v47 = vpop.permute.xlu0 %3338 }
 0x1a8   :  { %11177 = vst [vmem:[#allocation83_spill] sm:$0xff] %v9766_v47  ;;  %v9784_v47 = vpop.permute.xlu1 %3399 }
 0x1a9   :  { %11180 = vst [vmem:[#allocation86_spill] sm:$0xff] %v9784_v47 }
 0x1aa   :  { %5805 = vperm.xlu1 %8574, %v6946_v38   ;;  %v6959_v38 = vld [vmem:[%s10979_s3 + $0x148] sm:$0xff] }
 0x1ab   :  { %5651 = vperm.xlu0 %8573, %v6935_v7   ;;  %v6962_v7 = vld [vmem:[%s10979_s3 + $0x160] sm:$0xff] }
 0x1ac   :  { %v9797_v11 = vpop.permute.xlu1 %3409 }
 0x1ad   :  { %11182 = vst [vmem:[#allocation88_spill] sm:$0xff] %v9797_v11  ;;  %v6987_v11 = vld [vmem:[%s10982_s5 + $0x160] sm:$0xff] }
 0x1ae   :  { %5919 = vperm.xlu1 %8574, %v6958_v31   ;;  %v6961_v31 = vld [vmem:[%s10979_s3 + $0x158] sm:$0xff] }
 0x1af   :  { %5810 = vperm.xlu0 %8573, %v6947_v36   ;;  %v9782_v36 = vpop.permute.xlu0 %3362 }
 0x1b0   :  { %11179 = vst [vmem:[#allocation85_spill] sm:$0xff] %v9782_v36  ;;  %v6983_v36 = vld [vmem:[%s10982_s5 + $0x140] sm:$0xff]  ;;  %v9810_v47 = vpop.permute.xlu1 %3419 }
 0x1b1   :  { %11184 = vst [vmem:[#allocation90_spill] sm:$0xff] %v9810_v47  ;;  %v11187_v47 = vld [vmem:[#allocation37_spill] sm:$0xff] }
 0x1b2   :  { %5929 = vperm.xlu1 %8574, %v6960_v8   ;;  %v6963_v8 = vld [vmem:[%s10979_s3 + $0x168] sm:$0xff] }
 0x1b3   :  { %5924 = vperm.xlu0 %8573, %v6959_v38   ;;  %v9792_v38 = vpop.permute.xlu0 %3404 }
 0x1b4   :  { %11181 = vst [vmem:[#allocation87_spill] sm:$0xff] %v9792_v38  ;;  %v9823_v38 = vpop.permute.xlu1 %3429 }
 0x1b5   :  { %11186 = vst [vmem:[#allocation92_spill] sm:$0xff] %v9823_v38  ;;  %v6990_v38 = vld [vmem:[%s10982_s5 + $0x178] sm:$0xff] }
 0x1b6   :  { %5939 = vperm.xlu1 %8574, %v6962_v7   ;;  %v6965_v7 = vld [vmem:[%s10979_s3 + $0x178] sm:$0xff] }
 0x1b7   :  { %5934 = vperm.xlu0 %8573, %v6961_v31   ;;  %v6985_v31 = vld [vmem:[%s10982_s5 + $0x150] sm:$0xff] }
 0x1b8   :  { %v9838_v30 = vpop.permute.xlu1 %3600 }
 0x1b9   :  { %11190 = vst [vmem:[#allocation38_spill] sm:$0xff] %v9838_v30 }
 0x1ba   :  { %5949 = vperm.xlu1 %8574, %v6964_v44   ;;  %v6984_v44 = vld [vmem:[%s10982_s5 + $0x148] sm:$0xff] }
 0x1bb   :  { %5944 = vperm.xlu0 %8573, %v6963_v8   ;;  %v9808_v8 = vpop.permute.xlu0 %3414 }
 0x1bc   :  { %11183 = vst [vmem:[#allocation89_spill] sm:$0xff] %v9808_v8  ;;  %v6989_v8 = vld [vmem:[%s10982_s5 + $0x170] sm:$0xff] }
 0x1be   :  { %6120 = vperm.xlu1 %8574, %v6983_v36   ;;  %v6986_v36 = vld [vmem:[%s10982_s5 + $0x158] sm:$0xff] }
 0x1bf   :  { %5954 = vperm.xlu0 %8573, %v6965_v7   ;;  %v9818_v7 = vpop.permute.xlu0 %3424 }
 0x1c0   :  { %11185 = vst [vmem:[#allocation91_spill] sm:$0xff] %v9818_v7 }
 0x1c2   :  { %6130 = vperm.xlu1 %8574, %v6985_v31   ;;  %v6988_v31 = vld [vmem:[%s10982_s5 + $0x168] sm:$0xff] }
 0x1c3   :  { %6125 = vperm.xlu0 %8573, %v6984_v44   ;;  %v9836_v45 = vpop.permute.xlu0 %3434 }
 0x1c4   :  { %11189 = vst [vmem:[#allocation37_spill] sm:$0xff] %v9836_v45 }
 0x1c6   :  { %6140 = vperm.xlu1 %8574, %v6987_v11  }
 0x1c7   :  { %6135 = vperm.xlu0 %8573, %v6986_v36   ;;  %v7001_v36 = vld [vmem:[%s10983_s7 + $0x50] sm:$0xff] }
 0x1c9   :  { %v7465_v44 = vpop.f32.mrb[8].mxu1 }
 0x1ca   :  { %v417_v41 = vadd.f32 %v7465_v44, %v11187_v47  ;;  %v411_v18 = vpop.f32.mrb[9].mxu1  ;;  %6150 = vperm.xlu1 %8574, %v6989_v8   ;;  %v11191_v8 = vld [vmem:[#allocation39_spill] sm:$0xff] }
 0x1cb   :  { %v412_v11 = vadd.f32 %v411_v18, %v11188_v12  ;;  %6145 = vperm.xlu0 %8573, %v6988_v31   ;;  %v11192_v31 = vld [vmem:[#allocation40_spill] sm:$0xff] }
 0x1cc   :  { %v451_v7 = vmul.f32 0.01, %v417_v41 }
 0x1cd   :  { %v450_v40 = vmul.f32 0.01, %v412_v11  ;;  %v7468_v42 = vpop.f32.mrb[10].mxu1 }
 0x1ce   :  { %v459_v47 = vmax.f32 %v417_v41, %v451_v7  ;;  %v427_v44 = vadd.f32 %v7468_v42, %v11191_v8  ;;  %v421_v12 = vpop.f32.mrb[11].mxu1  ;;  %6309 = vperm.xlu1 %8574, %v7001_v36   ;;  %v9846_v7 = vpop.permute.xlu0 %3605  ;;  %v11195_v36 = vld [vmem:[#allocation42_spill] sm:$0xff] }
 0x1cf   :  { %v458_v18 = vmax.f32 %v412_v11, %v450_v40  ;;  %v422_v26 = vadd.f32 %v421_v12, %v11192_v31  ;;  %6155 = vperm.xlu0 %8573, %v6990_v38   ;;  %11194 = vst [vmem:[#allocation39_spill] sm:$0xff] %v9846_v7 }
 0x1d0   :  { %v453_v46 = vmul.f32 0.01, %v427_v44 }
 0x1d1   :  { %v452_v3 = vmul.f32 0.01, %v422_v26  ;;  %v7471_v45 = vpop.f32.mrb[12].mxu1  ;;  %v8195_v43 = vpack.c.bf16 %v459_v47, %v458_v18 }
 0x1d2   :  { %v461_v5 = vmax.f32 %v427_v44, %v453_v46  ;;  %v437_v30 = vadd.f32 %v7471_v45, %v11193_v39  ;;  %v431_v41 = vpop.f32.mrb[13].mxu1  ;;  %v11197_v44 = vld [vmem:[#allocation44_spill] sm:$0xff] }
 0x1d3   :  { %v460_v42 = vmax.f32 %v422_v26, %v452_v3  ;;  %v432_v40 = vadd.f32 %v431_v41, %v11195_v36  ;;  %6314 = vperm.xlu0 %8573, %v7002_v48   ;;  %8196 = vmatprep.subr.bf16.mxu0 %v8195_v43  ;;  %v11198_v41 = vld [vmem:[#allocation46_spill] sm:$0xff] }
 0x1d4   :  { %v455_v38 = vmul.f32 0.01, %v437_v30  ;;  %8198 = vmatpush3.bf16.msra.mxu0 %v8195_v43 }
 0x1d5   :  { %v454_v11 = vmul.f32 0.01, %v432_v40  ;;  %v7474_v8 = vpop.f32.mrb[14].mxu1  ;;  %v8199_v12 = vpack.c.bf16 %v461_v5, %v460_v42  ;;  %v6468_v5 = vld [vmem:[%s10980_s2 + $0x100] sm:$0xff] }
 0x1d6   :  { %v463_v31 = vmax.f32 %v437_v30, %v455_v38  ;;  %v447_v4 = vadd.f32 %v7474_v8, %v11196_v37  ;;  %v441_v47 = vpop.f32.mrb[15].mxu1  ;;  %v6463_v37 = vld [vmem:[%s10990_s6 + $0x58] sm:$0xff] }
 0x1d7   :  { %v462_v46 = vmax.f32 %v432_v40, %v454_v11  ;;  %v442_v39 = vadd.f32 %v441_v47, %v11197_v44  ;;  %8200 = vmatprep.subr.bf16.mxu0 %v8199_v12  ;;  %v11199_v11 = vld [vmem:[#allocation45_spill] sm:$0xff] }
 0x1d8   :  { %v457_v45 = vmul.f32 0.01, %v447_v4  ;;  %8202 = vmatpush3.bf16.msra.mxu0 %v8199_v12  ;;  %v8627_v12 = vld [vmem:[%s10981_s0] sm:$0xff] }
 0x1d9   :  { %v456_v3 = vmul.f32 0.01, %v442_v39  ;;  %v8203_v26 = vpack.c.bf16 %v463_v31, %v462_v46 }
 0x1da   :  { %v465_v18 = vmax.f32 %v447_v4, %v457_v45  ;;  %v6469_v45 = vld [vmem:[%s10980_s2 + $0x108] sm:$0xff] }
 0x1db   :  { %v464_v48 = vmax.f32 %v442_v39, %v456_v3  ;;  %8204 = vmatprep.subr.bf16.mxu0 %v8203_v26  ;;  %v11201_v3 = vld [vmem:[#allocation3_spill] sm:$0xff] }
 0x1dc   :  { %8206 = vmatpush3.bf16.msra.mxu0 %v8203_v26  ;;  %v6470_v26 = vld [vmem:[%s10980_s2 + $0x110] sm:$0xff]  ;;  %vm55_vm6 = vcmp.eq.s32.totalorder %v11201_v3, 0 }
 0x1dd   :  { %v8207_v43 = vpack.c.bf16 %v465_v18, %v464_v48  ;;  %v6471_v18 = vld [vmem:[%s10980_s2 + $0x118] sm:$0xff]  ;;  %v6472_v48 = vld [vmem:[%s10980_s2 + $0x120] sm:$0xff] }
 0x1df   :  { %8208 = vmatprep.subr.bf16.mxu0 %v8207_v43 }
 0x1e0   :  { %8210 = vmatpush3.bf16.msra.mxu0 %v8207_v43  ;;  %v6473_v43 = vld [vmem:[%s10980_s2 + $0x128] sm:$0xff] }
 0x1e3   :  { %7492 = vmatmul.mubr.msk.f32.vlgmr.msra.gmra.mrb[0].mxu0 %vm320_vm4, %v6463_v37  ;;  %v6474_v37 = vld [vmem:[%s10980_s2 + $0x130] sm:$0xff] }
 0x1e4   :  { %7496 = vmatprep.mubr.msk.f32.mxu0 %vm116_vm0, %v6468_v5  ;;  %v6475_v5 = vld [vmem:[%s10980_s2 + $0x138] sm:$0xff] }
 0x2b6   :  { %v7493_v30 = vpop.f32.mrb[0].mxu0 }
 0x2b7   :  { %v554_v4 = vpop.f32.mrb[1].mxu0  ;;  %v560_v8 = vadd.f32 %v7493_v30, %v11199_v11  ;;  %v6493_v30 = vld [vmem:[%s10985_s4 + $0x100] sm:$0xff] }
 0x2b8   :  { %v555_v42 = vadd.f32 %v554_v4, %v11198_v41  ;;  %7524 = vmatprep.mubr.msk.f32.mxu1 %vm320_vm4, %v6493_v30  ;;  %v11202_v41 = vld [vmem:[#allocation47_spill] sm:$0xff] }
 0x2b9   :  { %v564_v31 = vsub.f32 %v8627_v12, %v560_v8 }
 0x2ba   :  { %8575 = vtanh.f32 %v555_v42 }
 0x2c4   :  { %v8576_v36 = vpop.eup %8575 }
 0x2c5   :  { %v565_v40 = vsub.f32 0.0, %v8576_v36 }
 0x2c7   :  { %v566_v38 = vmul.f32 1.442695, %v565_v40  ;;  %v11203_v40 = vld [vmem:[#allocation48_spill] sm:$0xff] }
 0x2c9   :  { %8577 = vpow2.f32 %v566_v38 }
 0x2d3   :  { %v8578_v47 = vpop.eup %8577 }
 0x2d4   :  { %v568_v46 = vmul.f32 %v8578_v47, %v564_v31  ;;  %v11204_v47 = vld [vmem:[#allocation49_spill] sm:$0xff] }
 0x2d6   :  { %v9866_v39 = vsel %vm8734_vm3, %v8627_v12, %v568_v46 }
 0x2d7   :  { %7494 = vmatprep.subr.msk.mxu0 %vm53_vm1, %v9866_v39 }
 0x2d8   :  { %7495 = vmatpush3.msk.msra.mxu0 %vm53_vm1, %v9866_v39 }
 0x2d9   :  { %7497 = vmatmul.mubr.msk.f32.vlgmr.msra.gmra.mrb[2].mxu0 %vm116_vm0, %v6469_v45 }
 0x2da   :  { %7499 = vmatprep.mubr.msk.f32.mxu0 %vm116_vm0, %v6470_v26 }
 0x2dd   :  { %7500 = vmatmul.mubr.msk.f32.gmra.mrb[4].mxu0 %vm116_vm0, %v6471_v18  ;;  %v11205_v18 = vld [vmem:[#allocation50_spill] sm:$0xff] }
 0x2de   :  { %7502 = vmatprep.mubr.msk.f32.mxu0 %vm116_vm0, %v6472_v48 }
 0x2e1   :  { %7503 = vmatmul.mubr.msk.f32.gmra.mrb[6].mxu0 %vm116_vm0, %v6473_v43 }
 0x2e2   :  { %7505 = vmatprep.mubr.msk.f32.mxu0 %vm116_vm0, %v6474_v37 }
 0x2e5   :  { %7506 = vmatmul.mubr.msk.f32.gmra.mrb[8].mxu0 %vm116_vm0, %v6475_v5 }
 0x3ac   :  { %v7498_v4 = vpop.f32.mrb[2].mxu0 }
 0x3ad   :  { %v725_v42 = vadd.f32 %v7498_v4, %v11202_v41  ;;  %v719_v36 = vpop.f32.mrb[3].mxu0 }
 0x3ae   :  { %v720_v38 = vadd.f32 %v719_v36, %v11203_v40  ;;  %v11207_v36 = vld [vmem:[#allocation52_spill] sm:$0xff] }
 0x3af   :  { %v759_v11 = vmul.f32 0.01, %v725_v42 }
 0x3b0   :  { %v758_v8 = vmul.f32 0.01, %v720_v38  ;;  %v7501_v12 = vpop.f32.mrb[4].mxu0 }
 0x3b1   :  { %v767_v31 = vmax.f32 %v725_v42, %v759_v11  ;;  %v735_v46 = vadd.f32 %v7501_v12, %v11204_v47  ;;  %v729_v45 = vpop.f32.mrb[5].mxu0 }
 0x3b2   :  { %v766_v26 = vmax.f32 %v720_v38, %v758_v8  ;;  %v730_v48 = vadd.f32 %v729_v45, %v11205_v18  ;;  %v11208_v8 = vld [vmem:[#allocation53_spill] sm:$0xff] }
 0x3b3   :  { %v761_v43 = vmul.f32 0.01, %v735_v46 }
 0x3b4   :  { %v760_v37 = vmul.f32 0.01, %v730_v48  ;;  %v7504_v5 = vpop.f32.mrb[6].mxu0  ;;  %v8211_v30 = vpack.c.bf16 %v767_v31, %v766_v26 }
 0x3b5   :  { %v769_v7 = vmax.f32 %v735_v46, %v761_v43  ;;  %v745_v4 = vadd.f32 %v7504_v5, %v11206_v9  ;;  %v739_v41 = vpop.f32.mrb[7].mxu0  ;;  %v6498_v5 = vld [vmem:[%s10985_s4 + $0x128] sm:$0xff] }
 0x3b6   :  { %v768_v34 = vmax.f32 %v730_v48, %v760_v37  ;;  %v740_v40 = vadd.f32 %v739_v41, %v11207_v36  ;;  %8212 = vmatprep.subr.bf16.mxu1 %v8211_v30  ;;  %v6517_v41 = vld [vmem:[%s10990_s6 + $0x40] sm:$0xff] }
 0x3b7   :  { %v763_v2 = vmul.f32 0.01, %v745_v4  ;;  %8214 = vmatpush3.bf16.msra.mxu1 %v8211_v30  ;;  %v6499_v30 = vld [vmem:[%s10985_s4 + $0x130] sm:$0xff]  ;;  %7552 = vmatprep.mubr.msk.f32.mxu0 %vm320_vm4, %v6517_v41 }
 0x3b8   :  { %v762_v42 = vmul.f32 0.01, %v740_v40  ;;  %v7507_v11 = vpop.f32.mrb[8].mxu0  ;;  %v8215_v12 = vpack.c.bf16 %v769_v7, %v768_v34  ;;  %v6496_v34 = vld [vmem:[%s10985_s4 + $0x118] sm:$0xff]  ;;  %v6497_v7 = vld [vmem:[%s10985_s4 + $0x120] sm:$0xff] }
 0x3b9   :  { %v771_v38 = vmax.f32 %v745_v4, %v763_v2  ;;  %v755_v47 = vadd.f32 %v7507_v11, %v11208_v8  ;;  %v749_v45 = vpop.f32.mrb[9].mxu0  ;;  %v6494_v2 = vld [vmem:[%s10985_s4 + $0x108] sm:$0xff]  ;;  %v6500_v4 = vld [vmem:[%s10985_s4 + $0x138] sm:$0xff] }
 0x3ba   :  { %v770_v18 = vmax.f32 %v740_v40, %v762_v42  ;;  %v750_v31 = vadd.f32 %v749_v45, %v11209_v33  ;;  %8216 = vmatprep.subr.bf16.mxu1 %v8215_v12  ;;  %v6495_v33 = vld [vmem:[%s10985_s4 + $0x110] sm:$0xff]  ;;  %v11210_v40 = vld [vmem:[#allocation55_spill] sm:$0xff] }
 0x3bb   :  { %v765_v46 = vmul.f32 0.01, %v755_v47  ;;  %8218 = vmatpush3.bf16.msra.mxu1 %v8215_v12  ;;  %v11211_v12 = vld [vmem:[#allocation56_spill] sm:$0xff] }
 0x3bc   :  { %v764_v9 = vmul.f32 0.01, %v750_v31  ;;  %v8219_v26 = vpack.c.bf16 %v771_v38, %v770_v18 }
 0x3bd   :  { %v773_v48 = vmax.f32 %v755_v47, %v765_v46 }
 0x3be   :  { %v772_v43 = vmax.f32 %v750_v31, %v764_v9  ;;  %8220 = vmatprep.subr.bf16.mxu1 %v8219_v26  ;;  %v11212_v31 = vld [vmem:[#allocation57_spill] sm:$0xff] }
 0x3bf   :  { %8222 = vmatpush3.bf16.msra.mxu1 %v8219_v26 }
 0x3c0   :  { %v8223_v37 = vpack.c.bf16 %v773_v48, %v772_v43  ;;  %v11213_v48 = vld [vmem:[#allocation58_spill] sm:$0xff] }
 0x3c2   :  { %8224 = vmatprep.subr.bf16.mxu1 %v8223_v37 }
 0x3c3   :  { %8226 = vmatpush3.bf16.msra.mxu1 %v8223_v37 }
 0x3c6   :  { %7525 = vmatmul.mubr.msk.f32.vlgmr.msra.gmra.mrb[16].mxu1 %vm320_vm4, %v6494_v2 }
 0x3c7   :  { %7527 = vmatprep.mubr.msk.f32.mxu1 %vm320_vm4, %v6495_v33 }
 0x3ca   :  { %7528 = vmatmul.mubr.msk.f32.gmra.mrb[18].mxu1 %vm320_vm4, %v6496_v34 }
 0x3cb   :  { %7530 = vmatprep.mubr.msk.f32.mxu1 %vm320_vm4, %v6497_v7 }
 0x3ce   :  { %7531 = vmatmul.mubr.msk.f32.gmra.mrb[20].mxu1 %vm320_vm4, %v6498_v5  ;;  %v11214_v5 = vld [vmem:[#allocation59_spill] sm:$0xff] }
 0x3cf   :  { %7533 = vmatprep.mubr.msk.f32.mxu1 %vm320_vm4, %v6499_v30 }
 0x3d2   :  { %7534 = vmatmul.mubr.msk.f32.gmra.mrb[22].mxu1 %vm320_vm4, %v6500_v4 }
 0x499   :  { %v7526_v36 = vpop.f32.mrb[16].mxu1 }
 0x49a   :  { %v928_v42 = vadd.f32 %v7526_v36, %v11210_v40  ;;  %v922_v11 = vpop.f32.mrb[17].mxu1  ;;  %v11215_v36 = vld [vmem:[#allocation60_spill] sm:$0xff] }
 0x49b   :  { %v923_v38 = vadd.f32 %v922_v11, %v11211_v12 }
 0x49c   :  { %v962_v8 = vmul.f32 0.01, %v928_v42 }
 0x49d   :  { %v961_v47 = vmul.f32 0.01, %v923_v38  ;;  %v7529_v45 = vpop.f32.mrb[18].mxu1 }
 0x49e   :  { %v970_v18 = vmax.f32 %v928_v42, %v962_v8  ;;  %v938_v46 = vadd.f32 %v7529_v45, %v11212_v31  ;;  %v932_v9 = vpop.f32.mrb[19].mxu1 }
 0x49f   :  { %v969_v26 = vmax.f32 %v923_v38, %v961_v47  ;;  %v933_v43 = vadd.f32 %v932_v9, %v11213_v48  ;;  %v11216_v47 = vld [vmem:[#allocation61_spill] sm:$0xff]  ;;  %v11217_v48 = vld [vmem:[#allocation62_spill] sm:$0xff] }
 0x4a0   :  { %v964_v37 = vmul.f32 0.01, %v938_v46 }
 0x4a1   :  { %v963_v2 = vmul.f32 0.01, %v933_v43  ;;  %v7532_v33 = vpop.f32.mrb[20].mxu1  ;;  %v8227_v34 = vpack.c.bf16 %v970_v18, %v969_v26 }
 0x4a2   :  { %v972_v7 = vmax.f32 %v938_v46, %v964_v37  ;;  %v948_v30 = vadd.f32 %v7532_v33, %v11214_v5  ;;  %v942_v4 = vpop.f32.mrb[21].mxu1 }
 0x4a3   :  { %v971_v41 = vmax.f32 %v933_v43, %v963_v2  ;;  %v943_v40 = vadd.f32 %v942_v4, %v11215_v36  ;;  %8228 = vmatprep.subr.bf16.mxu0 %v8227_v34  ;;  %v11218_v4 = vld [vmem:[#allocation64_spill] sm:$0xff] }
 0x4a4   :  { %v966_v11 = vmul.f32 0.01, %v948_v30  ;;  %8230 = vmatpush3.bf16.msra.mxu0 %v8227_v34  ;;  %v6518_v34 = vld [vmem:[%s10990_s6 + $0x48] sm:$0xff] }
 0x4a5   :  { %v965_v42 = vmul.f32 0.01, %v943_v40  ;;  %v7535_v12 = vpop.f32.mrb[22].mxu1  ;;  %v8231_v8 = vpack.c.bf16 %v972_v7, %v971_v41  ;;  %v6523_v7 = vld [vmem:[%s10980_s2 + $0xc0] sm:$0xff] }
 0x4a6   :  { %v974_v38 = vmax.f32 %v948_v30, %v966_v11  ;;  %v958_v45 = vadd.f32 %v7535_v12, %v11216_v47  ;;  %v952_v31 = vpop.f32.mrb[23].mxu1 }
 0x4a7   :  { %v973_v9 = vmax.f32 %v943_v40, %v965_v42  ;;  %v953_v18 = vadd.f32 %v952_v31, %v11217_v48  ;;  %8232 = vmatprep.subr.bf16.mxu0 %v8231_v8  ;;  %v11219_v42 = vld [vmem:[#allocation63_spill] sm:$0xff] }
 0x4a8   :  { %v968_v46 = vmul.f32 0.01, %v958_v45  ;;  %8234 = vmatpush3.bf16.msra.mxu0 %v8231_v8  ;;  %v6524_v31 = vld [vmem:[%s10980_s2 + $0xc8] sm:$0xff]  ;;  %v6527_v48 = vld [vmem:[%s10980_s2 + $0xe0] sm:$0xff] }
 0x4a9   :  { %v967_v26 = vmul.f32 0.01, %v953_v18  ;;  %v8235_v43 = vpack.c.bf16 %v974_v38, %v973_v9  ;;  %v6525_v9 = vld [vmem:[%s10980_s2 + $0xd0] sm:$0xff] }
 0x4aa   :  { %v976_v37 = vmax.f32 %v958_v45, %v968_v46  ;;  %v6529_v46 = vld [vmem:[%s10980_s2 + $0xf0] sm:$0xff] }
 0x4ab   :  { %v975_v2 = vmax.f32 %v953_v18, %v967_v26  ;;  %8236 = vmatprep.subr.bf16.mxu0 %v8235_v43  ;;  %v6528_v18 = vld [vmem:[%s10980_s2 + $0xe8] sm:$0xff]  ;;  %v6530_v26 = vld [vmem:[%s10980_s2 + $0xf8] sm:$0xff] }
 0x4ac   :  { %8238 = vmatpush3.bf16.msra.mxu0 %v8235_v43  ;;  %v6548_v43 = vld [vmem:[%s10985_s4 + $0xc0] sm:$0xff] }
 0x4ad   :  { %v8239_v33 = vpack.c.bf16 %v976_v37, %v975_v2  ;;  %7585 = vmatprep.mubr.msk.f32.mxu1 %vm320_vm4, %v6548_v43  ;;  %v11220_v2 = vld [vmem:[#allocation65_spill] sm:$0xff] }
 0x4af   :  { %8240 = vmatprep.subr.bf16.mxu0 %v8239_v33 }
 0x4b0   :  { %8242 = vmatpush3.bf16.msra.mxu0 %v8239_v33 }
 0x4b3   :  { %7553 = vmatmul.mubr.msk.f32.vlgmr.msra.gmra.mrb[10].mxu0 %vm320_vm4, %v6518_v34 }
 0x4b4   :  { %7557 = vmatprep.mubr.msk.f32.mxu0 %vm116_vm0, %v6523_v7  ;;  %v11221_v7 = vld [vmem:[#allocation66_spill] sm:$0xff] }
 0x586   :  { %v7554_v5 = vpop.f32.mrb[10].mxu0 }
 0x587   :  { %v1065_v30 = vpop.f32.mrb[11].mxu0  ;;  %v1071_v12 = vadd.f32 %v7554_v5, %v11219_v42 }
 0x588   :  { %v1066_v41 = vadd.f32 %v1065_v30, %v11218_v4 }
 0x589   :  { %v1075_v8 = vsub.f32 %v9866_v39, %v1071_v12 }
 0x58a   :  { %8579 = vtanh.f32 %v1066_v41 }
 0x594   :  { %v8580_v36 = vpop.eup %8579 }
 0x595   :  { %v1076_v40 = vsub.f32 0.0, %v8580_v36 }
 0x597   :  { %v1077_v11 = vmul.f32 1.442695, %v1076_v40  ;;  %v11222_v40 = vld [vmem:[#allocation67_spill] sm:$0xff] }
 0x599   :  { %8581 = vpow2.f32 %v1077_v11 }
 0x5a3   :  { %v8582_v38 = vpop.eup %8581 }
 0x5a4   :  { %v1079_v47 = vmul.f32 %v8582_v38, %v1075_v8  ;;  %v11223_v8 = vld [vmem:[#allocation68_spill] sm:$0xff] }
 0x5a6   :  { %v9968_v45 = vsel %vm53_vm1, %v9866_v39, %v1079_v47  ;;  %v6526_v39 = vld [vmem:[%s10980_s2 + $0xd8] sm:$0xff] }
 0x5a7   :  { %7555 = vmatprep.subr.msk.mxu0 %vm8734_vm3, %v9968_v45 }
 0x5a8   :  { %7556 = vmatpush3.msk.msra.mxu0 %vm8734_vm3, %v9968_v45 }
 0x5a9   :  { %7558 = vmatmul.mubr.msk.f32.vlgmr.msra.gmra.mrb[12].mxu0 %vm116_vm0, %v6524_v31 }
 0x5aa   :  { %7560 = vmatprep.mubr.msk.f32.mxu0 %vm116_vm0, %v6525_v9 }
 0x5ad   :  { %7561 = vmatmul.mubr.msk.f32.gmra.mrb[14].mxu0 %vm116_vm0, %v6526_v39 }
 0x5ae   :  { %7563 = vmatprep.mubr.msk.f32.mxu0 %vm116_vm0, %v6527_v48 }
 0x5b1   :  { %7564 = vmatmul.mubr.msk.f32.gmra.mrb[16].mxu0 %vm116_vm0, %v6528_v18  ;;  %v11224_v18 = vld [vmem:[#allocation69_spill] sm:$0xff] }
 0x5b2   :  { %7566 = vmatprep.mubr.msk.f32.mxu0 %vm116_vm0, %v6529_v46 }
 0x5b5   :  { %7567 = vmatmul.mubr.msk.f32.gmra.mrb[18].mxu0 %vm116_vm0, %v6530_v26 }
 0x67c   :  { %v7559_v37 = vpop.f32.mrb[12].mxu0 }
 0x67d   :  { %v1236_v33 = vadd.f32 %v7559_v37, %v11220_v2  ;;  %v1230_v34 = vpop.f32.mrb[13].mxu0  ;;  %v11225_v37 = vld [vmem:[#allocation70_spill] sm:$0xff] }
 0x67e   :  { %v1231_v5 = vadd.f32 %v1230_v34, %v11221_v7 }
 0x67f   :  { %v1270_v30 = vmul.f32 0.01, %v1236_v33 }
 0x680   :  { %v1269_v4 = vmul.f32 0.01, %v1231_v5  ;;  %v7562_v41 = vpop.f32.mrb[14].mxu0 }
 0x681   :  { %v1278_v36 = vmax.f32 %v1236_v33, %v1270_v30  ;;  %v1246_v11 = vadd.f32 %v7562_v41, %v11222_v40  ;;  %v1240_v42 = vpop.f32.mrb[15].mxu0 }
 0x682   :  { %v1277_v12 = vmax.f32 %v1231_v5, %v1269_v4  ;;  %v1241_v38 = vadd.f32 %v1240_v42, %v11223_v8  ;;  %v11226_v4 = vld [vmem:[#allocation71_spill] sm:$0xff]  ;;  %v11227_v8 = vld [vmem:[#allocation72_spill] sm:$0xff] }
 0x683   :  { %v1272_v47 = vmul.f32 0.01, %v1246_v11 }
 0x684   :  { %v1271_v31 = vmul.f32 0.01, %v1241_v38  ;;  %v7565_v9 = vpop.f32.mrb[16].mxu0  ;;  %v8243_v39 = vpack.c.bf16 %v1278_v36, %v1277_v12 }
 0x685   :  { %v1280_v48 = vmax.f32 %v1246_v11, %v1272_v47  ;;  %v1256_v46 = vadd.f32 %v7565_v9, %v11224_v18  ;;  %v1250_v26 = vpop.f32.mrb[17].mxu0  ;;  %v6551_v18 = vld [vmem:[%s10985_s4 + $0xd8] sm:$0xff] }
 0x686   :  { %v1279_v43 = vmax.f32 %v1241_v38, %v1271_v31  ;;  %v1251_v2 = vadd.f32 %v1250_v26, %v11225_v37  ;;  %8244 = vmatprep.subr.bf16.mxu1 %v8243_v39  ;;  %v6553_v26 = vld [vmem:[%s10985_s4 + $0xe8] sm:$0xff]  ;;  %v6555_v37 = vld [vmem:[%s10985_s4 + $0xf8] sm:$0xff] }
 0x687   :  { %v1274_v34 = vmul.f32 0.01, %v1256_v46  ;;  %8246 = vmatpush3.bf16.msra.mxu1 %v8243_v39  ;;  %v6549_v39 = vld [vmem:[%s10985_s4 + $0xc8] sm:$0xff] }
 0x688   :  { %v1273_v33 = vmul.f32 0.01, %v1251_v2  ;;  %v7568_v7 = vpop.f32.mrb[18].mxu0  ;;  %v8247_v30 = vpack.c.bf16 %v1280_v48, %v1279_v43  ;;  %v6550_v48 = vld [vmem:[%s10985_s4 + $0xd0] sm:$0xff] }
 0x689   :  { %v1282_v5 = vmax.f32 %v1256_v46, %v1274_v34  ;;  %v1266_v41 = vadd.f32 %v7568_v7, %v11226_v4  ;;  %v1260_v40 = vpop.f32.mrb[19].mxu0  ;;  %v6552_v46 = vld [vmem:[%s10985_s4 + $0xe0] sm:$0xff]  ;;  %v6554_v43 = vld [vmem:[%s10985_s4 + $0xf0] sm:$0xff] }
 0x68a   :  { %v1281_v42 = vmax.f32 %v1251_v2, %v1273_v33  ;;  %v1261_v36 = vadd.f32 %v1260_v40, %v11227_v8  ;;  %8248 = vmatprep.subr.bf16.mxu1 %v8247_v30  ;;  %v6572_v2 = vld [vmem:[%s10990_s6 + $0x30] sm:$0xff] }
 0x68b   :  { %v1276_v11 = vmul.f32 0.01, %v1266_v41  ;;  %8250 = vmatpush3.bf16.msra.mxu1 %v8247_v30  ;;  %7613 = vmatprep.mubr.msk.f32.mxu0 %vm320_vm4, %v6572_v2  ;;  %v11228_v33 = vld [vmem:[#allocation73_spill] sm:$0xff] }
 0x68c   :  { %v1275_v12 = vmul.f32 0.01, %v1261_v36  ;;  %v8251_v38 = vpack.c.bf16 %v1282_v5, %v1281_v42  ;;  %v11229_v5 = vld [vmem:[#allocation74_spill] sm:$0xff] }
 0x68d   :  { %v1284_v47 = vmax.f32 %v1266_v41, %v1276_v11 }
 0x68e   :  { %v1283_v31 = vmax.f32 %v1261_v36, %v1275_v12  ;;  %8252 = vmatprep.subr.bf16.mxu1 %v8251_v38  ;;  %v11230_v36 = vld [vmem:[#allocation75_spill] sm:$0xff] }
 0x68f   :  { %8254 = vmatpush3.bf16.msra.mxu1 %v8251_v38 }
 0x690   :  { %v8255_v9 = vpack.c.bf16 %v1284_v47, %v1283_v31  ;;  %v11231_v47 = vld [vmem:[#allocation76_spill] sm:$0xff] }
 0x692   :  { %8256 = vmatprep.subr.bf16.mxu1 %v8255_v9 }
 0x693   :  { %8258 = vmatpush3.bf16.msra.mxu1 %v8255_v9 }
 0x696   :  { %7586 = vmatmul.mubr.msk.f32.vlgmr.msra.gmra.mrb[24].mxu1 %vm320_vm4, %v6549_v39 }
 0x697   :  { %7588 = vmatprep.mubr.msk.f32.mxu1 %vm320_vm4, %v6550_v48 }
 0x69a   :  { %7589 = vmatmul.mubr.msk.f32.gmra.mrb[26].mxu1 %vm320_vm4, %v6551_v18 }
 0x69b   :  { %7591 = vmatprep.mubr.msk.f32.mxu1 %vm320_vm4, %v6552_v46 }
 0x69e   :  { %7592 = vmatmul.mubr.msk.f32.gmra.mrb[28].mxu1 %vm320_vm4, %v6553_v26 }
 0x69f   :  { %7594 = vmatprep.mubr.msk.f32.mxu1 %vm320_vm4, %v6554_v43 }
 0x6a2   :  { %7595 = vmatmul.mubr.msk.f32.gmra.mrb[30].mxu1 %vm320_vm4, %v6555_v37 }
 0x769   :  { %v7587_v34 = vpop.f32.mrb[24].mxu1 }
 0x76a   :  { %v1439_v7 = vadd.f32 %v7587_v34, %v11228_v33  ;;  %v1433_v30 = vpop.f32.mrb[25].mxu1 }
 0x76b   :  { %v1434_v4 = vadd.f32 %v1433_v30, %v11229_v5 }
 0x76c   :  { %v1473_v41 = vmul.f32 0.01, %v1439_v7 }
 0x76d   :  { %v1472_v40 = vmul.f32 0.01, %v1434_v4  ;;  %v7590_v42 = vpop.f32.mrb[26].mxu1 }
 0x76e   :  { %v1481_v8 = vmax.f32 %v1439_v7, %v1473_v41  ;;  %v1449_v11 = vadd.f32 %v7590_v42, %v11230_v36  ;;  %v1443_v12 = vpop.f32.mrb[27].mxu1 }
 0x76f   :  { %v1480_v38 = vmax.f32 %v1434_v4, %v1472_v40  ;;  %v1444_v31 = vadd.f32 %v1443_v12, %v11231_v47 }
 0x770   :  { %v1475_v9 = vmul.f32 0.01, %v1449_v11 }
 0x771   :  { %v1474_v39 = vmul.f32 0.01, %v1444_v31  ;;  %v7593_v48 = vpop.f32.mrb[28].mxu1  ;;  %v8259_v18 = vpack.c.bf16 %v1481_v8, %v1480_v38 }
 0x772   :  { %v1483_v46 = vmax.f32 %v1449_v11, %v1475_v9  ;;  %v1459_v26 = vadd.f32 %v7593_v48, %v9422_v20  ;;  %v1453_v43 = vpop.f32.mrb[29].mxu1 }
 0x773   :  { %v1482_v37 = vmax.f32 %v1444_v31, %v1474_v39  ;;  %v1454_v2 = vadd.f32 %v1453_v43, %v9425_v25  ;;  %8260 = vmatprep.subr.bf16.mxu0 %v8259_v18 }
 0x774   :  { %v1477_v34 = vmul.f32 0.01, %v1459_v26  ;;  %8262 = vmatpush3.bf16.msra.mxu0 %v8259_v18 }
 0x775   :  { %v1476_v33 = vmul.f32 0.01, %v1454_v2  ;;  %v7596_v7 = vpop.f32.mrb[30].mxu1  ;;  %v8263_v30 = vpack.c.bf16 %v1483_v46, %v1482_v37 }
 0x776   :  { %v1485_v5 = vmax.f32 %v1459_v26, %v1477_v34  ;;  %v1469_v4 = vadd.f32 %v7596_v7, %v9434_v19  ;;  %v1463_v41 = vpop.f32.mrb[31].mxu1  ;;  %v6573_v19 = vld [vmem:[%s10990_s6 + $0x38] sm:$0xff]  ;;  %v6583_v34 = vld [vmem:[%s10980_s2 + $0xa8] sm:$0xff] }
 0x777   :  { %v1484_v40 = vmax.f32 %v1454_v2, %v1476_v33  ;;  %v1464_v42 = vadd.f32 %v1463_v41, %v9437_v29  ;;  %8264 = vmatprep.subr.bf16.mxu0 %v8263_v30  ;;  %v6578_v29 = vld [vmem:[%s10980_s2 + $0x80] sm:$0xff]  ;;  %v6584_v33 = vld [vmem:[%s10980_s2 + $0xb0] sm:$0xff]  ;;  %v6585_v7 = vld [vmem:[%s10980_s2 + $0xb8] sm:$0xff] }
 0x778   :  { %v1479_v8 = vmul.f32 0.01, %v1469_v4  ;;  %8266 = vmatpush3.bf16.msra.mxu0 %v8263_v30  ;;  %v6582_v2 = vld [vmem:[%s10980_s2 + $0xa0] sm:$0xff] }
 0x779   :  { %v1478_v20 = vmul.f32 0.01, %v1464_v42  ;;  %v8267_v36 = vpack.c.bf16 %v1485_v5, %v1484_v40  ;;  %v6603_v30 = vld [vmem:[%s10985_s4 + $0x80] sm:$0xff] }
 0x77a   :  { %v1487_v11 = vmax.f32 %v1469_v4, %v1479_v8  ;;  %7646 = vmatprep.mubr.msk.f32.mxu1 %vm320_vm4, %v6603_v30  ;;  %v6606_v30 = vld [vmem:[%s10985_s4 + $0x98] sm:$0xff] }
 0x77b   :  { %v1486_v25 = vmax.f32 %v1464_v42, %v1478_v20  ;;  %8268 = vmatprep.subr.bf16.mxu0 %v8267_v36 }
 0x77c   :  { %8270 = vmatpush3.bf16.msra.mxu0 %v8267_v36 }
 0x77d   :  { %v8271_v12 = vpack.c.bf16 %v1487_v11, %v1486_v25 }
 0x77f   :  { %8272 = vmatprep.subr.bf16.mxu0 %v8271_v12 }
 0x780   :  { %8274 = vmatpush3.bf16.msra.mxu0 %v8271_v12 }
 0x783   :  { %7614 = vmatmul.mubr.msk.f32.vlgmr.msra.gmra.mrb[20].mxu0 %vm320_vm4, %v6573_v19 }
 0x784   :  { %7618 = vmatprep.mubr.msk.f32.mxu0 %vm116_vm0, %v6578_v29 }
 0x856   :  { %v7615_v38 = vpop.f32.mrb[20].mxu0 }
 0x857   :  { %v1576_v47 = vpop.f32.mrb[21].mxu0  ;;  %v1582_v18 = vadd.f32 %v7615_v38, %v9446_v50  ;;  %v6580_v50 = vld [vmem:[%s10980_s2 + $0x90] sm:$0xff] }
 0x858   :  { %v1577_v31 = vadd.f32 %v1576_v47, %v9449_v23  ;;  %v6579_v23 = vld [vmem:[%s10980_s2 + $0x88] sm:$0xff] }
 0x859   :  { %v1586_v46 = vsub.f32 %v9968_v45, %v1582_v18 }
 0x85a   :  { %8583 = vtanh.f32 %v1577_v31 }
 0x864   :  { %v8584_v9 = vpop.eup %8583 }
 0x865   :  { %v1587_v39 = vsub.f32 0.0, %v8584_v9 }
 0x867   :  { %v1588_v48 = vmul.f32 1.442695, %v1587_v39 }
 0x869   :  { %8585 = vpow2.f32 %v1588_v48 }
 0x873   :  { %v8586_v26 = vpop.eup %8585 }
 0x874   :  { %v1590_v43 = vmul.f32 %v8586_v26, %v1586_v46 }
 0x876   :  { %v10070_v37 = vsel %vm8734_vm3, %v9968_v45, %v1590_v43  ;;  %v6581_v45 = vld [vmem:[%s10980_s2 + $0x98] sm:$0xff] }
 0x877   :  { %7616 = vmatprep.subr.msk.mxu0 %vm53_vm1, %v10070_v37 }
 0x878   :  { %7617 = vmatpush3.msk.msra.mxu0 %vm53_vm1, %v10070_v37 }
 0x879   :  { %7619 = vmatmul.mubr.msk.f32.vlgmr.msra.gmra.mrb[22].mxu0 %vm116_vm0, %v6579_v23 }
 0x87a   :  { %7621 = vmatprep.mubr.msk.f32.mxu0 %vm116_vm0, %v6580_v50 }
 0x87d   :  { %7622 = vmatmul.mubr.msk.f32.gmra.mrb[24].mxu0 %vm116_vm0, %v6581_v45 }
 0x87e   :  { %7624 = vmatprep.mubr.msk.f32.mxu0 %vm116_vm0, %v6582_v2 }
 0x881   :  { %7625 = vmatmul.mubr.msk.f32.gmra.mrb[26].mxu0 %vm116_vm0, %v6583_v34 }
 0x882   :  { %7627 = vmatprep.mubr.msk.f32.mxu0 %vm116_vm0, %v6584_v33 }
 0x885   :  { %7628 = vmatmul.mubr.msk.f32.gmra.mrb[28].mxu0 %vm116_vm0, %v6585_v7 }
 0x94c   :  { %v7620_v5 = vpop.f32.mrb[22].mxu0 }
 0x94d   :  { %v1747_v4 = vadd.f32 %v7620_v5, %v9457_v24  ;;  %v1741_v41 = vpop.f32.mrb[23].mxu0  ;;  %v6607_v5 = vld [vmem:[%s10985_s4 + $0xa0] sm:$0xff] }
 0x94e   :  { %v1742_v40 = vadd.f32 %v1741_v41, %v9459_v15  ;;  %v6609_v41 = vld [vmem:[%s10985_s4 + $0xb0] sm:$0xff] }
 0x94f   :  { %v1781_v42 = vmul.f32 0.01, %v1747_v4 }
 0x950   :  { %v1780_v8 = vmul.f32 0.01, %v1742_v40  ;;  %v7623_v20 = vpop.f32.mrb[24].mxu0 }
 0x951   :  { %v1789_v36 = vmax.f32 %v1747_v4, %v1781_v42  ;;  %v1757_v11 = vadd.f32 %v7623_v20, %v9467_v14  ;;  %v1751_v25 = vpop.f32.mrb[25].mxu0  ;;  %v6608_v4 = vld [vmem:[%s10985_s4 + $0xa8] sm:$0xff]  ;;  %v6627_v42 = vld [vmem:[%s10990_s6 + $0x20] sm:$0xff] }
 0x952   :  { %v1788_v12 = vmax.f32 %v1742_v40, %v1780_v8  ;;  %v1752_v19 = vadd.f32 %v1751_v25, %v9469_v27  ;;  %v6610_v40 = vld [vmem:[%s10985_s4 + $0xb8] sm:$0xff]  ;;  %7674 = vmatprep.mubr.msk.f32.mxu0 %vm320_vm4, %v6627_v42 }
 0x953   :  { %v1783_v29 = vmul.f32 0.01, %v1757_v11 }
 0x954   :  { %v1782_v38 = vmul.f32 0.01, %v1752_v19  ;;  %v7626_v47 = vpop.f32.mrb[26].mxu0  ;;  %v8275_v31 = vpack.c.bf16 %v1789_v36, %v1788_v12 }
 0x955   :  { %v1791_v9 = vmax.f32 %v1757_v11, %v1783_v29  ;;  %v1767_v24 = vadd.f32 %v7626_v47, %v9483_v16  ;;  %v1761_v39 = vpop.f32.mrb[27].mxu0 }
 0x956   :  { %v1790_v48 = vmax.f32 %v1752_v19, %v1782_v38  ;;  %v1762_v15 = vadd.f32 %v1761_v39, %v9485_v52  ;;  %8276 = vmatprep.subr.bf16.mxu1 %v8275_v31 }
 0x957   :  { %v1785_v18 = vmul.f32 0.01, %v1767_v24  ;;  %8278 = vmatpush3.bf16.msra.mxu1 %v8275_v31 }
 0x958   :  { %v1784_v46 = vmul.f32 0.01, %v1762_v15  ;;  %v7629_v14 = vpop.f32.mrb[28].mxu0  ;;  %v8279_v26 = vpack.c.bf16 %v1791_v9, %v1790_v48 }
 0x959   :  { %v1793_v43 = vmax.f32 %v1767_v24, %v1785_v18  ;;  %v1777_v27 = vadd.f32 %v7629_v14, %v9495_v21  ;;  %v1771_v23 = vpop.f32.mrb[29].mxu0  ;;  %v6604_v21 = vld [vmem:[%s10985_s4 + $0x88] sm:$0xff] }
 0x95a   :  { %v1792_v50 = vmax.f32 %v1762_v15, %v1784_v46  ;;  %v1772_v45 = vadd.f32 %v1771_v23, %v9497_v32  ;;  %8280 = vmatprep.subr.bf16.mxu1 %v8279_v26  ;;  %v6605_v32 = vld [vmem:[%s10985_s4 + $0x90] sm:$0xff] }
 0x95b   :  { %v1787_v2 = vmul.f32 0.01, %v1777_v27  ;;  %8282 = vmatpush3.bf16.msra.mxu1 %v8279_v26 }
 0x95c   :  { %v1786_v16 = vmul.f32 0.01, %v1772_v45  ;;  %v8283_v34 = vpack.c.bf16 %v1793_v43, %v1792_v50 }
 0x95d   :  { %v1795_v33 = vmax.f32 %v1777_v27, %v1787_v2 }
 0x95e   :  { %v1794_v52 = vmax.f32 %v1772_v45, %v1786_v16  ;;  %8284 = vmatprep.subr.bf16.mxu1 %v8283_v34 }
 0x95f   :  { %8286 = vmatpush3.bf16.msra.mxu1 %v8283_v34 }
 0x960   :  { %v8287_v7 = vpack.c.bf16 %v1795_v33, %v1794_v52 }
 0x962   :  { %8288 = vmatprep.subr.bf16.mxu1 %v8287_v7 }
 0x963   :  { %8290 = vmatpush3.bf16.msra.mxu1 %v8287_v7 }
 0x966   :  { %7647 = vmatmul.mubr.msk.f32.vlgmr.msra.gmra.mrb[32].mxu1 %vm320_vm4, %v6604_v21 }
 0x967   :  { %7649 = vmatprep.mubr.msk.f32.mxu1 %vm320_vm4, %v6605_v32 }
 0x96a   :  { %7650 = vmatmul.mubr.msk.f32.gmra.mrb[34].mxu1 %vm320_vm4, %v6606_v30 }
 0x96b   :  { %7652 = vmatprep.mubr.msk.f32.mxu1 %vm320_vm4, %v6607_v5 }
 0x96e   :  { %7653 = vmatmul.mubr.msk.f32.gmra.mrb[36].mxu1 %vm320_vm4, %v6608_v4 }
 0x96f   :  { %7655 = vmatprep.mubr.msk.f32.mxu1 %vm320_vm4, %v6609_v41 }
 0x972   :  { %7656 = vmatmul.mubr.msk.f32.gmra.mrb[38].mxu1 %vm320_vm4, %v6610_v40 }
 0xa39   :  { %v7648_v8 = vpop.f32.mrb[32].mxu1 }
 0xa3a   :  { %v1950_v20 = vadd.f32 %v7648_v8, %v9508_v6  ;;  %v1944_v36 = vpop.f32.mrb[33].mxu1 }
 0xa3b   :  { %v1945_v11 = vadd.f32 %v1944_v36, %v9510_v28  ;;  %v10205_v36 = vld [vmem:[%s10980_s2 + $0x60] sm:$0xff] }
 0xa3c   :  { %v1984_v25 = vmul.f32 0.01, %v1950_v20 }
 0xa3d   :  { %v1983_v12 = vmul.f32 0.01, %v1945_v11  ;;  %v7651_v19 = vpop.f32.mrb[34].mxu1 }
 0xa3e   :  { %v1992_v29 = vmax.f32 %v1950_v20, %v1984_v25  ;;  %v1960_v38 = vadd.f32 %v7651_v19, %v9519_v22  ;;  %v1954_v47 = vpop.f32.mrb[35].mxu1  ;;  %v10219_v25 = vld [vmem:[%s10980_s2 + $0x70] sm:$0xff]  ;;  %v10235_v19 = vld [vmem:[%s10985_s4 + $0x40] sm:$0xff] }
 0xa3f   :  { %v1991_v31 = vmax.f32 %v1945_v11, %v1983_v12  ;;  %v1955_v9 = vadd.f32 %v1954_v47, %v9521_v10  ;;  %v10214_v11 = vld [vmem:[%s10980_s2 + $0x68] sm:$0xff]  ;;  %v10228_v12 = vld [vmem:[%s10980_s2 + $0x78] sm:$0xff] }
 0xa40   :  { %v1986_v24 = vmul.f32 0.01, %v1960_v38 }
 0xa41   :  { %v1985_v39 = vmul.f32 0.01, %v1955_v9  ;;  %v7654_v48 = vpop.f32.mrb[36].mxu1  ;;  %v8291_v15 = vpack.c.bf16 %v1992_v29, %v1991_v31 }
 0xa42   :  { %v1994_v18 = vmax.f32 %v1960_v38, %v1986_v24  ;;  %v1970_v6 = vadd.f32 %v7654_v48, %v9530_v35  ;;  %v1964_v46 = vpop.f32.mrb[37].mxu1 }
 0xa43   :  { %v1993_v14 = vmax.f32 %v1955_v9, %v1985_v39  ;;  %v1965_v28 = vadd.f32 %v1964_v46, %v9527_v1  ;;  %8292 = vmatprep.subr.bf16.mxu0 %v8291_v15 }
 0xa44   :  { %v1988_v26 = vmul.f32 0.01, %v1970_v6  ;;  %8294 = vmatpush3.bf16.msra.mxu0 %v8291_v15 }
 0xa45   :  { %v1987_v43 = vmul.f32 0.01, %v1965_v28  ;;  %v7657_v22 = vpop.f32.mrb[38].mxu1  ;;  %v8295_v27 = vpack.c.bf16 %v1994_v18, %v1993_v14 }
 0xa46   :  { %v1996_v23 = vmax.f32 %v1970_v6, %v1988_v26  ;;  %v1980_v10 = vadd.f32 %v7657_v22, %v9536_v13  ;;  %v1974_v50 = vpop.f32.mrb[39].mxu1  ;;  %v6628_v13 = vld [vmem:[%s10990_s6 + $0x28] sm:$0xff] }
 0xa47   :  { %v1995_v45 = vmax.f32 %v1965_v28, %v1987_v43  ;;  %v1975_v2 = vadd.f32 %v1974_v50, %v9534_v17  ;;  %8296 = vmatprep.subr.bf16.mxu0 %v8295_v27  ;;  %v10165_v17 = vld [vmem:[%s10980_s2 + $0x40] sm:$0xff] }
 0xa48   :  { %v1990_v16 = vmul.f32 0.01, %v1980_v10  ;;  %8298 = vmatpush3.bf16.msra.mxu0 %v8295_v27  ;;  %7679 = vmatprep.mubr.msk.f32.mxu1 %vm116_vm0, %v10165_v17 }
 0xa49   :  { %v1989_v35 = vmul.f32 0.01, %v1975_v2  ;;  %v8299_v34 = vpack.c.bf16 %v1996_v23, %v1995_v45 }
 0xa4a   :  { %v1998_v33 = vmax.f32 %v1980_v10, %v1990_v16 }
 0xa4b   :  { %v1997_v1 = vmax.f32 %v1975_v2, %v1989_v35  ;;  %8300 = vmatprep.subr.bf16.mxu0 %v8299_v34 }
 0xa4c   :  { %8302 = vmatpush3.bf16.msra.mxu0 %v8299_v34 }
 0xa4d   :  { %v8303_v52 = vpack.c.bf16 %v1998_v33, %v1997_v1 }
 0xa4f   :  { %8304 = vmatprep.subr.bf16.mxu0 %v8303_v52 }
 0xa50   :  { %8306 = vmatpush3.bf16.msra.mxu0 %v8303_v52 }
 0xa53   :  { %7675 = vmatmul.mubr.msk.f32.vlgmr.msra.gmra.mrb[30].mxu0 %vm320_vm4, %v6628_v13 }
 0xa54   :  { %7707 = vmatprep.mubr.msk.f32.mxu0 %vm320_vm4, %v10235_v19 }
 0xb26   :  { %v7676_v7 = vpop.f32.mrb[30].mxu0 }
 0xb27   :  { %v2087_v21 = vpop.f32.mrb[31].mxu0  ;;  %v2093_v41 = vadd.f32 %v7676_v7, %v9544_v61  ;;  %v10188_v61 = vld [vmem:[%s10980_s2 + $0x50] sm:$0xff]  ;;  %v10264_v7 = vld [vmem:[%s10985_s4 + $0x58] sm:$0xff] }
 0xb28   :  { %v2088_v32 = vadd.f32 %v2087_v21, %v9541_v63  ;;  %v10180_v63 = vld [vmem:[%s10980_s2 + $0x48] sm:$0xff]  ;;  %v10269_v21 = vld [vmem:[%s10985_s4 + $0x60] sm:$0xff] }
 0xb29   :  { %v2097_v40 = vsub.f32 %v10070_v37, %v2093_v41 }
 0xb2a   :  { %8587 = vtanh.f32 %v2088_v32  ;;  %v10278_v32 = vld [vmem:[%s10985_s4 + $0x68] sm:$0xff] }
 0xb34   :  { %v8588_v30 = vpop.eup %8587 }
 0xb35   :  { %v2098_v5 = vsub.f32 0.0, %v8588_v30  ;;  %v10283_v30 = vld [vmem:[%s10985_s4 + $0x70] sm:$0xff] }
 0xb37   :  { %v2099_v4 = vmul.f32 1.442695, %v2098_v5  ;;  %v10292_v5 = vld [vmem:[%s10985_s4 + $0x78] sm:$0xff] }
 0xb39   :  { %8589 = vpow2.f32 %v2099_v4  ;;  %v10299_v4 = vld [vmem:[%s10990_s6 + $0x10] sm:$0xff] }
 0xb43   :  { %v8590_v42 = vpop.eup %8589 }
 0xb44   :  { %v2101_v8 = vmul.f32 %v8590_v42, %v2097_v40 }
 0xb46   :  { %v10175_v20 = vsel %vm53_vm1, %v10070_v37, %v2101_v8  ;;  %v10200_v37 = vld [vmem:[%s10980_s2 + $0x58] sm:$0xff] }
 0xb47   :  { %7677 = vmatprep.subr.msk.mxu1 %vm8734_vm3, %v10175_v20 }
 0xb48   :  { %7678 = vmatpush3.msk.msra.mxu1 %vm8734_vm3, %v10175_v20 }
 0xb49   :  { %7680 = vmatmul.mubr.msk.f32.vlgmr.msra.gmra.mrb[40].mxu1 %vm116_vm0, %v10180_v63 }
 0xb4a   :  { %7682 = vmatprep.mubr.msk.f32.mxu1 %vm116_vm0, %v10188_v61 }
 0xb4d   :  { %7683 = vmatmul.mubr.msk.f32.gmra.mrb[42].mxu1 %vm116_vm0, %v10200_v37 }
 0xb4e   :  { %7685 = vmatprep.mubr.msk.f32.mxu1 %vm116_vm0, %v10205_v36 }
 0xb51   :  { %7686 = vmatmul.mubr.msk.f32.gmra.mrb[44].mxu1 %vm116_vm0, %v10214_v11 }
 0xb52   :  { %7688 = vmatprep.mubr.msk.f32.mxu1 %vm116_vm0, %v10219_v25 }
 0xb55   :  { %7689 = vmatmul.mubr.msk.f32.gmra.mrb[46].mxu1 %vm116_vm0, %v10228_v12 }
 0xb56   :  { %7735 = vmatprep.mubr.msk.f32.mxu1 %vm320_vm4, %v10299_v4 }
 0xc1c   :  { %v7681_v29 = vpop.f32.mrb[40].mxu1 }
 0xc1d   :  { %v2258_v38 = vadd.f32 %v7681_v29, %v9550_v62  ;;  %v2252_v47 = vpop.f32.mrb[41].mxu1 }
 0xc1e   :  { %v2253_v31 = vadd.f32 %v2252_v47, %v9548_v59 }
 0xc1f   :  { %v2292_v9 = vmul.f32 0.01, %v2258_v38 }
 0xc20   :  { %v2291_v24 = vmul.f32 0.01, %v2253_v31  ;;  %v7684_v39 = vpop.f32.mrb[42].mxu1 }
 0xc21   :  { %v2300_v48 = vmax.f32 %v2258_v38, %v2292_v9  ;;  %v2268_v15 = vadd.f32 %v7684_v39, %v9558_v55  ;;  %v2262_v18 = vpop.f32.mrb[43].mxu1 }
 0xc22   :  { %v2299_v6 = vmax.f32 %v2253_v31, %v2291_v24  ;;  %v2263_v46 = vadd.f32 %v2262_v18, %v9555_v53 }
 0xc23   :  { %v2294_v14 = vmul.f32 0.01, %v2268_v15 }
 0xc24   :  { %v2293_v28 = vmul.f32 0.01, %v2263_v46  ;;  %v7687_v26 = vpop.f32.mrb[44].mxu1  ;;  %v8307_v43 = vpack.c.bf16 %v2300_v48, %v2299_v6 }
 0xc25   :  { %v2302_v22 = vmax.f32 %v2268_v15, %v2294_v14  ;;  %v2278_v62 = vadd.f32 %v7687_v26, %v9564_v57  ;;  %v2272_v27 = vpop.f32.mrb[45].mxu1 }
 0xc26   :  { %v2301_v23 = vmax.f32 %v2263_v46, %v2293_v28  ;;  %v2273_v59 = vadd.f32 %v2272_v27, %v9562_v56  ;;  %8308 = vmatprep.subr.bf16.mxu0 %v8307_v43  ;;  %v11232_v28 = vld [vmem:[#allocation78_spill] sm:$0xff] }
 0xc27   :  { %v2296_v10 = vmul.f32 0.01, %v2278_v62  ;;  %8310 = vmatpush3.bf16.msra.mxu0 %v8307_v43 }
 0xc28   :  { %v2295_v50 = vmul.f32 0.01, %v2273_v59  ;;  %v7690_v55 = vpop.f32.mrb[46].mxu1  ;;  %v8311_v45 = vpack.c.bf16 %v2302_v22, %v2301_v23 }
 0xc29   :  { %v2304_v2 = vmax.f32 %v2278_v62, %v2296_v10  ;;  %v2288_v53 = vadd.f32 %v7690_v55, %v9572_v49  ;;  %v2282_v16 = vpop.f32.mrb[47].mxu1  ;;  %v10250_v49 = vld [vmem:[%s10985_s4 + $0x48] sm:$0xff] }
 0xc2a   :  { %v2303_v35 = vmax.f32 %v2273_v59, %v2295_v50  ;;  %v2283_v34 = vadd.f32 %v2282_v16, %v9569_v51  ;;  %8312 = vmatprep.subr.bf16.mxu0 %v8311_v45  ;;  %v10255_v51 = vld [vmem:[%s10985_s4 + $0x50] sm:$0xff] }
 0xc2b   :  { %v2298_v33 = vmul.f32 0.01, %v2288_v53  ;;  %8314 = vmatpush3.bf16.msra.mxu0 %v8311_v45  ;;  %v11234_v10 = vld [vmem:[#allocation80_spill] sm:$0xff]  ;;  %v11235_v45 = vld [vmem:[#allocation79_spill] sm:$0xff] }
 0xc2c   :  { %v2297_v57 = vmul.f32 0.01, %v2283_v34  ;;  %v8315_v1 = vpack.c.bf16 %v2304_v2, %v2303_v35 }
 0xc2d   :  { %v2306_v52 = vmax.f32 %v2288_v53, %v2298_v33 }
 0xc2e   :  { %v2305_v56 = vmax.f32 %v2283_v34, %v2297_v57  ;;  %8316 = vmatprep.subr.bf16.mxu0 %v8315_v1 }
 0xc2f   :  { %8318 = vmatpush3.bf16.msra.mxu0 %v8315_v1  ;;  %v10314_v1 = vld [vmem:[%s10990_s6 + $0x18] sm:$0xff] }
 0xc30   :  { %v8319_v13 = vpack.c.bf16 %v2306_v52, %v2305_v56  ;;  %v10321_v52 = vld [vmem:[%s10980_s2] sm:$0xff] }
 0xc32   :  { %8320 = vmatprep.subr.bf16.mxu0 %v8319_v13 }
 0xc33   :  { %8322 = vmatpush3.bf16.msra.mxu0 %v8319_v13 }
 0xc36   :  { %7708 = vmatmul.mubr.msk.f32.vlgmr.msra.gmra.mrb[32].mxu0 %vm320_vm4, %v10250_v49 }
 0xc37   :  { %7710 = vmatprep.mubr.msk.f32.mxu0 %vm320_vm4, %v10255_v51 }
 0xc3a   :  { %7711 = vmatmul.mubr.msk.f32.gmra.mrb[34].mxu0 %vm320_vm4, %v10264_v7 }
 0xc3b   :  { %7713 = vmatprep.mubr.msk.f32.mxu0 %vm320_vm4, %v10269_v21 }
 0xc3e   :  { %7714 = vmatmul.mubr.msk.f32.gmra.mrb[36].mxu0 %vm320_vm4, %v10278_v32 }
 0xc3f   :  { %7716 = vmatprep.mubr.msk.f32.mxu0 %vm320_vm4, %v10283_v30 }
 0xc42   :  { %7717 = vmatmul.mubr.msk.f32.gmra.mrb[38].mxu0 %vm320_vm4, %v10292_v5 }
 0xd09   :  { %v7709_v41 = vpop.f32.mrb[32].mxu0 }
 0xd0a   :  { %v2461_v40 = vadd.f32 %v7709_v41, %v9578_v58  ;;  %v2455_v42 = vpop.f32.mrb[33].mxu0  ;;  %v11236_v41 = vld [vmem:[#allocation81_spill] sm:$0xff] }
 0xd0b   :  { %v2456_v8 = vadd.f32 %v2455_v42, %v9576_v54  ;;  %v11233_v54 = vld [vmem:[#allocation77_spill] sm:$0xff] }
 0xd0c   :  { %v2495_v29 = vmul.f32 0.01, %v2461_v40 }
 0xd0d   :  { %v2494_v38 = vmul.f32 0.01, %v2456_v8  ;;  %v7712_v47 = vpop.f32.mrb[34].mxu0 }
 0xd0e   :  { %v2503_v31 = vmax.f32 %v2461_v40, %v2495_v29  ;;  %v2471_v9 = vadd.f32 %v7712_v47, %v9586_v0  ;;  %v2465_v24 = vpop.f32.mrb[35].mxu0 }
 0xd0f   :  { %v2502_v39 = vmax.f32 %v2456_v8, %v2494_v38  ;;  %v2466_v48 = vadd.f32 %v2465_v24, %v9583_v60  ;;  %v11237_v38 = vld [vmem:[#allocation82_spill] sm:$0xff] }
 0xd10   :  { %v2497_v15 = vmul.f32 0.01, %v2471_v9 }
 0xd11   :  { %v2496_v18 = vmul.f32 0.01, %v2466_v48  ;;  %v7715_v6 = vpop.f32.mrb[36].mxu0  ;;  %v8323_v46 = vpack.c.bf16 %v2503_v31, %v2502_v39 }
 0xd12   :  { %v2505_v14 = vmax.f32 %v2471_v9, %v2497_v15  ;;  %v2481_v58 = vadd.f32 %v7715_v6, %v11232_v28  ;;  %v2475_v26 = vpop.f32.mrb[37].mxu0  ;;  %v10344_v15 = vld [vmem:[%s10980_s2 + $0x10] sm:$0xff]  ;;  %v10370_v6 = vld [vmem:[%s10980_s2 + $0x28] sm:$0xff]  ;;  %v10391_v28 = vld [vmem:[%s10985_s4] sm:$0xff] }
 0xd13   :  { %v2504_v43 = vmax.f32 %v2466_v48, %v2496_v18  ;;  %v2476_v22 = vadd.f32 %v2475_v26, %v11233_v54  ;;  %8324 = vmatprep.subr.bf16.mxu1 %v8323_v46  ;;  %v10336_v48 = vld [vmem:[%s10980_s2 + $0x8] sm:$0xff]  ;;  %v10361_v18 = vld [vmem:[%s10980_s2 + $0x20] sm:$0xff]  ;;  %7768 = vmatprep.mubr.msk.f32.mxu0 %vm320_vm4, %v10391_v28 }
 0xd14   :  { %v2499_v62 = vmul.f32 0.01, %v2481_v58  ;;  %8326 = vmatpush3.bf16.msra.mxu1 %v8323_v46  ;;  %v10375_v46 = vld [vmem:[%s10980_s2 + $0x30] sm:$0xff]  ;;  %v11238_v26 = vld [vmem:[#allocation26_spill] sm:$0xff] }
 0xd15   :  { %v2498_v27 = vmul.f32 0.01, %v2476_v22  ;;  %v7718_v0 = vpop.f32.mrb[38].mxu0  ;;  %v8327_v23 = vpack.c.bf16 %v2505_v14, %v2504_v43  ;;  %v10384_v14 = vld [vmem:[%s10980_s2 + $0x38] sm:$0xff] }
 0xd16   :  { %v2507_v59 = vmax.f32 %v2481_v58, %v2499_v62  ;;  %v2491_v60 = vadd.f32 %v7718_v0, %v11234_v10  ;;  %v2485_v50 = vpop.f32.mrb[39].mxu0  ;;  %v11240_v10 = vld [vmem:[#allocation28_spill] sm:$0xff] }
 0xd17   :  { %v2506_v55 = vmax.f32 %v2476_v22, %v2498_v27  ;;  %v2486_v2 = vadd.f32 %v2485_v50, %v11235_v45  ;;  %8328 = vmatprep.subr.bf16.mxu1 %v8327_v23  ;;  %v11239_v22 = vld [vmem:[#allocation23_spill] sm:$0xff]  ;;  %v11241_v45 = vld [vmem:[#allocation24_spill] sm:$0xff] }
 0xd18   :  { %v2501_v53 = vmul.f32 0.01, %v2491_v60  ;;  %8330 = vmatpush3.bf16.msra.mxu1 %v8327_v23 }
 0xd19   :  { %v2500_v16 = vmul.f32 0.01, %v2486_v2  ;;  %v8331_v35 = vpack.c.bf16 %v2507_v59, %v2506_v55 }
 0xd1a   :  { %v2509_v34 = vmax.f32 %v2491_v60, %v2501_v53 }
 0xd1b   :  { %v2508_v33 = vmax.f32 %v2486_v2, %v2500_v16  ;;  %8332 = vmatprep.subr.bf16.mxu1 %v8331_v35 }
 0xd1c   :  { %8334 = vmatpush3.bf16.msra.mxu1 %v8331_v35 }
 0xd1d   :  { %v8335_v57 = vpack.c.bf16 %v2509_v34, %v2508_v33 }
 0xd1f   :  { %8336 = vmatprep.subr.bf16.mxu1 %v8335_v57 }
 0xd20   :  { %8338 = vmatpush3.bf16.msra.mxu1 %v8335_v57  ;;  %v11242_v57 = vld [vmem:[#allocation30_spill] sm:$0xff] }
 0xd23   :  { %7736 = vmatmul.mubr.msk.f32.vlgmr.msra.gmra.mrb[48].mxu1 %vm320_vm4, %v10314_v1 }
 0xd24   :  { %7740 = vmatprep.mubr.msk.f32.mxu1 %vm116_vm0, %v10321_v52 }
 0xdf6   :  { %v7737_v56 = vpop.f32.mrb[48].mxu1 }
 0xdf7   :  { %v2598_v13 = vpop.f32.mrb[49].mxu1  ;;  %v2604_v47 = vadd.f32 %v7737_v56, %v11237_v38 }
 0xdf8   :  { %v2599_v40 = vadd.f32 %v2598_v13, %v11236_v41 }
 0xdf9   :  { %v2608_v31 = vsub.f32 %v10175_v20, %v2604_v47 }
 0xdfa   :  { %8591 = vtanh.f32 %v2599_v40  ;;  %v11243_v40 = vld [vmem:[#allocation25_spill] sm:$0xff] }
 0xe04   :  { %v8592_v42 = vpop.eup %8591 }
 0xe05   :  { %v2609_v8 = vsub.f32 0.0, %v8592_v42 }
 0xe07   :  { %v2610_v29 = vmul.f32 1.442695, %v2609_v8 }
 0xe09   :  { %8593 = vpow2.f32 %v2610_v29 }
 0xe13   :  { %v8594_v9 = vpop.eup %8593 }
 0xe14   :  { %v2612_v24 = vmul.f32 %v8594_v9, %v2608_v31  ;;  %v11244_v9 = vld [vmem:[#allocation32_spill] sm:$0xff] }
 0xe16   :  { %v10331_v39 = vsel %vm8734_vm3, %v10175_v20, %v2612_v24  ;;  %v10356_v20 = vld [vmem:[%s10980_s2 + $0x18] sm:$0xff] }
 0xe17   :  { %7738 = vmatprep.subr.msk.mxu1 %vm53_vm1, %v10331_v39 }
 0xe18   :  { %7739 = vmatpush3.msk.msra.mxu1 %vm53_vm1, %v10331_v39 }
 0xe19   :  { %7741 = vmatmul.mubr.msk.f32.vlgmr.msra.gmra.mrb[50].mxu1 %vm116_vm0, %v10336_v48 }
 0xe1a   :  { %7743 = vmatprep.mubr.msk.f32.mxu1 %vm116_vm0, %v10344_v15 }
 0xe1d   :  { %7744 = vmatmul.mubr.msk.f32.gmra.mrb[52].mxu1 %vm116_vm0, %v10356_v20 }
 0xe1e   :  { %7746 = vmatprep.mubr.msk.f32.mxu1 %vm116_vm0, %v10361_v18 }
 0xe21   :  { %7747 = vmatmul.mubr.msk.f32.gmra.mrb[54].mxu1 %vm116_vm0, %v10370_v6 }
 0xe22   :  { %7749 = vmatprep.mubr.msk.f32.mxu1 %vm116_vm0, %v10375_v46 }
 0xe25   :  { %7750 = vmatmul.mubr.msk.f32.gmra.mrb[56].mxu1 %vm116_vm0, %v10384_v14 }
 0xeec   :  { %v7742_v58 = vpop.f32.mrb[50].mxu1 }
 0xeed   :  { %v2767_v43 = vadd.f32 %v7742_v58, %v11238_v26  ;;  %v2761_v54 = vpop.f32.mrb[51].mxu1 }
 0xeee   :  { %v2762_v62 = vadd.f32 %v2761_v54, %v11239_v22 }
 0xeef   :  { %v2801_v27 = vmul.f32 0.01, %v2767_v43 }
 0xef0   :  { %v2800_v0 = vmul.f32 0.01, %v2762_v62  ;;  %v7745_v23 = vpop.f32.mrb[52].mxu1 }
 0xef1   :  { %v2809_v59 = vmax.f32 %v2767_v43, %v2801_v27  ;;  %v2777_v60 = vadd.f32 %v7745_v23, %v11240_v10  ;;  %v2771_v50 = vpop.f32.mrb[53].mxu1  ;;  %v11245_v43 = vld [vmem:[#allocation27_spill] sm:$0xff] }
 0xef2   :  { %v2808_v55 = vmax.f32 %v2762_v62, %v2800_v0  ;;  %v2772_v2 = vadd.f32 %v2771_v50, %v11241_v45  ;;  %v10406_v10 = vld [vmem:[%s10985_s4 + $0x8] sm:$0xff]  ;;  %v10420_v50 = vld [vmem:[%s10985_s4 + $0x18] sm:$0xff] }
 0xef3   :  { %v2803_v53 = vmul.f32 0.01, %v2777_v60  ;;  %v10434_v45 = vld [vmem:[%s10985_s4 + $0x28] sm:$0xff] }
 0xef4   :  { %v2802_v16 = vmul.f32 0.01, %v2772_v2  ;;  %v7748_v35 = vpop.f32.mrb[54].mxu1  ;;  %v8339_v34 = vpack.c.bf16 %v2809_v59, %v2808_v55  ;;  %v10425_v55 = vld [vmem:[%s10985_s4 + $0x20] sm:$0xff] }
 0xef5   :  { %v2811_v33 = vmax.f32 %v2777_v60, %v2803_v53  ;;  %v2787_v56 = vadd.f32 %v7748_v35, %v11242_v57  ;;  %v2781_v13 = vpop.f32.mrb[55].mxu1  ;;  %v10411_v60 = vld [vmem:[%s10985_s4 + $0x10] sm:$0xff]  ;;  %v10448_v53 = vld [vmem:[%s10985_s4 + $0x38] sm:$0xff] }
 0xef6   :  { %v2810_v41 = vmax.f32 %v2772_v2, %v2802_v16  ;;  %v2782_v42 = vadd.f32 %v2781_v13, %v11243_v40  ;;  %8340 = vmatprep.subr.bf16.mxu0 %v8339_v34  ;;  %v10439_v2 = vld [vmem:[%s10985_s4 + $0x30] sm:$0xff]  ;;  %v10457_v16 = vld [vmem:[%s10990_s6] sm:$0xff] }
 0xef7   :  { %v2805_v8 = vmul.f32 0.01, %v2787_v56  ;;  %8342 = vmatpush3.bf16.msra.mxu0 %v8339_v34  ;;  %7796 = vmatprep.mubr.msk.f32.mxu1 %vm320_vm4, %v10457_v16  ;;  %v11246_v34 = vld [vmem:[#allocation34_spill] sm:$0xff] }
 0xef8   :  { %v2804_v29 = vmul.f32 0.01, %v2782_v42  ;;  %v7751_v38 = vpop.f32.mrb[56].mxu1  ;;  %v8343_v47 = vpack.c.bf16 %v2811_v33, %v2810_v41 }
 0xef9   :  { %v2813_v31 = vmax.f32 %v2787_v56, %v2805_v8  ;;  %v2797_v24 = vadd.f32 %v7751_v38, %v11244_v9  ;;  %v2791_v58 = vpop.f32.mrb[57].mxu1  ;;  %v11247_v56 = vld [vmem:[#allocation29_spill] sm:$0xff] }
 0xefa   :  { %v2812_v26 = vmax.f32 %v2782_v42, %v2804_v29  ;;  %v2792_v54 = vadd.f32 %v2791_v58, %v11245_v43  ;;  %8344 = vmatprep.subr.bf16.mxu0 %v8343_v47  ;;  %v11248_v29 = vld [vmem:[#allocation36_spill] sm:$0xff] }
 0xefb   :  { %v2807_v22 = vmul.f32 0.01, %v2797_v24  ;;  %8346 = vmatpush3.bf16.msra.mxu0 %v8343_v47 }
 0xefc   :  { %v2806_v62 = vmul.f32 0.01, %v2792_v54  ;;  %v8347_v27 = vpack.c.bf16 %v2813_v31, %v2812_v26  ;;  %v11249_v31 = vld [vmem:[#allocation31_spill] sm:$0xff] }
 0xefd   :  { %v2815_v0 = vmax.f32 %v2797_v24, %v2807_v22  ;;  %v11250_v22 = vld [vmem:[#allocation6_spill] sm:$0xff] }
 0xefe   :  { %v2814_v23 = vmax.f32 %v2792_v54, %v2806_v62  ;;  %8348 = vmatprep.subr.bf16.mxu0 %v8347_v27 }
 0xeff   :  { %8350 = vmatpush3.bf16.msra.mxu0 %v8347_v27 }
 0xf00   :  { %v8351_v59 = vpack.c.bf16 %v2815_v0, %v2814_v23  ;;  %v11251_v23 = vld [vmem:[#allocation33_spill] sm:$0xff] }
 0xf02   :  { %8352 = vmatprep.subr.bf16.mxu0 %v8351_v59 }
 0xf03   :  { %8354 = vmatpush3.bf16.msra.mxu0 %v8351_v59 }
 0xf06   :  { %7769 = vmatmul.mubr.msk.f32.vlgmr.msra.gmra.mrb[40].mxu0 %vm320_vm4, %v10406_v10 }
 0xf07   :  { %7771 = vmatprep.mubr.msk.f32.mxu0 %vm320_vm4, %v10411_v60 }
 0xf0a   :  { %7772 = vmatmul.mubr.msk.f32.gmra.mrb[42].mxu0 %vm320_vm4, %v10420_v50 }
 0xf0b   :  { %7774 = vmatprep.mubr.msk.f32.mxu0 %vm320_vm4, %v10425_v55 }
 0xf0e   :  { %7775 = vmatmul.mubr.msk.f32.gmra.mrb[44].mxu0 %vm320_vm4, %v10434_v45 }
 0xf0f   :  { %7777 = vmatprep.mubr.msk.f32.mxu0 %vm320_vm4, %v10439_v2 }
 0xf12   :  { %7778 = vmatmul.mubr.msk.f32.gmra.mrb[46].mxu0 %vm320_vm4, %v10448_v53 }
 0xf13   :  { %7815 = vmatprep.mubr.msk.f32.mxu0 %vm116_vm0, %v10321_v52 }
 0xfd9   :  { %v7770_v35 = vpop.f32.mrb[40].mxu0 }
 0xfda   :  { %v2968_v33 = vadd.f32 %v7770_v35, %v11246_v34  ;;  %v2962_v57 = vpop.f32.mrb[41].mxu0 }
 0xfdb   :  { %v2963_v13 = vadd.f32 %v2962_v57, %v11247_v56 }
 0xfdc   :  { %v3002_v41 = vmul.f32 0.01, %v2968_v33 }
 0xfdd   :  { %v3001_v40 = vmul.f32 0.01, %v2963_v13  ;;  %v7773_v42 = vpop.f32.mrb[42].mxu0 }
 0xfde   :  { %v3010_v8 = vmax.f32 %v2968_v33, %v3002_v41  ;;  %v2978_v52 = vadd.f32 %v7773_v42, %v11248_v29  ;;  %v2972_v38 = vpop.f32.mrb[43].mxu0  ;;  %v11253_v29 = vld [vmem:[#allocation35_spill] sm:$0xff] }
 0xfdf   :  { %v3009_v47 = vmax.f32 %v2963_v13, %v3001_v40  ;;  %v2973_v9 = vadd.f32 %v2972_v38, %v11249_v31  ;;  %v11252_v13 = vld [vmem:[#allocation8_spill] sm:$0xff] }
 0xfe0   :  { %v3004_v24 = vmul.f32 0.01, %v2978_v52 }
 0xfe1   :  { %v3003_v58 = vmul.f32 0.01, %v2973_v9  ;;  %v7776_v26 = vpop.f32.mrb[44].mxu0  ;;  %v8355_v43 = vpack.c.bf16 %v3010_v8, %v3009_v47 }
 0xfe2   :  { %v3012_v54 = vmax.f32 %v2978_v52, %v3004_v24  ;;  %v2988_v62 = vadd.f32 %v7776_v26, %v11250_v22  ;;  %v2982_v27 = vpop.f32.mrb[45].mxu0  ;;  %v3188_v26 = vld [vmem:[%s10991_s10] sm:$0xff]  ;;  %v11254_v22 = vld [vmem:[#allocation5_spill] sm:$0xff] }
 0xfe3   :  { %v3011_v0 = vmax.f32 %v2973_v9, %v3003_v58  ;;  %v2983_v59 = vadd.f32 %v2982_v27, %v11251_v23  ;;  %8356 = vmatprep.subr.bf16.mxu1 %v8355_v43  ;;  %v10472_v58 = vld [vmem:[%s10990_s6 + $0x8] sm:$0xff] }
 0xfe4   :  { %v3006_v35 = vmul.f32 0.01, %v2988_v62  ;;  %8358 = vmatpush3.bf16.msra.mxu1 %v8355_v43 }
 0xfe5   :  { %v3005_v34 = vmul.f32 0.01, %v2983_v59  ;;  %v7779_v33 = vpop.f32.mrb[46].mxu0  ;;  %v8359_v57 = vpack.c.bf16 %v3012_v54, %v3011_v0 }
 0xfe6   :  { %v3014_v56 = vmax.f32 %v2988_v62, %v3006_v35  ;;  %v2998_v41 = vadd.f32 %v7779_v33, %v11252_v13  ;;  %v2992_v40 = vpop.f32.mrb[47].mxu0  ;;  %v10487_v13 = vsub.s32 0, %v11201_v3  ;;  %v6953_v3 = vld [vmem:[%s10980_s2 + $0x158] sm:$0xff] }
 0xfe7   :  { %v3013_v42 = vmax.f32 %v2983_v59, %v3005_v34  ;;  %v2993_v8 = vadd.f32 %v2992_v40, %v11253_v29  ;;  %8360 = vmatprep.subr.bf16.mxu1 %v8359_v57  ;;  %v11255_v59 = vld [vmem:[#allocation10_spill] sm:$0xff] }
 0xfe8   :  { %v3008_v52 = vmul.f32 0.01, %v2998_v41  ;;  %8362 = vmatpush3.bf16.msra.mxu1 %v8359_v57 }
 0xfe9   :  { %v3007_v38 = vmul.f32 0.01, %v2993_v8  ;;  %v8363_v47 = vpack.c.bf16 %v3014_v56, %v3013_v42  ;;  %v11256_v42 = vld [vmem:[#allocation7_spill] sm:$0xff] }
 0xfea   :  { %v3016_v31 = vmax.f32 %v2998_v41, %v3008_v52 }
 0xfeb   :  { %v3015_v9 = vmax.f32 %v2993_v8, %v3007_v38  ;;  %8364 = vmatprep.subr.bf16.mxu1 %v8363_v47  ;;  %v11257_v8 = vld [vmem:[#allocation12_spill] sm:$0xff]  ;;  %v11258_v38 = vld [vmem:[#allocation11_spill] sm:$0xff] }
 0xfec   :  { %8366 = vmatpush3.bf16.msra.mxu1 %v8363_v47  ;;  %v11259_v47 = vld [vmem:[#allocation16_spill] sm:$0xff] }
 0xfed   :  { %v8367_v24 = vpack.c.bf16 %v3016_v31, %v3015_v9  ;;  %v11260_v9 = vld [vmem:[#allocation9_spill] sm:$0xff] }
 0xfef   :  { %8368 = vmatprep.subr.bf16.mxu1 %v8367_v24 }
 0xff0   :  { %8370 = vmatpush3.bf16.msra.mxu1 %v8367_v24 }
 0xff3   :  { %7797 = vmatmul.mubr.msk.f32.vlgmr.msra.gmra.mrb[58].mxu1 %vm320_vm4, %v10472_v58 }
 0xff4   :  { %7807 = vmatprep.mubr.msk.f32.mxu1 %vm3216_vm5, %v3188_v26  ;;  %v11261_v26 = vld [vmem:[#allocation14_spill] sm:$0xff] }
0x10c6   :  { %v7798_v43 = vpop.f32.mrb[58].mxu1 }
0x10c7   :  { %v3103_v54 = vpop.f32.mrb[59].mxu1  ;;  %v3109_v35 = vadd.f32 %v7798_v43, %v11255_v59 }
0x10c8   :  { %v3104_v62 = vadd.f32 %v3103_v54, %v11254_v22  ;;  %v11262_v54 = vld [vmem:[#allocation13_spill] sm:$0xff] }
0x10c9   :  { %v3113_v34 = vsub.f32 %v10331_v39, %v3109_v35 }
0x10ca   :  { %8595 = vtanh.f32 %v3104_v62  ;;  %v11263_v62 = vld [vmem:[#allocation18_spill] sm:$0xff] }
0x10d4   :  { %v8596_v27 = vpop.eup %8595 }
0x10d5   :  { %v3114_v0 = vsub.f32 0.0, %v8596_v27 }
0x10d7   :  { %v3115_v23 = vmul.f32 1.442695, %v3114_v0 }
0x10d9   :  { %8597 = vpow2.f32 %v3115_v23 }
0x10e3   :  { %v8598_v33 = vpop.eup %8597 }
0x10e4   :  { %v3117_v57 = vmul.f32 %v8598_v33, %v3113_v34 }
0x10e6   :  { %v3118_v56 = vsel %vm53_vm1, %v10331_v39, %v3117_v57 }
0x10e7   :  { %8599 = vtanh.f32 %v3118_v56 }
0x10f1   :  { %v10489_v41 = vpop.eup %8599 }
0x10f2   :  { %v3147_v40 = vrot.slane %v10489_v41, %v10487_v13  ;;  %3372 = vst [vmem:[%s10992_s15] sm:$0x1] %v10489_v41 }
0x10f4   :  { %v3148_v29 = vmul.f32 %v3147_v40, %v11256_v42  ;;  %v3149_v52 = vmul.f32 %v3147_v40, %v11257_v8  ;;  %v3150_v39 = vmul.f32 %v3147_v40, %v11258_v38  ;;  %v3151_v31 = vmul.f32 %v3147_v40, %v11259_v47  ;;  %v3189_v40 = vld [vmem:[%s10991_s10 + $0x8] sm:$0xff] }
0x10f6   :  { %v3176_v24 = vadd.f32 %v11260_v9, %v3148_v29  ;;  %v3177_v43 = vadd.f32 %v11261_v26, %v3149_v52  ;;  %v3178_v22 = vadd.f32 %v11262_v54, %v3150_v39  ;;  %v3179_v27 = vadd.f32 %v11263_v62, %v3151_v31  ;;  %v3190_v29 = vld [vmem:[%s10991_s10 + $0x10] sm:$0xff]  ;;  %v3191_v52 = vld [vmem:[%s10991_s10 + $0x18] sm:$0xff]  ;;  %v11265_v9 = vld [vmem:[#allocation15_spill] sm:$0xff] }
0x10f7   :  { %v11264_v39 = vld [vmem:[#allocation20_spill] sm:$0xff]  ;;  %v11266_v62 = vld [vmem:[#allocation22_spill] sm:$0xff] }
0x10f8   :  { %v3180_v0 = vmul.f32 0.01, %v3176_v24  ;;  %v3181_v23 = vmul.f32 0.01, %v3177_v43  ;;  %v3182_v59 = vmul.f32 0.01, %v3178_v22 }
0x10f9   :  { %v3183_v35 = vmul.f32 0.01, %v3179_v27 }
0x10fa   :  { %v3184_v34 = vmax.f32 %v3176_v24, %v3180_v0  ;;  %v3185_v33 = vmax.f32 %v3177_v43, %v3181_v23  ;;  %v3186_v57 = vmax.f32 %v3178_v22, %v3182_v59  ;;  %v11267_v59 = vld [vmem:[#allocation17_spill] sm:$0xff] }
0x10fb   :  { %v3187_v56 = vmax.f32 %v3179_v27, %v3183_v35 }
0x10fc   :  { %v8371_v42 = vpack.c.bf16 %v3185_v33, %v3184_v34  ;;  %v11268_v34 = vld [vmem:[#allocation21_spill] sm:$0xff] }
0x10fd   :  { %v8375_v8 = vpack.c.bf16 %v3187_v56, %v3186_v57 }
0x10fe   :  { %8372 = vmatprep.subr.bf16.mxu1 %v8371_v42 }
0x10ff   :  { %8374 = vmatpush3.bf16.msra.mxu1 %v8371_v42 }
0x1100   :  { %8376 = vmatprep.subr.bf16.mxu1 %v8375_v8 }
0x1103   :  { %8378 = vmatpush3.bf16.msra.mxu1 %v8375_v8 }
0x1106   :  { %7808 = vmatmul.mubr.msk.f32.vlgmr.msra.gmra.mrb[60].mxu1 %vm3216_vm5, %v3189_v40 }
0x1107   :  { %7810 = vmatprep.mubr.msk.f32.mxu1 %vm3216_vm5, %v3190_v29 }
0x110a   :  { %7811 = vmatmul.mubr.msk.f32.gmra.mrb[62].mxu1 %vm3216_vm5, %v3191_v52  ;;  %v11270_v52 = vld [vmem:[#allocation83_spill] sm:$0xff] }
0x110b   :  { %7843 = vmatprep.mubr.msk.f32.mxu1 %vm320_vm4, %v10391_v28  ;;  %v11269_v28 = vld [vmem:[#allocation19_spill] sm:$0xff] }
0x11d9   :  { %v7809_v38 = vpop.f32.mrb[60].mxu1 }
0x11da   :  { %v3301_v47 = vadd.f32 %v7809_v38, %v11264_v39  ;;  %v3295_v31 = vpop.f32.mrb[61].mxu1  ;;  %v11271_v39 = vld [vmem:[#allocation84_spill] sm:$0xff] }
0x11db   :  { %v3296_v24 = vadd.f32 %v3295_v31, %v11265_v9 }
0x11dc   :  { %v3315_v26 = vmul.f32 0.01, %v3301_v47 }
0x11dd   :  { %v3314_v43 = vmul.f32 0.01, %v3296_v24  ;;  %v7812_v54 = vpop.f32.mrb[62].mxu1 }
0x11de   :  { %v3319_v22 = vmax.f32 %v3301_v47, %v3315_v26  ;;  %v3311_v27 = vadd.f32 %v7812_v54, %v11266_v62  ;;  %v3305_v0 = vpop.f32.mrb[63].mxu1 }
0x11df   :  { %v3318_v23 = vmax.f32 %v3296_v24, %v3314_v43  ;;  %v3306_v35 = vadd.f32 %v3305_v0, %v11267_v59 }
0x11e0   :  { %v3347_v33 = vmul.f32 %v11268_v34, %v3319_v22  ;;  %v3317_v57 = vmul.f32 0.01, %v3311_v27  ;;  %v11272_v22 = vld [vmem:[#allocation85_spill] sm:$0xff] }
0x11e1   :  { %v3346_v56 = vmul.f32 %v11269_v28, %v3318_v23  ;;  %v3316_v42 = vmul.f32 0.01, %v3306_v35  ;;  %v3368_v0 = vrot.slane %v11272_v22, %v10487_v13 }
0x11e2   :  { %v3321_v40 = vmax.f32 %v3311_v27, %v3317_v57 }
0x11e3   :  { %v3350_v8 = vadd.f32 %v3347_v33, %v3346_v56  ;;  %v3320_v29 = vmax.f32 %v3306_v35, %v3316_v42  ;;  %v3378_v35 = vld [vmem:[%s10993_s1] sm:$0xff] }
0x11e4   :  { %v3349_v31 = vmul.f32 %v11271_v39, %v3321_v40 }
0x11e5   :  { %v3348_v38 = vmul.f32 %v11270_v52, %v3320_v29  ;;  %v11276_v52 = vld [vmem:[#allocation88_spill] sm:$0xff] }
0x11e7   :  { %v3351_v47 = vadd.f32 %v3350_v8, %v3348_v38 }
0x11e9   :  { %v3352_v9 = vadd.f32 %v3351_v47, %v3349_v31 }
0x11eb   :  { %v3353_v26 = vrot.slane %v3352_v9, 4 }
0x11ed   :  { %v3354_v54 = vadd.f32 %v3353_v26, %v3352_v9  ;;  %v11277_v9 = vld [vmem:[#allocation91_spill] sm:$0xff] }
0x11ef   :  { %v3355_v24 = vrot.slane %v3354_v54, 2 }
0x11f1   :  { %v3356_v43 = vadd.f32 %v3355_v24, %v3354_v54 }
0x11f3   :  { %v3357_v62 = vrot.slane %v3356_v43, 1 }
0x11f5   :  { %v3358_v59 = vadd.f32 %v3357_v62, %v3356_v43  ;;  %v11278_v43 = vld [vmem:[#allocation90_spill] sm:$0xff] }
0x11f7   :  { %v3369_v23 = vadd.f32 %v3368_v0, %v3358_v59 }
0x11f9   :  { %v3370_v34 = vadd.f32 %v10489_v41, %v3369_v23 }
0x11fb   :  { %8601 = vtanh.f32 %v3370_v34 }
0x1205   :  { %v8602_v27 = vpop.eup %8601 }
0x1206   :  { %3373 = vst [vmem:[%s10992_s15 + $0x1] sm:$0x1] %v8602_v27  ;;  %v3377_v33 = vrot.slane %v8602_v27, %v10487_v13  ;;  %v11279_v27 = vld [vmem:[#allocation37_spill] sm:$0xff] }
0x1208   :  { %v10538_v57 = vsel %vm55_vm6, %v3377_v33, %v3378_v35 }
0x1209   :  { %7813 = vmatprep.subr.msk.mxu0 %vm53_vm1, %v10538_v57 }
0x120a   :  { %7814 = vmatpush3.msk.msra.mxu0 %vm53_vm1, %v10538_v57 }
0x120b   :  { %7816 = vmatmul.mubr.msk.f32.vlgmr.msra.gmra.mrb[48].mxu0 %vm116_vm0, %v10336_v48 }
0x120c   :  { %7818 = vmatprep.mubr.msk.f32.mxu0 %vm116_vm0, %v10344_v15  ;;  %v11273_v15 = vld [vmem:[#allocation87_spill] sm:$0xff] }
0x120f   :  { %7819 = vmatmul.mubr.msk.f32.gmra.mrb[50].mxu0 %vm116_vm0, %v10356_v20  ;;  %v11274_v20 = vld [vmem:[#allocation86_spill] sm:$0xff] }
0x1210   :  { %7821 = vmatprep.mubr.msk.f32.mxu0 %vm116_vm0, %v10361_v18 }
0x1213   :  { %7822 = vmatmul.mubr.msk.f32.gmra.mrb[52].mxu0 %vm116_vm0, %v10370_v6  ;;  %v11275_v6 = vld [vmem:[#allocation89_spill] sm:$0xff] }
0x1214   :  { %7824 = vmatprep.mubr.msk.f32.mxu0 %vm116_vm0, %v10375_v46 }
0x1217   :  { %7825 = vmatmul.mubr.msk.f32.gmra.mrb[54].mxu0 %vm116_vm0, %v10384_v14 }
0x1218   :  { %7871 = vmatprep.mubr.msk.f32.mxu0 %vm320_vm4, %v10457_v16 }
0x12de   :  { %v7817_v48 = vpop.f32.mrb[48].mxu0 }
0x12df   :  { %v3533_v13 = vadd.f32 %v7817_v48, %v11273_v15  ;;  %v3527_v41 = vpop.f32.mrb[49].mxu0  ;;  %v11280_v15 = vld [vmem:[#allocation92_spill] sm:$0xff] }
0x12e0   :  { %v3528_v28 = vadd.f32 %v3527_v41, %v11274_v20 }
0x12e1   :  { %v3567_v56 = vmul.f32 0.01, %v3533_v13 }
0x12e2   :  { %v3566_v18 = vmul.f32 0.01, %v3528_v28  ;;  %v7820_v42 = vpop.f32.mrb[50].mxu0 }
0x12e3   :  { %v3575_v8 = vmax.f32 %v3533_v13, %v3567_v56  ;;  %v3543_v40 = vadd.f32 %v7820_v42, %v11275_v6  ;;  %v3537_v29 = vpop.f32.mrb[51].mxu0  ;;  %v11281_v6 = vld [vmem:[#allocation39_spill] sm:$0xff] }
0x12e4   :  { %v3574_v46 = vmax.f32 %v3528_v28, %v3566_v18  ;;  %v3538_v38 = vadd.f32 %v3537_v29, %v11276_v52  ;;  %v11282_v29 = vld [vmem:[#allocation38_spill] sm:$0xff] }
0x12e5   :  { %v3569_v14 = vmul.f32 0.01, %v3543_v40 }
0x12e6   :  { %v3568_v39 = vmul.f32 0.01, %v3538_v38  ;;  %v7823_v31 = vpop.f32.mrb[52].mxu0  ;;  %v8379_v16 = vpack.c.bf16 %v3575_v8, %v3574_v46  ;;  %v3611_v8 = vpop.permute.xlu1 %3610 }
0x12e7   :  { %v3577_v47 = vmax.f32 %v3543_v40, %v3569_v14  ;;  %v3553_v26 = vadd.f32 %v7823_v31, %v11277_v9  ;;  %v3547_v54 = vpop.f32.mrb[53].mxu0 }
0x12e8   :  { %v3576_v24 = vmax.f32 %v3538_v38, %v3568_v39  ;;  %v3548_v62 = vadd.f32 %v3547_v54, %v11278_v43  ;;  %8380 = vmatprep.subr.bf16.mxu1 %v8379_v16 }
0x12e9   :  { %v3571_v22 = vmul.f32 0.01, %v3553_v26  ;;  %8382 = vmatpush3.bf16.msra.mxu1 %v8379_v16 }
0x12ea   :  { %v3570_v0 = vmul.f32 0.01, %v3548_v62  ;;  %v7826_v59 = vpop.f32.mrb[54].mxu0  ;;  %v8383_v23 = vpack.c.bf16 %v3577_v47, %v3576_v24  ;;  %v3621_v16 = vpop.permute.xlu1 %3620 }
0x12eb   :  { %v3579_v34 = vmax.f32 %v3553_v26, %v3571_v22  ;;  %v3563_v35 = vadd.f32 %v7826_v59, %v11279_v27  ;;  %v3557_v33 = vpop.f32.mrb[55].mxu0 }
0x12ec   :  { %v3578_v48 = vmax.f32 %v3548_v62, %v3570_v0  ;;  %v3558_v13 = vadd.f32 %v3557_v33, %v11280_v15  ;;  %8384 = vmatprep.subr.bf16.mxu1 %v8383_v23 }
0x12ed   :  { %v3573_v41 = vmul.f32 0.01, %v3563_v35  ;;  %8386 = vmatpush3.bf16.msra.mxu1 %v8383_v23 }
0x12ee   :  { %v3572_v20 = vmul.f32 0.01, %v3558_v13  ;;  %v8387_v28 = vpack.c.bf16 %v3579_v34, %v3578_v48 }
0x12ef   :  { %v3581_v56 = vmax.f32 %v3563_v35, %v3573_v41  ;;  %v3631_v35 = vpop.permute.xlu1 %3630 }
0x12f0   :  { %v3580_v18 = vmax.f32 %v3558_v13, %v3572_v20  ;;  %8388 = vmatprep.subr.bf16.mxu1 %v8387_v28 }
0x12f1   :  { %8390 = vmatpush3.bf16.msra.mxu1 %v8387_v28 }
0x12f2   :  { %v8391_v42 = vpack.c.bf16 %v3581_v56, %v3580_v18 }
0x12f4   :  { %8392 = vmatprep.subr.bf16.mxu1 %v8391_v42 }
0x12f5   :  { %8394 = vmatpush3.bf16.msra.mxu1 %v8391_v42 }
0x12f8   :  { %7844 = vmatmul.mubr.msk.f32.vlgmr.msra.gmra.mrb[64].mxu1 %vm320_vm4, %v10406_v10  ;;  %v3616_v10 = vpop.permute.xlu0 %3615 }
0x12f9   :  { %7846 = vmatprep.mubr.msk.f32.mxu1 %vm320_vm4, %v10411_v60 }
0x12fc   :  { %7847 = vmatmul.mubr.msk.f32.gmra.mrb[66].mxu1 %vm320_vm4, %v10420_v50  ;;  %v3626_v39 = vpop.permute.xlu0 %3625 }
0x12fd   :  { %7849 = vmatprep.mubr.msk.f32.mxu1 %vm320_vm4, %v10425_v55 }
0x1300   :  { %7850 = vmatmul.mubr.msk.f32.gmra.mrb[68].mxu1 %vm320_vm4, %v10434_v45  ;;  %v3636_v59 = vpop.permute.xlu0 %3635 }
0x1301   :  { %7852 = vmatprep.mubr.msk.f32.mxu1 %vm320_vm4, %v10439_v2 }
0x1304   :  { %7853 = vmatmul.mubr.msk.f32.gmra.mrb[70].mxu1 %vm320_vm4, %v10448_v53 }
0x1305   :  { %7904 = vmatprep.mubr.msk.f32.mxu1 %vm320_vm4, %v10235_v19 }
0x13cb   :  { %v7845_v60 = vpop.f32.mrb[64].mxu1 }
0x13cc   :  { %v3734_v50 = vadd.f32 %v7845_v60, %v11281_v6  ;;  %v3728_v40 = vpop.f32.mrb[65].mxu1 }
0x13cd   :  { %v3729_v55 = vadd.f32 %v3728_v40, %v11282_v29 }
0x13ce   :  { %v3768_v46 = vmul.f32 0.01, %v3734_v50 }
0x13cf   :  { %v3767_v52 = vmul.f32 0.01, %v3729_v55  ;;  %v7848_v45 = vpop.f32.mrb[66].mxu1 }
0x13d0   :  { %v3776_v38 = vmax.f32 %v3734_v50, %v3768_v46  ;;  %v3744_v14 = vadd.f32 %v7848_v45, %v3616_v10  ;;  %v3738_v2 = vpop.f32.mrb[67].mxu1  ;;  %v3795_v46 = vpop.permute.xlu0 %3794 }
0x13d1   :  { %v3775_v31 = vmax.f32 %v3729_v55, %v3767_v52  ;;  %v3739_v53 = vadd.f32 %v3738_v2, %v3611_v8  ;;  %v3790_v8 = vpop.permute.xlu1 %3789 }
0x13d2   :  { %v3770_v47 = vmul.f32 0.01, %v3744_v14 }
0x13d3   :  { %v3769_v19 = vmul.f32 0.01, %v3739_v53  ;;  %v7851_v9 = vpop.f32.mrb[68].mxu1  ;;  %v8395_v26 = vpack.c.bf16 %v3776_v38, %v3775_v31 }
0x13d4   :  { %v3778_v54 = vmax.f32 %v3744_v14, %v3770_v47  ;;  %v3754_v24 = vadd.f32 %v7851_v9, %v3626_v39  ;;  %v3748_v43 = vpop.f32.mrb[69].mxu1 }
0x13d5   :  { %v3777_v62 = vmax.f32 %v3739_v53, %v3769_v19  ;;  %v3749_v22 = vadd.f32 %v3748_v43, %v3621_v16  ;;  %8396 = vmatprep.subr.bf16.mxu0 %v8395_v26 }
0x13d6   :  { %v3772_v0 = vmul.f32 0.01, %v3754_v24  ;;  %8398 = vmatpush3.bf16.msra.mxu0 %v8395_v26 }
0x13d7   :  { %v3771_v23 = vmul.f32 0.01, %v3749_v22  ;;  %v7854_v34 = vpop.f32.mrb[70].mxu1  ;;  %v8399_v27 = vpack.c.bf16 %v3778_v54, %v3777_v62 }
0x13d8   :  { %v3780_v33 = vmax.f32 %v3754_v24, %v3772_v0  ;;  %v3764_v48 = vadd.f32 %v7854_v34, %v3636_v59  ;;  %v3758_v15 = vpop.f32.mrb[71].mxu1 }
0x13d9   :  { %v3779_v13 = vmax.f32 %v3749_v22, %v3771_v23  ;;  %v3759_v41 = vadd.f32 %v3758_v15, %v3631_v35  ;;  %8400 = vmatprep.subr.bf16.mxu0 %v8399_v27 }
0x13da   :  { %v3774_v20 = vmul.f32 0.01, %v3764_v48  ;;  %8402 = vmatpush3.bf16.msra.mxu0 %v8399_v27 }
0x13db   :  { %v3773_v28 = vmul.f32 0.01, %v3759_v41  ;;  %v8403_v56 = vpack.c.bf16 %v3780_v33, %v3779_v13 }
0x13dc   :  { %v3782_v18 = vmax.f32 %v3764_v48, %v3774_v20 }
0x13dd   :  { %v3781_v42 = vmax.f32 %v3759_v41, %v3773_v28  ;;  %8404 = vmatprep.subr.bf16.mxu0 %v8403_v56 }
0x13de   :  { %8406 = vmatpush3.bf16.msra.mxu0 %v8403_v56 }
0x13df   :  { %v8407_v10 = vpack.c.bf16 %v3782_v18, %v3781_v42 }
0x13e1   :  { %8408 = vmatprep.subr.bf16.mxu0 %v8407_v10 }
0x13e2   :  { %8410 = vmatpush3.bf16.msra.mxu0 %v8407_v10 }
0x13e5   :  { %7872 = vmatmul.mubr.msk.f32.vlgmr.msra.gmra.mrb[56].mxu0 %vm320_vm4, %v10472_v58 }
0x13e6   :  { %7876 = vmatprep.mubr.msk.f32.mxu0 %vm116_vm0, %v10165_v17  ;;  %v3909_v17 = vpop.permute.xlu0 %3908 }
0x14b8   :  { %v7873_v60 = vpop.f32.mrb[56].mxu0 }
0x14b9   :  { %v3869_v6 = vpop.f32.mrb[57].mxu0  ;;  %v3875_v52 = vadd.f32 %v7873_v60, %v3795_v46 }
0x14ba   :  { %v3870_v50 = vadd.f32 %v3869_v6, %v3790_v8 }
0x14bc   :  { %8603 = vtanh.f32 %v3870_v50 }
0x14c6   :  { %v8604_v40 = vpop.eup %8603 }
0x14c7   :  { %v3879_v29 = vmul.f32 1.442695, %v8604_v40 }
0x14c9   :  { %8605 = vpow2.f32 %v3879_v29 }
0x14d3   :  { %v8606_v55 = vpop.eup %8605 }
0x14d4   :  { %v3881_v45 = vmul.f32 %v8606_v55, %v10538_v57 }
0x14d6   :  { %v3882_v38 = vadd.f32 %v3881_v45, %v3875_v52 }
0x14d8   :  { %v10596_v58 = vsel %vm53_vm1, %v10538_v57, %v3882_v38 }
0x14d9   :  { %7874 = vmatprep.subr.msk.mxu0 %vm8734_vm3, %v10596_v58 }
0x14da   :  { %7875 = vmatpush3.msk.msra.mxu0 %vm8734_vm3, %v10596_v58 }
0x14db   :  { %7877 = vmatmul.mubr.msk.f32.vlgmr.msra.gmra.mrb[58].mxu0 %vm116_vm0, %v10180_v63  ;;  %v3904_v63 = vpop.permute.xlu1 %3903 }
0x14dc   :  { %7879 = vmatprep.mubr.msk.f32.mxu0 %vm116_vm0, %v10188_v61  ;;  %v3919_v61 = vpop.permute.xlu0 %3918 }
0x14df   :  { %7880 = vmatmul.mubr.msk.f32.gmra.mrb[60].mxu0 %vm116_vm0, %v10200_v37  ;;  %v3914_v37 = vpop.permute.xlu1 %3913 }
0x14e0   :  { %7882 = vmatprep.mubr.msk.f32.mxu0 %vm116_vm0, %v10205_v36  ;;  %v3929_v47 = vpop.permute.xlu0 %3928 }
0x14e3   :  { %7883 = vmatmul.mubr.msk.f32.gmra.mrb[62].mxu0 %vm116_vm0, %v10214_v11  ;;  %v3924_v9 = vpop.permute.xlu1 %3923 }
0x14e4   :  { %7885 = vmatprep.mubr.msk.f32.mxu0 %vm116_vm0, %v10219_v25  ;;  %v3939_v34 = vpop.permute.xlu0 %3938 }
0x14e7   :  { %7886 = vmatmul.mubr.msk.f32.gmra.mrb[64].mxu0 %vm116_vm0, %v10228_v12  ;;  %v3934_v48 = vpop.permute.xlu1 %3933 }
0x14e8   :  { %7932 = vmatprep.mubr.msk.f32.mxu0 %vm320_vm4, %v10299_v4  ;;  %v4110_v6 = vpop.permute.xlu0 %4109 }
0x14ec   :  { %v4120_v50 = vpop.permute.xlu0 %4119 }
0x15ae   :  { %v7878_v57 = vpop.f32.mrb[58].mxu0 }
0x15af   :  { %v4037_v14 = vadd.f32 %v7878_v57, %v3909_v17  ;;  %v4031_v2 = vpop.f32.mrb[59].mxu0  ;;  %v4130_v17 = vpop.permute.xlu0 %4129 }
0x15b0   :  { %v4032_v36 = vadd.f32 %v4031_v2, %v3904_v63 }
0x15b1   :  { %v4071_v39 = vmul.f32 0.01, %v4037_v14 }
0x15b2   :  { %v4070_v31 = vmul.f32 0.01, %v4032_v36  ;;  %v7881_v11 = vpop.f32.mrb[60].mxu0 }
0x15b3   :  { %v4079_v53 = vmax.f32 %v4037_v14, %v4071_v39  ;;  %v4047_v16 = vadd.f32 %v7881_v11, %v3919_v61  ;;  %v4041_v25 = vpop.f32.mrb[61].mxu0 }
0x15b4   :  { %v4078_v19 = vmax.f32 %v4032_v36, %v4070_v31  ;;  %v4042_v12 = vadd.f32 %v4041_v25, %v3914_v37 }
0x15b5   :  { %v4073_v26 = vmul.f32 0.01, %v4047_v16 }
0x15b6   :  { %v4072_v4 = vmul.f32 0.01, %v4042_v12  ;;  %v7884_v54 = vpop.f32.mrb[62].mxu0  ;;  %v8411_v24 = vpack.c.bf16 %v4079_v53, %v4078_v19 }
0x15b7   :  { %v4081_v43 = vmax.f32 %v4047_v16, %v4073_v26  ;;  %v4057_v62 = vadd.f32 %v7884_v54, %v3929_v47  ;;  %v4051_v22 = vpop.f32.mrb[63].mxu0  ;;  %v4140_v16 = vpop.permute.xlu0 %4139 }
0x15b8   :  { %v4080_v0 = vmax.f32 %v4042_v12, %v4072_v4  ;;  %v4052_v59 = vadd.f32 %v4051_v22, %v3924_v9  ;;  %8412 = vmatprep.subr.bf16.mxu1 %v8411_v24 }
0x15b9   :  { %v4075_v23 = vmul.f32 0.01, %v4057_v62  ;;  %8414 = vmatpush3.bf16.msra.mxu1 %v8411_v24 }
0x15ba   :  { %v4074_v27 = vmul.f32 0.01, %v4052_v59  ;;  %v7887_v35 = vpop.f32.mrb[64].mxu0  ;;  %v8415_v33 = vpack.c.bf16 %v4081_v43, %v4080_v0 }
0x15bb   :  { %v4083_v15 = vmax.f32 %v4057_v62, %v4075_v23  ;;  %v4067_v13 = vadd.f32 %v7887_v35, %v3939_v34  ;;  %v4061_v41 = vpop.f32.mrb[65].mxu0  ;;  %v6785_v34 = vld [vmem:[%s10980_s2 + $0x80] sm:$0xff] }
0x15bc   :  { %v4082_v20 = vmax.f32 %v4052_v59, %v4074_v27  ;;  %v4062_v28 = vadd.f32 %v4061_v41, %v3934_v48  ;;  %8416 = vmatprep.subr.bf16.mxu1 %v8415_v33 }
0x15bd   :  { %v4077_v56 = vmul.f32 0.01, %v4067_v13  ;;  %8418 = vmatpush3.bf16.msra.mxu1 %v8415_v33 }
0x15be   :  { %v4076_v18 = vmul.f32 0.01, %v4062_v28  ;;  %v8419_v42 = vpack.c.bf16 %v4083_v15, %v4082_v20  ;;  %v4299_v20 = vpop.permute.xlu0 %4298 }
0x15bf   :  { %v4085_v10 = vmax.f32 %v4067_v13, %v4077_v56 }
0x15c0   :  { %v4084_v60 = vmax.f32 %v4062_v28, %v4076_v18  ;;  %8420 = vmatprep.subr.bf16.mxu1 %v8419_v42 }
0x15c1   :  { %8422 = vmatpush3.bf16.msra.mxu1 %v8419_v42  ;;  %v6786_v42 = vld [vmem:[%s10980_s2 + $0x88] sm:$0xff] }
0x15c2   :  { %v8423_v8 = vpack.c.bf16 %v4085_v10, %v4084_v60  ;;  %v6787_v10 = vld [vmem:[%s10980_s2 + $0x90] sm:$0xff]  ;;  %v6789_v60 = vld [vmem:[%s10980_s2 + $0xa0] sm:$0xff] }
0x15c4   :  { %8424 = vmatprep.subr.bf16.mxu1 %v8423_v8 }
0x15c5   :  { %8426 = vmatpush3.bf16.msra.mxu1 %v8423_v8  ;;  %v6790_v8 = vld [vmem:[%s10980_s2 + $0xa8] sm:$0xff] }
0x15c8   :  { %7905 = vmatmul.mubr.msk.f32.vlgmr.msra.gmra.mrb[72].mxu1 %vm320_vm4, %v10250_v49  ;;  %v4105_v49 = vpop.permute.xlu1 %4104 }
0x15c9   :  { %7907 = vmatprep.mubr.msk.f32.mxu1 %vm320_vm4, %v10255_v51 }
0x15cc   :  { %7908 = vmatmul.mubr.msk.f32.gmra.mrb[74].mxu1 %vm320_vm4, %v10264_v7  ;;  %v4115_v51 = vpop.permute.xlu1 %4114 }
0x15cd   :  { %7910 = vmatprep.mubr.msk.f32.mxu1 %vm320_vm4, %v10269_v21 }
0x15d0   :  { %7911 = vmatmul.mubr.msk.f32.gmra.mrb[76].mxu1 %vm320_vm4, %v10278_v32  ;;  %v4125_v61 = vpop.permute.xlu1 %4124 }
0x15d1   :  { %7913 = vmatprep.mubr.msk.f32.mxu1 %vm320_vm4, %v10283_v30 }
0x15d4   :  { %7914 = vmatmul.mubr.msk.f32.gmra.mrb[78].mxu1 %vm320_vm4, %v10292_v5  ;;  %v4135_v12 = vpop.permute.xlu1 %4134 }
0x15d8   :  { %v4294_v35 = vpop.permute.xlu1 %4293 }
0x169b   :  { %v7906_v40 = vpop.f32.mrb[72].mxu1 }
0x169c   :  { %v4238_v29 = vadd.f32 %v7906_v40, %v4110_v6  ;;  %v4232_v55 = vpop.f32.mrb[73].mxu1  ;;  %v6791_v6 = vld [vmem:[%s10980_s2 + $0xb0] sm:$0xff]  ;;  %v4413_v40 = vpop.permute.xlu0 %4412 }
0x169d   :  { %v4233_v7 = vadd.f32 %v4232_v55, %v4105_v49  ;;  %v6792_v49 = vld [vmem:[%s10980_s2 + $0xb8] sm:$0xff] }
0x169e   :  { %v4272_v46 = vmul.f32 0.01, %v4238_v29 }
0x169f   :  { %v4271_v52 = vmul.f32 0.01, %v4233_v7  ;;  %v7909_v21 = vpop.f32.mrb[74].mxu1 }
0x16a0   :  { %v4280_v45 = vmax.f32 %v4238_v29, %v4272_v46  ;;  %v4248_v38 = vadd.f32 %v7909_v21, %v4120_v50  ;;  %v4242_v32 = vpop.f32.mrb[75].mxu1  ;;  %v6810_v50 = vld [vmem:[%s10985_s4 + $0x80] sm:$0xff]  ;;  %v4423_v29 = vpop.permute.xlu0 %4422 }
0x16a1   :  { %v4279_v63 = vmax.f32 %v4233_v7, %v4271_v52  ;;  %v4243_v30 = vadd.f32 %v4242_v32, %v4115_v51  ;;  %7965 = vmatprep.mubr.msk.f32.mxu1 %vm320_vm4, %v6810_v50  ;;  %v4408_v51 = vpop.permute.xlu1 %4407 }
0x16a2   :  { %v4274_v57 = vmul.f32 0.01, %v4248_v38 }
0x16a3   :  { %v4273_v5 = vmul.f32 0.01, %v4243_v30  ;;  %v7912_v37 = vpop.f32.mrb[76].mxu1  ;;  %v8427_v14 = vpack.c.bf16 %v4280_v45, %v4279_v63 }
0x16a4   :  { %v4282_v2 = vmax.f32 %v4248_v38, %v4274_v57  ;;  %v4258_v36 = vadd.f32 %v7912_v37, %v4130_v17  ;;  %v4252_v39 = vpop.f32.mrb[77].mxu1 }
0x16a5   :  { %v4281_v31 = vmax.f32 %v4243_v30, %v4273_v5  ;;  %v4253_v11 = vadd.f32 %v4252_v39, %v4125_v61  ;;  %8428 = vmatprep.subr.bf16.mxu0 %v8427_v14  ;;  %v4418_v7 = vpop.permute.xlu1 %4417  ;;  %v4433_v61 = vpop.permute.xlu0 %4432 }
0x16a6   :  { %v4276_v53 = vmul.f32 0.01, %v4258_v36  ;;  %8430 = vmatpush3.bf16.msra.mxu0 %v8427_v14 }
0x16a7   :  { %v4275_v25 = vmul.f32 0.01, %v4253_v11  ;;  %v7915_v47 = vpop.f32.mrb[78].mxu1  ;;  %v8431_v19 = vpack.c.bf16 %v4282_v2, %v4281_v31 }
0x16a8   :  { %v4284_v9 = vmax.f32 %v4258_v36, %v4276_v53  ;;  %v4268_v26 = vadd.f32 %v7915_v47, %v4140_v16  ;;  %v4262_v4 = vpop.f32.mrb[79].mxu1 }
0x16a9   :  { %v4283_v54 = vmax.f32 %v4253_v11, %v4275_v25  ;;  %v4263_v24 = vadd.f32 %v4262_v4, %v4135_v12  ;;  %8432 = vmatprep.subr.bf16.mxu0 %v8431_v19  ;;  %v4428_v37 = vpop.permute.xlu1 %4427 }
0x16aa   :  { %v4278_v43 = vmul.f32 0.01, %v4268_v26  ;;  %8434 = vmatpush3.bf16.msra.mxu0 %v8431_v19  ;;  %v4443_v19 = vpop.permute.xlu0 %4442 }
0x16ab   :  { %v4277_v62 = vmul.f32 0.01, %v4263_v24  ;;  %v8435_v22 = vpack.c.bf16 %v4284_v9, %v4283_v54 }
0x16ac   :  { %v4286_v0 = vmax.f32 %v4268_v26, %v4278_v43 }
0x16ad   :  { %v4285_v59 = vmax.f32 %v4263_v24, %v4277_v62  ;;  %8436 = vmatprep.subr.bf16.mxu0 %v8435_v22  ;;  %v4438_v4 = vpop.permute.xlu1 %4437 }
0x16ae   :  { %8438 = vmatpush3.bf16.msra.mxu0 %v8435_v22 }
0x16af   :  { %v8439_v23 = vpack.c.bf16 %v4286_v0, %v4285_v59 }
0x16b1   :  { %8440 = vmatprep.subr.bf16.mxu0 %v8439_v23 }
0x16b2   :  { %8442 = vmatpush3.bf16.msra.mxu0 %v8439_v23 }
0x16b5   :  { %7933 = vmatmul.mubr.msk.f32.vlgmr.msra.gmra.mrb[66].mxu0 %vm320_vm4, %v10314_v1 }
0x16b6   :  { %7937 = vmatprep.mubr.msk.f32.mxu0 %vm116_vm0, %v6785_v34 }
0x1788   :  { %v7934_v27 = vpop.f32.mrb[66].mxu0 }
0x1789   :  { %v4373_v33 = vpop.f32.mrb[67].mxu0  ;;  %v4379_v28 = vadd.f32 %v7934_v27, %v4299_v20  ;;  %v6816_v20 = vld [vmem:[%s10985_s4 + $0xb0] sm:$0xff] }
0x178a   :  { %v4374_v48 = vadd.f32 %v4373_v33, %v4294_v35  ;;  %v6811_v33 = vld [vmem:[%s10985_s4 + $0x88] sm:$0xff] }
0x178c   :  { %8607 = vtanh.f32 %v4374_v48  ;;  %v6812_v48 = vld [vmem:[%s10985_s4 + $0x90] sm:$0xff] }
0x1796   :  { %v8608_v15 = vpop.eup %8607 }
0x1797   :  { %v4383_v13 = vmul.f32 1.442695, %v8608_v15  ;;  %v6813_v15 = vld [vmem:[%s10985_s4 + $0x98] sm:$0xff] }
0x1799   :  { %8609 = vpow2.f32 %v4383_v13  ;;  %v6814_v13 = vld [vmem:[%s10985_s4 + $0xa0] sm:$0xff] }
0x17a3   :  { %v8610_v41 = vpop.eup %8609 }
0x17a4   :  { %v4385_v56 = vmul.f32 %v8610_v41, %v10596_v58  ;;  %v6815_v41 = vld [vmem:[%s10985_s4 + $0xa8] sm:$0xff] }
0x17a6   :  { %v4386_v1 = vadd.f32 %v4385_v56, %v4379_v28  ;;  %v6817_v28 = vld [vmem:[%s10985_s4 + $0xb8] sm:$0xff]  ;;  %v6834_v56 = vld [vmem:[%s10990_s6 + $0x20] sm:$0xff] }
0x17a8   :  { %v10644_v18 = vsel %vm8734_vm3, %v10596_v58, %v4386_v1  ;;  %v6788_v58 = vld [vmem:[%s10980_s2 + $0x98] sm:$0xff]  ;;  %v4614_v1 = vpop.permute.xlu0 %4613 }
0x17a9   :  { %7935 = vmatprep.subr.msk.mxu0 %vm53_vm1, %v10644_v18 }
0x17aa   :  { %7936 = vmatpush3.msk.msra.mxu0 %vm53_vm1, %v10644_v18 }
0x17ab   :  { %7938 = vmatmul.mubr.msk.f32.vlgmr.msra.gmra.mrb[68].mxu0 %vm116_vm0, %v6786_v42  ;;  %v4609_v42 = vpop.permute.xlu1 %4608 }
0x17ac   :  { %7940 = vmatprep.mubr.msk.f32.mxu0 %vm116_vm0, %v6787_v10  ;;  %v4624_v10 = vpop.permute.xlu0 %4623 }
0x17af   :  { %7941 = vmatmul.mubr.msk.f32.gmra.mrb[70].mxu0 %vm116_vm0, %v6788_v58 }
0x17b0   :  { %7943 = vmatprep.mubr.msk.f32.mxu0 %vm116_vm0, %v6789_v60  ;;  %v4619_v60 = vpop.permute.xlu1 %4618 }
0x17b3   :  { %7944 = vmatmul.mubr.msk.f32.gmra.mrb[72].mxu0 %vm116_vm0, %v6790_v8 }
0x17b4   :  { %7946 = vmatprep.mubr.msk.f32.mxu0 %vm116_vm0, %v6791_v6 }
0x17b7   :  { %7947 = vmatmul.mubr.msk.f32.gmra.mrb[74].mxu0 %vm116_vm0, %v6792_v49 }
0x17b8   :  { %7993 = vmatprep.mubr.msk.f32.mxu0 %vm320_vm4, %v6834_v56  ;;  %v6844_v56 = vld [vmem:[%s10980_s2 + $0xe0] sm:$0xff] }
0x187e   :  { %v7939_v55 = vpop.f32.mrb[68].mxu0 }
0x187f   :  { %v4541_v46 = vadd.f32 %v7939_v55, %v4413_v40  ;;  %v4535_v52 = vpop.f32.mrb[69].mxu0 }
0x1880   :  { %v4536_v21 = vadd.f32 %v4535_v52, %v4408_v51 }
0x1881   :  { %v4575_v45 = vmul.f32 0.01, %v4541_v46 }
0x1882   :  { %v4574_v38 = vmul.f32 0.01, %v4536_v21  ;;  %v7942_v32 = vpop.f32.mrb[70].mxu0 }
0x1883   :  { %v4583_v17 = vmax.f32 %v4541_v46, %v4575_v45  ;;  %v4551_v63 = vadd.f32 %v7942_v32, %v4423_v29  ;;  %v4545_v30 = vpop.f32.mrb[71].mxu0  ;;  %v4634_v46 = vpop.permute.xlu0 %4633 }
0x1884   :  { %v4582_v57 = vmax.f32 %v4536_v21, %v4574_v38  ;;  %v4546_v5 = vadd.f32 %v4545_v30, %v4418_v7  ;;  %v4629_v45 = vpop.permute.xlu1 %4628 }
0x1885   :  { %v4577_v14 = vmul.f32 0.01, %v4551_v63 }
0x1886   :  { %v4576_v2 = vmul.f32 0.01, %v4546_v5  ;;  %v7945_v36 = vpop.f32.mrb[72].mxu0  ;;  %v8443_v39 = vpack.c.bf16 %v4583_v17, %v4582_v57 }
0x1887   :  { %v4585_v31 = vmax.f32 %v4551_v63, %v4577_v14  ;;  %v4561_v11 = vadd.f32 %v7945_v36, %v4433_v61  ;;  %v4555_v53 = vpop.f32.mrb[73].mxu0 }
0x1888   :  { %v4584_v16 = vmax.f32 %v4546_v5, %v4576_v2  ;;  %v4556_v25 = vadd.f32 %v4555_v53, %v4428_v37  ;;  %8444 = vmatprep.subr.bf16.mxu1 %v8443_v39  ;;  %v4644_v2 = vpop.permute.xlu0 %4643 }
0x1889   :  { %v4579_v47 = vmul.f32 0.01, %v4561_v11  ;;  %8446 = vmatpush3.bf16.msra.mxu1 %v8443_v39 }
0x188a   :  { %v4578_v12 = vmul.f32 0.01, %v4556_v25  ;;  %v7948_v9 = vpop.f32.mrb[74].mxu0  ;;  %v8447_v26 = vpack.c.bf16 %v4585_v31, %v4584_v16 }
0x188b   :  { %v4587_v54 = vmax.f32 %v4561_v11, %v4579_v47  ;;  %v4571_v24 = vadd.f32 %v7948_v9, %v4443_v19  ;;  %v4565_v43 = vpop.f32.mrb[75].mxu0  ;;  %v4639_v11 = vpop.permute.xlu1 %4638 }
0x188c   :  { %v4586_v62 = vmax.f32 %v4556_v25, %v4578_v12  ;;  %v4566_v22 = vadd.f32 %v4565_v43, %v4438_v4  ;;  %8448 = vmatprep.subr.bf16.mxu1 %v8447_v26  ;;  %v6835_v43 = vld [vmem:[%s10990_s6 + $0x28] sm:$0xff] }
0x188d   :  { %v4581_v0 = vmul.f32 0.01, %v4571_v24  ;;  %8450 = vmatpush3.bf16.msra.mxu1 %v8447_v26 }
0x188e   :  { %v4580_v59 = vmul.f32 0.01, %v4566_v22  ;;  %v8451_v23 = vpack.c.bf16 %v4587_v54, %v4586_v62  ;;  %v6840_v62 = vld [vmem:[%s10980_s2 + $0xc0] sm:$0xff] }
0x188f   :  { %v4589_v34 = vmax.f32 %v4571_v24, %v4581_v0  ;;  %v4798_v0 = vpop.permute.xlu1 %4797 }
0x1890   :  { %v4588_v27 = vmax.f32 %v4566_v22, %v4580_v59  ;;  %8452 = vmatprep.subr.bf16.mxu1 %v8451_v23 }
0x1891   :  { %8454 = vmatpush3.bf16.msra.mxu1 %v8451_v23 }
0x1892   :  { %v8455_v35 = vpack.c.bf16 %v4589_v34, %v4588_v27 }
0x1894   :  { %8456 = vmatprep.subr.bf16.mxu1 %v8455_v35 }
0x1895   :  { %8458 = vmatpush3.bf16.msra.mxu1 %v8455_v35 }
0x1898   :  { %7966 = vmatmul.mubr.msk.f32.vlgmr.msra.gmra.mrb[80].mxu1 %vm320_vm4, %v6811_v33  ;;  %v4803_v33 = vpop.permute.xlu0 %4802 }
0x1899   :  { %7968 = vmatprep.mubr.msk.f32.mxu1 %vm320_vm4, %v6812_v48 }
0x189c   :  { %7969 = vmatmul.mubr.msk.f32.gmra.mrb[82].mxu1 %vm320_vm4, %v6813_v15 }
0x189d   :  { %7971 = vmatprep.mubr.msk.f32.mxu1 %vm320_vm4, %v6814_v13 }
0x18a0   :  { %7972 = vmatmul.mubr.msk.f32.gmra.mrb[84].mxu1 %vm320_vm4, %v6815_v41 }
0x18a1   :  { %7974 = vmatprep.mubr.msk.f32.mxu1 %vm320_vm4, %v6816_v20  ;;  %v6841_v20 = vld [vmem:[%s10980_s2 + $0xc8] sm:$0xff] }
0x18a4   :  { %7975 = vmatmul.mubr.msk.f32.gmra.mrb[86].mxu1 %vm320_vm4, %v6817_v28  ;;  %v6842_v28 = vld [vmem:[%s10980_s2 + $0xd0] sm:$0xff] }
0x196b   :  { %v7967_v58 = vpop.f32.mrb[80].mxu1 }
0x196c   :  { %v4742_v8 = vadd.f32 %v7967_v58, %v4614_v1  ;;  %v4736_v6 = vpop.f32.mrb[81].mxu1  ;;  %v6845_v1 = vld [vmem:[%s10980_s2 + $0xe8] sm:$0xff]  ;;  %v6865_v58 = vld [vmem:[%s10985_s4 + $0xc0] sm:$0xff] }
0x196d   :  { %v4737_v49 = vadd.f32 %v4736_v6, %v4609_v42  ;;  %v6846_v42 = vld [vmem:[%s10980_s2 + $0xf0] sm:$0xff]  ;;  %8026 = vmatprep.mubr.msk.f32.mxu1 %vm320_vm4, %v6865_v58 }
0x196e   :  { %v4776_v50 = vmul.f32 0.01, %v4742_v8 }
0x196f   :  { %v4775_v40 = vmul.f32 0.01, %v4737_v49  ;;  %v7970_v51 = vpop.f32.mrb[82].mxu1 }
0x1970   :  { %v4784_v29 = vmax.f32 %v4742_v8, %v4776_v50  ;;  %v4752_v55 = vadd.f32 %v7970_v51, %v4624_v10  ;;  %v4746_v7 = vpop.f32.mrb[83].mxu1  ;;  %v6847_v10 = vld [vmem:[%s10980_s2 + $0xf8] sm:$0xff]  ;;  %v4912_v8 = vpop.permute.xlu1 %4911 }
0x1971   :  { %v4783_v52 = vmax.f32 %v4737_v49, %v4775_v40  ;;  %v4747_v21 = vadd.f32 %v4746_v7, %v4619_v60  ;;  %v4917_v60 = vpop.permute.xlu0 %4916 }
0x1972   :  { %v4778_v38 = vmul.f32 0.01, %v4752_v55 }
0x1973   :  { %v4777_v32 = vmul.f32 0.01, %v4747_v21  ;;  %v7973_v17 = vpop.f32.mrb[84].mxu1  ;;  %v8459_v63 = vpack.c.bf16 %v4784_v29, %v4783_v52 }
0x1974   :  { %v4786_v30 = vmax.f32 %v4752_v55, %v4778_v38  ;;  %v4762_v61 = vadd.f32 %v7973_v17, %v4634_v46  ;;  %v4756_v57 = vpop.f32.mrb[85].mxu1  ;;  %v4922_v50 = vpop.permute.xlu1 %4921 }
0x1975   :  { %v4785_v5 = vmax.f32 %v4747_v21, %v4777_v32  ;;  %v4757_v37 = vadd.f32 %v4756_v57, %v4629_v45  ;;  %8460 = vmatprep.subr.bf16.mxu0 %v8459_v63  ;;  %v4927_v6 = vpop.permute.xlu0 %4926 }
0x1976   :  { %v4780_v14 = vmul.f32 0.01, %v4762_v61  ;;  %8462 = vmatpush3.bf16.msra.mxu0 %v8459_v63 }
0x1977   :  { %v4779_v36 = vmul.f32 0.01, %v4757_v37  ;;  %v7976_v39 = vpop.f32.mrb[86].mxu1  ;;  %v8463_v31 = vpack.c.bf16 %v4786_v30, %v4785_v5 }
0x1978   :  { %v4788_v53 = vmax.f32 %v4762_v61, %v4780_v14  ;;  %v4772_v16 = vadd.f32 %v7976_v39, %v4644_v2  ;;  %v4766_v25 = vpop.f32.mrb[87].mxu1  ;;  %v4932_v63 = vpop.permute.xlu1 %4931 }
0x1979   :  { %v4787_v47 = vmax.f32 %v4757_v37, %v4779_v36  ;;  %v4767_v19 = vadd.f32 %v4766_v25, %v4639_v11  ;;  %8464 = vmatprep.subr.bf16.mxu0 %v8463_v31  ;;  %v4937_v38 = vpop.permute.xlu0 %4936 }
0x197a   :  { %v4782_v12 = vmul.f32 0.01, %v4772_v16  ;;  %8466 = vmatpush3.bf16.msra.mxu0 %v8463_v31 }
0x197b   :  { %v4781_v9 = vmul.f32 0.01, %v4767_v19  ;;  %v8467_v26 = vpack.c.bf16 %v4788_v53, %v4787_v47 }
0x197c   :  { %v4790_v4 = vmax.f32 %v4772_v16, %v4782_v12  ;;  %v4942_v47 = vpop.permute.xlu1 %4941 }
0x197d   :  { %v4789_v54 = vmax.f32 %v4767_v19, %v4781_v9  ;;  %8468 = vmatprep.subr.bf16.mxu0 %v8467_v26  ;;  %v4947_v11 = vpop.permute.xlu0 %4946 }
0x197e   :  { %8470 = vmatpush3.bf16.msra.mxu0 %v8467_v26 }
0x197f   :  { %v8471_v24 = vpack.c.bf16 %v4790_v4, %v4789_v54 }
0x1981   :  { %8472 = vmatprep.subr.bf16.mxu0 %v8471_v24 }
0x1982   :  { %8474 = vmatpush3.bf16.msra.mxu0 %v8471_v24 }
0x1985   :  { %7994 = vmatmul.mubr.msk.f32.vlgmr.msra.gmra.mrb[76].mxu0 %vm320_vm4, %v6835_v43 }
0x1986   :  { %7998 = vmatprep.mubr.msk.f32.mxu0 %vm116_vm0, %v6840_v62 }
0x1a58   :  { %v7995_v22 = vpop.f32.mrb[76].mxu0 }
0x1a59   :  { %v4877_v59 = vpop.f32.mrb[77].mxu0  ;;  %v4883_v48 = vadd.f32 %v7995_v22, %v4803_v33  ;;  %v6871_v33 = vld [vmem:[%s10985_s4 + $0xf0] sm:$0xff] }
0x1a5a   :  { %v4878_v23 = vadd.f32 %v4877_v59, %v4798_v0  ;;  %v6866_v59 = vld [vmem:[%s10985_s4 + $0xc8] sm:$0xff] }
0x1a5c   :  { %8611 = vtanh.f32 %v4878_v23  ;;  %v6867_v23 = vld [vmem:[%s10985_s4 + $0xd0] sm:$0xff] }
0x1a66   :  { %v8612_v34 = vpop.eup %8611 }
0x1a67   :  { %v4887_v27 = vmul.f32 1.442695, %v8612_v34  ;;  %v6868_v34 = vld [vmem:[%s10985_s4 + $0xd8] sm:$0xff] }
0x1a69   :  { %8613 = vpow2.f32 %v4887_v27  ;;  %v6869_v27 = vld [vmem:[%s10985_s4 + $0xe0] sm:$0xff] }
0x1a73   :  { %v8614_v35 = vpop.eup %8613 }
0x1a74   :  { %v4889_v15 = vmul.f32 %v8614_v35, %v10644_v18  ;;  %v6870_v35 = vld [vmem:[%s10985_s4 + $0xe8] sm:$0xff] }
0x1a76   :  { %v4890_v13 = vadd.f32 %v4889_v15, %v4883_v48  ;;  %v6872_v48 = vld [vmem:[%s10985_s4 + $0xf8] sm:$0xff]  ;;  %v6889_v15 = vld [vmem:[%s10990_s6 + $0x30] sm:$0xff] }
0x1a78   :  { %v10728_v41 = vsel %vm53_vm1, %v10644_v18, %v4890_v13  ;;  %v6843_v18 = vld [vmem:[%s10980_s2 + $0xd8] sm:$0xff]  ;;  %v5118_v13 = vpop.permute.xlu0 %5117 }
0x1a79   :  { %7996 = vmatprep.subr.msk.mxu0 %vm8734_vm3, %v10728_v41 }
0x1a7a   :  { %7997 = vmatpush3.msk.msra.mxu0 %vm8734_vm3, %v10728_v41 }
0x1a7b   :  { %7999 = vmatmul.mubr.msk.f32.vlgmr.msra.gmra.mrb[78].mxu0 %vm116_vm0, %v6841_v20  ;;  %v5113_v20 = vpop.permute.xlu1 %5112 }
0x1a7c   :  { %8001 = vmatprep.mubr.msk.f32.mxu0 %vm116_vm0, %v6842_v28  ;;  %v5128_v28 = vpop.permute.xlu0 %5127 }
0x1a7f   :  { %8002 = vmatmul.mubr.msk.f32.gmra.mrb[80].mxu0 %vm116_vm0, %v6843_v18 }
0x1a80   :  { %8004 = vmatprep.mubr.msk.f32.mxu0 %vm116_vm0, %v6844_v56  ;;  %v5123_v56 = vpop.permute.xlu1 %5122 }
0x1a83   :  { %8005 = vmatmul.mubr.msk.f32.gmra.mrb[82].mxu0 %vm116_vm0, %v6845_v1 }
0x1a84   :  { %8007 = vmatprep.mubr.msk.f32.mxu0 %vm116_vm0, %v6846_v42 }
0x1a87   :  { %8008 = vmatmul.mubr.msk.f32.gmra.mrb[84].mxu0 %vm116_vm0, %v6847_v10 }
0x1a88   :  { %8054 = vmatprep.mubr.msk.f32.mxu0 %vm320_vm4, %v6889_v15  ;;  %v6899_v15 = vld [vmem:[%s10980_s2 + $0x120] sm:$0xff] }
0x1b4e   :  { %v8000_v49 = vpop.f32.mrb[78].mxu0 }
0x1b4f   :  { %v5045_v40 = vadd.f32 %v8000_v49, %v4917_v60  ;;  %v5039_v51 = vpop.f32.mrb[79].mxu0 }
0x1b50   :  { %v5040_v29 = vadd.f32 %v5039_v51, %v4912_v8 }
0x1b51   :  { %v5079_v55 = vmul.f32 0.01, %v5045_v40 }
0x1b52   :  { %v5078_v7 = vmul.f32 0.01, %v5040_v29  ;;  %v8003_v46 = vpop.f32.mrb[80].mxu0 }
0x1b53   :  { %v5087_v52 = vmax.f32 %v5045_v40, %v5079_v55  ;;  %v5055_v21 = vadd.f32 %v8003_v46, %v4927_v6  ;;  %v5049_v45 = vpop.f32.mrb[81].mxu0  ;;  %v5138_v40 = vpop.permute.xlu0 %5137 }
0x1b54   :  { %v5086_v32 = vmax.f32 %v5040_v29, %v5078_v7  ;;  %v5050_v17 = vadd.f32 %v5049_v45, %v4922_v50  ;;  %v5133_v55 = vpop.permute.xlu1 %5132 }
0x1b55   :  { %v5081_v30 = vmul.f32 0.01, %v5055_v21 }
0x1b56   :  { %v5080_v61 = vmul.f32 0.01, %v5050_v17  ;;  %v8006_v57 = vpop.f32.mrb[82].mxu0  ;;  %v8475_v5 = vpack.c.bf16 %v5087_v52, %v5086_v32 }
0x1b57   :  { %v5089_v37 = vmax.f32 %v5055_v21, %v5081_v30  ;;  %v5065_v14 = vadd.f32 %v8006_v57, %v4937_v38  ;;  %v5059_v2 = vpop.f32.mrb[83].mxu0 }
0x1b58   :  { %v5088_v36 = vmax.f32 %v5050_v17, %v5080_v61  ;;  %v5060_v39 = vadd.f32 %v5059_v2, %v4932_v63  ;;  %8476 = vmatprep.subr.bf16.mxu1 %v8475_v5  ;;  %v5148_v61 = vpop.permute.xlu0 %5147 }
0x1b59   :  { %v5083_v31 = vmul.f32 0.01, %v5065_v14  ;;  %8478 = vmatpush3.bf16.msra.mxu1 %v8475_v5 }
0x1b5a   :  { %v5082_v53 = vmul.f32 0.01, %v5060_v39  ;;  %v8009_v16 = vpop.f32.mrb[84].mxu0  ;;  %v8479_v25 = vpack.c.bf16 %v5089_v37, %v5088_v36 }
0x1b5b   :  { %v5091_v19 = vmax.f32 %v5065_v14, %v5083_v31  ;;  %v5075_v12 = vadd.f32 %v8009_v16, %v4947_v11  ;;  %v5069_v9 = vpop.f32.mrb[85].mxu0  ;;  %v5143_v14 = vpop.permute.xlu1 %5142 }
0x1b5c   :  { %v5090_v26 = vmax.f32 %v5060_v39, %v5082_v53  ;;  %v5070_v4 = vadd.f32 %v5069_v9, %v4942_v47  ;;  %8480 = vmatprep.subr.bf16.mxu1 %v8479_v25  ;;  %v6890_v9 = vld [vmem:[%s10990_s6 + $0x38] sm:$0xff] }
0x1b5d   :  { %v5085_v54 = vmul.f32 0.01, %v5075_v12  ;;  %8482 = vmatpush3.bf16.msra.mxu1 %v8479_v25 }
0x1b5e   :  { %v5084_v24 = vmul.f32 0.01, %v5070_v4  ;;  %v8483_v43 = vpack.c.bf16 %v5091_v19, %v5090_v26  ;;  %v6895_v26 = vld [vmem:[%s10980_s2 + $0x100] sm:$0xff] }
0x1b5f   :  { %v5093_v62 = vmax.f32 %v5075_v12, %v5085_v54  ;;  %v5302_v54 = vpop.permute.xlu1 %5301 }
0x1b60   :  { %v5092_v22 = vmax.f32 %v5070_v4, %v5084_v24  ;;  %8484 = vmatprep.subr.bf16.mxu1 %v8483_v43 }
0x1b61   :  { %8486 = vmatpush3.bf16.msra.mxu1 %v8483_v43 }
0x1b62   :  { %v8487_v0 = vpack.c.bf16 %v5093_v62, %v5092_v22 }
0x1b64   :  { %8488 = vmatprep.subr.bf16.mxu1 %v8487_v0 }
0x1b65   :  { %8490 = vmatpush3.bf16.msra.mxu1 %v8487_v0 }
0x1b68   :  { %8027 = vmatmul.mubr.msk.f32.vlgmr.msra.gmra.mrb[88].mxu1 %vm320_vm4, %v6866_v59  ;;  %v5307_v59 = vpop.permute.xlu0 %5306 }
0x1b69   :  { %8029 = vmatprep.mubr.msk.f32.mxu1 %vm320_vm4, %v6867_v23 }
0x1b6c   :  { %8030 = vmatmul.mubr.msk.f32.gmra.mrb[90].mxu1 %vm320_vm4, %v6868_v34 }
0x1b6d   :  { %8032 = vmatprep.mubr.msk.f32.mxu1 %vm320_vm4, %v6869_v27 }
0x1b70   :  { %8033 = vmatmul.mubr.msk.f32.gmra.mrb[92].mxu1 %vm320_vm4, %v6870_v35 }
0x1b71   :  { %8035 = vmatprep.mubr.msk.f32.mxu1 %vm320_vm4, %v6871_v33  ;;  %v6896_v33 = vld [vmem:[%s10980_s2 + $0x108] sm:$0xff] }
0x1b74   :  { %8036 = vmatmul.mubr.msk.f32.gmra.mrb[94].mxu1 %vm320_vm4, %v6872_v48  ;;  %v6897_v48 = vld [vmem:[%s10980_s2 + $0x110] sm:$0xff] }
0x1b75   :  { %8059 = vmatprep.mubr.msk.f32.mxu1 %vm116_vm0, %v6895_v26 }
0x1c3b   :  { %v8028_v18 = vpop.f32.mrb[88].mxu1 }
0x1c3c   :  { %v5246_v1 = vadd.f32 %v8028_v18, %v5118_v13  ;;  %v5240_v42 = vpop.f32.mrb[89].mxu1  ;;  %v6900_v13 = vld [vmem:[%s10980_s2 + $0x128] sm:$0xff]  ;;  %v6920_v18 = vld [vmem:[%s10985_s4 + $0x100] sm:$0xff] }
0x1c3d   :  { %v5241_v10 = vadd.f32 %v5240_v42, %v5113_v20  ;;  %v6901_v20 = vld [vmem:[%s10980_s2 + $0x130] sm:$0xff] }
0x1c3e   :  { %v5280_v58 = vmul.f32 0.01, %v5246_v1 }
0x1c3f   :  { %v5279_v60 = vmul.f32 0.01, %v5241_v10  ;;  %v8031_v8 = vpop.f32.mrb[90].mxu1 }
0x1c40   :  { %v5288_v6 = vmax.f32 %v5246_v1, %v5280_v58  ;;  %v5256_v49 = vadd.f32 %v8031_v8, %v5128_v28  ;;  %v5250_v50 = vpop.f32.mrb[91].mxu1  ;;  %v6902_v28 = vld [vmem:[%s10980_s2 + $0x138] sm:$0xff]  ;;  %v5416_v1 = vpop.permute.xlu1 %5415 }
0x1c41   :  { %v5287_v51 = vmax.f32 %v5241_v10, %v5279_v60  ;;  %v5251_v29 = vadd.f32 %v5250_v50, %v5123_v56  ;;  %v5421_v56 = vpop.permute.xlu0 %5420 }
0x1c42   :  { %v5282_v7 = vmul.f32 0.01, %v5256_v49 }
0x1c43   :  { %v5281_v46 = vmul.f32 0.01, %v5251_v29  ;;  %v8034_v52 = vpop.f32.mrb[92].mxu1  ;;  %v8491_v21 = vpack.c.bf16 %v5288_v6, %v5287_v51 }
0x1c44   :  { %v5290_v45 = vmax.f32 %v5256_v49, %v5282_v7  ;;  %v5266_v38 = vadd.f32 %v8034_v52, %v5138_v40  ;;  %v5260_v32 = vpop.f32.mrb[93].mxu1  ;;  %v5426_v58 = vpop.permute.xlu1 %5425 }
0x1c45   :  { %v5289_v17 = vmax.f32 %v5251_v29, %v5281_v46  ;;  %v5261_v63 = vadd.f32 %v5260_v32, %v5133_v55  ;;  %8492 = vmatprep.subr.bf16.mxu0 %v8491_v21  ;;  %v5431_v42 = vpop.permute.xlu0 %5430 }
0x1c46   :  { %v5284_v30 = vmul.f32 0.01, %v5266_v38  ;;  %8494 = vmatpush3.bf16.msra.mxu0 %v8491_v21 }
0x1c47   :  { %v5283_v57 = vmul.f32 0.01, %v5261_v63  ;;  %v8037_v5 = vpop.f32.mrb[94].mxu1  ;;  %v8495_v37 = vpack.c.bf16 %v5290_v45, %v5289_v17 }
0x1c48   :  { %v5292_v2 = vmax.f32 %v5266_v38, %v5284_v30  ;;  %v5276_v36 = vadd.f32 %v8037_v5, %v5148_v61  ;;  %v5270_v39 = vpop.f32.mrb[95].mxu1  ;;  %v5436_v21 = vpop.permute.xlu1 %5435 }
0x1c49   :  { %v5291_v31 = vmax.f32 %v5261_v63, %v5283_v57  ;;  %v5271_v11 = vadd.f32 %v5270_v39, %v5143_v14  ;;  %8496 = vmatprep.subr.bf16.mxu0 %v8495_v37  ;;  %v5441_v7 = vpop.permute.xlu0 %5440 }
0x1c4a   :  { %v5286_v53 = vmul.f32 0.01, %v5276_v36  ;;  %8498 = vmatpush3.bf16.msra.mxu0 %v8495_v37 }
0x1c4b   :  { %v5285_v16 = vmul.f32 0.01, %v5271_v11  ;;  %v8499_v25 = vpack.c.bf16 %v5292_v2, %v5291_v31 }
0x1c4c   :  { %v5294_v47 = vmax.f32 %v5276_v36, %v5286_v53  ;;  %v5446_v31 = vpop.permute.xlu1 %5445 }
0x1c4d   :  { %v5293_v19 = vmax.f32 %v5271_v11, %v5285_v16  ;;  %8500 = vmatprep.subr.bf16.mxu0 %v8499_v25  ;;  %v5451_v14 = vpop.permute.xlu0 %5450 }
0x1c4e   :  { %8502 = vmatpush3.bf16.msra.mxu0 %v8499_v25 }
0x1c4f   :  { %v8503_v12 = vpack.c.bf16 %v5294_v47, %v5293_v19 }
0x1c51   :  { %8504 = vmatprep.subr.bf16.mxu0 %v8503_v12 }
0x1c52   :  { %8506 = vmatpush3.bf16.msra.mxu0 %v8503_v12 }
0x1c55   :  { %8055 = vmatmul.mubr.msk.f32.vlgmr.msra.gmra.mrb[86].mxu0 %vm320_vm4, %v6890_v9 }
0x1c56   :  { %8087 = vmatprep.mubr.msk.f32.mxu0 %vm320_vm4, %v6920_v18 }
0x1d28   :  { %v8056_v4 = vpop.f32.mrb[86].mxu0 }
0x1d29   :  { %v5381_v24 = vpop.f32.mrb[87].mxu0  ;;  %v5387_v23 = vadd.f32 %v8056_v4, %v5307_v59  ;;  %v6926_v59 = vld [vmem:[%s10985_s4 + $0x130] sm:$0xff] }
0x1d2a   :  { %v5382_v43 = vadd.f32 %v5381_v24, %v5302_v54  ;;  %v6921_v24 = vld [vmem:[%s10985_s4 + $0x108] sm:$0xff] }
0x1d2c   :  { %8615 = vtanh.f32 %v5382_v43  ;;  %v6922_v43 = vld [vmem:[%s10985_s4 + $0x110] sm:$0xff] }
0x1d36   :  { %v8616_v62 = vpop.eup %8615 }
0x1d37   :  { %v5391_v22 = vmul.f32 1.442695, %v8616_v62  ;;  %v6923_v62 = vld [vmem:[%s10985_s4 + $0x118] sm:$0xff] }
0x1d39   :  { %8617 = vpow2.f32 %v5391_v22  ;;  %v6924_v22 = vld [vmem:[%s10985_s4 + $0x120] sm:$0xff] }
0x1d43   :  { %v8618_v0 = vpop.eup %8617 }
0x1d44   :  { %v5393_v34 = vmul.f32 %v8618_v0, %v10728_v41  ;;  %v6925_v0 = vld [vmem:[%s10985_s4 + $0x128] sm:$0xff] }
0x1d46   :  { %v5394_v27 = vadd.f32 %v5393_v34, %v5387_v23  ;;  %v6927_v23 = vld [vmem:[%s10985_s4 + $0x138] sm:$0xff]  ;;  %v6944_v34 = vld [vmem:[%s10990_s6 + $0x40] sm:$0xff] }
0x1d48   :  { %v10812_v35 = vsel %vm8734_vm3, %v10728_v41, %v5394_v27  ;;  %v6898_v41 = vld [vmem:[%s10980_s2 + $0x118] sm:$0xff]  ;;  %v5622_v27 = vpop.permute.xlu0 %5621 }
0x1d49   :  { %8057 = vmatprep.subr.msk.mxu1 %vm53_vm1, %v10812_v35 }
0x1d4a   :  { %8058 = vmatpush3.msk.msra.mxu1 %vm53_vm1, %v10812_v35 }
0x1d4b   :  { %8060 = vmatmul.mubr.msk.f32.vlgmr.msra.gmra.mrb[96].mxu1 %vm116_vm0, %v6896_v33  ;;  %v5617_v33 = vpop.permute.xlu1 %5616 }
0x1d4c   :  { %8062 = vmatprep.mubr.msk.f32.mxu1 %vm116_vm0, %v6897_v48  ;;  %v5632_v48 = vpop.permute.xlu0 %5631 }
0x1d4f   :  { %8063 = vmatmul.mubr.msk.f32.gmra.mrb[98].mxu1 %vm116_vm0, %v6898_v41 }
0x1d50   :  { %8065 = vmatprep.mubr.msk.f32.mxu1 %vm116_vm0, %v6899_v15  ;;  %v5627_v15 = vpop.permute.xlu1 %5626 }
0x1d53   :  { %8066 = vmatmul.mubr.msk.f32.gmra.mrb[100].mxu1 %vm116_vm0, %v6900_v13 }
0x1d54   :  { %8068 = vmatprep.mubr.msk.f32.mxu1 %vm116_vm0, %v6901_v20 }
0x1d57   :  { %8069 = vmatmul.mubr.msk.f32.gmra.mrb[102].mxu1 %vm116_vm0, %v6902_v28 }
0x1d58   :  { %8115 = vmatprep.mubr.msk.f32.mxu1 %vm320_vm4, %v6944_v34  ;;  %v6955_v34 = vld [vmem:[%s10980_s2 + $0x168] sm:$0xff] }
0x1e1e   :  { %v8061_v10 = vpop.f32.mrb[96].mxu1 }
0x1e1f   :  { %v5549_v60 = vadd.f32 %v8061_v10, %v5421_v56  ;;  %v5543_v8 = vpop.f32.mrb[97].mxu1 }
0x1e20   :  { %v5544_v6 = vadd.f32 %v5543_v8, %v5416_v1 }
0x1e21   :  { %v5583_v49 = vmul.f32 0.01, %v5549_v60 }
0x1e22   :  { %v5582_v50 = vmul.f32 0.01, %v5544_v6  ;;  %v8064_v40 = vpop.f32.mrb[98].mxu1 }
0x1e23   :  { %v5591_v51 = vmax.f32 %v5549_v60, %v5583_v49  ;;  %v5559_v29 = vadd.f32 %v8064_v40, %v5431_v42  ;;  %v5553_v55 = vpop.f32.mrb[99].mxu1  ;;  %v5642_v60 = vpop.permute.xlu0 %5641 }
0x1e24   :  { %v5590_v46 = vmax.f32 %v5544_v6, %v5582_v50  ;;  %v5554_v52 = vadd.f32 %v5553_v55, %v5426_v58  ;;  %v5637_v49 = vpop.permute.xlu1 %5636 }
0x1e25   :  { %v5585_v45 = vmul.f32 0.01, %v5559_v29 }
0x1e26   :  { %v5584_v38 = vmul.f32 0.01, %v5554_v52  ;;  %v8067_v32 = vpop.f32.mrb[100].mxu1  ;;  %v8507_v17 = vpack.c.bf16 %v5591_v51, %v5590_v46 }
0x1e27   :  { %v5593_v63 = vmax.f32 %v5559_v29, %v5585_v45  ;;  %v5569_v30 = vadd.f32 %v8067_v32, %v5441_v7  ;;  %v5563_v61 = vpop.f32.mrb[101].mxu1 }
0x1e28   :  { %v5592_v57 = vmax.f32 %v5554_v52, %v5584_v38  ;;  %v5564_v5 = vadd.f32 %v5563_v61, %v5436_v21  ;;  %8508 = vmatprep.subr.bf16.mxu0 %v8507_v17  ;;  %v5652_v38 = vpop.permute.xlu0 %5651 }
0x1e29   :  { %v5587_v37 = vmul.f32 0.01, %v5569_v30  ;;  %8510 = vmatpush3.bf16.msra.mxu0 %v8507_v17 }
0x1e2a   :  { %v5586_v2 = vmul.f32 0.01, %v5564_v5  ;;  %v8070_v36 = vpop.f32.mrb[102].mxu1  ;;  %v8511_v39 = vpack.c.bf16 %v5593_v63, %v5592_v57 }
0x1e2b   :  { %v5595_v11 = vmax.f32 %v5569_v30, %v5587_v37  ;;  %v5579_v53 = vadd.f32 %v8070_v36, %v5451_v14  ;;  %v5573_v16 = vpop.f32.mrb[103].mxu1  ;;  %v5647_v30 = vpop.permute.xlu1 %5646 }
0x1e2c   :  { %v5594_v25 = vmax.f32 %v5564_v5, %v5586_v2  ;;  %v5574_v47 = vadd.f32 %v5573_v16, %v5446_v31  ;;  %8512 = vmatprep.subr.bf16.mxu0 %v8511_v39  ;;  %v6945_v16 = vld [vmem:[%s10990_s6 + $0x48] sm:$0xff] }
0x1e2d   :  { %v5589_v19 = vmul.f32 0.01, %v5579_v53  ;;  %8514 = vmatpush3.bf16.msra.mxu0 %v8511_v39 }
0x1e2e   :  { %v5588_v12 = vmul.f32 0.01, %v5574_v47  ;;  %v8515_v9 = vpack.c.bf16 %v5595_v11, %v5594_v25  ;;  %v6950_v25 = vld [vmem:[%s10980_s2 + $0x140] sm:$0xff] }
0x1e2f   :  { %v5597_v26 = vmax.f32 %v5579_v53, %v5589_v19  ;;  %v5806_v19 = vpop.permute.xlu1 %5805 }
0x1e30   :  { %v5596_v4 = vmax.f32 %v5574_v47, %v5588_v12  ;;  %8516 = vmatprep.subr.bf16.mxu0 %v8515_v9 }
0x1e31   :  { %8518 = vmatpush3.bf16.msra.mxu0 %v8515_v9 }
0x1e32   :  { %v8519_v54 = vpack.c.bf16 %v5597_v26, %v5596_v4 }
0x1e34   :  { %8520 = vmatprep.subr.bf16.mxu0 %v8519_v54 }
0x1e35   :  { %8522 = vmatpush3.bf16.msra.mxu0 %v8519_v54 }
0x1e38   :  { %8088 = vmatmul.mubr.msk.f32.vlgmr.msra.gmra.mrb[88].mxu0 %vm320_vm4, %v6921_v24  ;;  %v5811_v24 = vpop.permute.xlu0 %5810 }
0x1e39   :  { %8090 = vmatprep.mubr.msk.f32.mxu0 %vm320_vm4, %v6922_v43 }
0x1e3c   :  { %8091 = vmatmul.mubr.msk.f32.gmra.mrb[90].mxu0 %vm320_vm4, %v6923_v62 }
0x1e3d   :  { %8093 = vmatprep.mubr.msk.f32.mxu0 %vm320_vm4, %v6924_v22 }
0x1e40   :  { %8094 = vmatmul.mubr.msk.f32.gmra.mrb[92].mxu0 %vm320_vm4, %v6925_v0 }
0x1e41   :  { %8096 = vmatprep.mubr.msk.f32.mxu0 %vm320_vm4, %v6926_v59  ;;  %v6951_v59 = vld [vmem:[%s10980_s2 + $0x148] sm:$0xff] }
0x1e44   :  { %8097 = vmatmul.mubr.msk.f32.gmra.mrb[94].mxu0 %vm320_vm4, %v6927_v23  ;;  %v6952_v23 = vld [vmem:[%s10980_s2 + $0x150] sm:$0xff] }
0x1f0b   :  { %v8089_v41 = vpop.f32.mrb[88].mxu0 }
0x1f0c   :  { %v5750_v13 = vadd.f32 %v8089_v41, %v5622_v27  ;;  %v5744_v20 = vpop.f32.mrb[89].mxu0  ;;  %v6956_v27 = vld [vmem:[%s10980_s2 + $0x170] sm:$0xff]  ;;  %v5925_v41 = vpop.permute.xlu0 %5924 }
0x1f0d   :  { %v5745_v28 = vadd.f32 %v5744_v20, %v5617_v33  ;;  %v6957_v33 = vld [vmem:[%s10980_s2 + $0x178] sm:$0xff] }
0x1f0e   :  { %v5784_v18 = vmul.f32 0.01, %v5750_v13 }
0x1f0f   :  { %v5783_v56 = vmul.f32 0.01, %v5745_v28  ;;  %v8092_v1 = vpop.f32.mrb[90].mxu0 }
0x1f10   :  { %v5792_v42 = vmax.f32 %v5750_v13, %v5784_v18  ;;  %v5760_v10 = vadd.f32 %v8092_v1, %v5632_v48  ;;  %v5754_v58 = vpop.f32.mrb[91].mxu0  ;;  %v6975_v48 = vld [vmem:[%s10985_s4 + $0x140] sm:$0xff]  ;;  %v5935_v13 = vpop.permute.xlu0 %5934 }
0x1f11   :  { %v5791_v8 = vmax.f32 %v5745_v28, %v5783_v56  ;;  %v5755_v6 = vadd.f32 %v5754_v58, %v5627_v15  ;;  %8148 = vmatprep.mubr.msk.f32.mxu0 %vm320_vm4, %v6975_v48  ;;  %v5920_v15 = vpop.permute.xlu1 %5919 }
0x1f12   :  { %v5786_v50 = vmul.f32 0.01, %v5760_v10 }
0x1f13   :  { %v5785_v40 = vmul.f32 0.01, %v5755_v6  ;;  %v8095_v51 = vpop.f32.mrb[92].mxu0  ;;  %v8523_v29 = vpack.c.bf16 %v5792_v42, %v5791_v8 }
0x1f14   :  { %v5794_v55 = vmax.f32 %v5760_v10, %v5786_v50  ;;  %v5770_v7 = vadd.f32 %v8095_v51, %v5642_v60  ;;  %v5764_v46 = vpop.f32.mrb[93].mxu0 }
0x1f15   :  { %v5793_v52 = vmax.f32 %v5755_v6, %v5785_v40  ;;  %v5765_v21 = vadd.f32 %v5764_v46, %v5637_v49  ;;  %8524 = vmatprep.subr.bf16.mxu1 %v8523_v29  ;;  %v5930_v28 = vpop.permute.xlu1 %5929  ;;  %v5945_v49 = vpop.permute.xlu0 %5944 }
0x1f16   :  { %v5788_v45 = vmul.f32 0.01, %v5770_v7  ;;  %8526 = vmatpush3.bf16.msra.mxu1 %v8523_v29 }
0x1f17   :  { %v5787_v32 = vmul.f32 0.01, %v5765_v21  ;;  %v8098_v17 = vpop.f32.mrb[94].mxu0  ;;  %v8527_v63 = vpack.c.bf16 %v5794_v55, %v5793_v52 }
0x1f18   :  { %v5796_v61 = vmax.f32 %v5770_v7, %v5788_v45  ;;  %v5780_v57 = vadd.f32 %v8098_v17, %v5652_v38  ;;  %v5774_v5 = vpop.f32.mrb[95].mxu0 }
0x1f19   :  { %v5795_v37 = vmax.f32 %v5765_v21, %v5787_v32  ;;  %v5775_v14 = vadd.f32 %v5774_v5, %v5647_v30  ;;  %8528 = vmatprep.subr.bf16.mxu1 %v8527_v63  ;;  %v5940_v51 = vpop.permute.xlu1 %5939 }
0x1f1a   :  { %v5790_v2 = vmul.f32 0.01, %v5780_v57  ;;  %8530 = vmatpush3.bf16.msra.mxu1 %v8527_v63  ;;  %v5955_v63 = vpop.permute.xlu0 %5954 }
0x1f1b   :  { %v5789_v36 = vmul.f32 0.01, %v5775_v14  ;;  %v8531_v39 = vpack.c.bf16 %v5796_v61, %v5795_v37 }
0x1f1c   :  { %v5798_v31 = vmax.f32 %v5780_v57, %v5790_v2 }
0x1f1d   :  { %v5797_v11 = vmax.f32 %v5775_v14, %v5789_v36  ;;  %8532 = vmatprep.subr.bf16.mxu1 %v8531_v39  ;;  %v5950_v5 = vpop.permute.xlu1 %5949 }
0x1f1e   :  { %8534 = vmatpush3.bf16.msra.mxu1 %v8531_v39 }
0x1f1f   :  { %v8535_v53 = vpack.c.bf16 %v5798_v31, %v5797_v11 }
0x1f21   :  { %8536 = vmatprep.subr.bf16.mxu1 %v8535_v53 }
0x1f22   :  { %8538 = vmatpush3.bf16.msra.mxu1 %v8535_v53 }
0x1f25   :  { %8116 = vmatmul.mubr.msk.f32.vlgmr.msra.gmra.mrb[104].mxu1 %vm320_vm4, %v6945_v16 }
0x1f26   :  { %8120 = vmatprep.mubr.msk.f32.mxu1 %vm116_vm0, %v6950_v25 }
0x1ff8   :  { %v8117_v47 = vpop.f32.mrb[104].mxu1 }
0x1ff9   :  { %v5885_v12 = vpop.f32.mrb[105].mxu1  ;;  %v5891_v43 = vadd.f32 %v8117_v47, %v5811_v24  ;;  %v6982_v24 = vld [vmem:[%s10985_s4 + $0x178] sm:$0xff] }
0x1ffa   :  { %v5886_v9 = vadd.f32 %v5885_v12, %v5806_v19  ;;  %v6976_v19 = vld [vmem:[%s10985_s4 + $0x148] sm:$0xff]  ;;  %v6977_v12 = vld [vmem:[%s10985_s4 + $0x150] sm:$0xff] }
0x1ffc   :  { %8619 = vtanh.f32 %v5886_v9  ;;  %v6978_v9 = vld [vmem:[%s10985_s4 + $0x158] sm:$0xff] }
0x2006   :  { %v8620_v26 = vpop.eup %8619 }
0x2007   :  { %v5895_v4 = vmul.f32 1.442695, %v8620_v26  ;;  %v6979_v26 = vld [vmem:[%s10985_s4 + $0x160] sm:$0xff] }
0x2009   :  { %8621 = vpow2.f32 %v5895_v4  ;;  %v6980_v4 = vld [vmem:[%s10985_s4 + $0x168] sm:$0xff] }
0x2013   :  { %v8622_v54 = vpop.eup %8621 }
0x2014   :  { %v5897_v62 = vmul.f32 %v8622_v54, %v10812_v35  ;;  %v6981_v54 = vld [vmem:[%s10985_s4 + $0x170] sm:$0xff] }
0x2016   :  { %v5898_v22 = vadd.f32 %v5897_v62, %v5891_v43  ;;  %v6999_v43 = vld [vmem:[%s10990_s6 + $0x50] sm:$0xff]  ;;  %v6126_v62 = vpop.permute.xlu0 %6125 }
0x2018   :  { %v10896_v0 = vsel %vm53_vm1, %v10812_v35, %v5898_v22  ;;  %v6954_v35 = vld [vmem:[%s10980_s2 + $0x160] sm:$0xff]  ;;  %v6121_v22 = vpop.permute.xlu1 %6120 }
0x2019   :  { %8118 = vmatprep.subr.msk.mxu1 %vm8734_vm3, %v10896_v0 }
0x201a   :  { %8119 = vmatpush3.msk.msra.mxu1 %vm8734_vm3, %v10896_v0 }
0x201b   :  { %8121 = vmatmul.mubr.msk.f32.vlgmr.msra.gmra.mrb[106].mxu1 %vm116_vm0, %v6951_v59  ;;  %v6136_v59 = vpop.permute.xlu0 %6135 }
0x201c   :  { %8123 = vmatprep.mubr.msk.f32.mxu1 %vm116_vm0, %v6952_v23 }
0x201f   :  { %8124 = vmatmul.mubr.msk.f32.gmra.mrb[108].mxu1 %vm116_vm0, %v6953_v3  ;;  %v6131_v3 = vpop.permute.xlu1 %6130 }
0x2020   :  { %8126 = vmatprep.mubr.msk.f32.mxu1 %vm116_vm0, %v6954_v35 }
0x2023   :  { %8127 = vmatmul.mubr.msk.f32.gmra.mrb[110].mxu1 %vm116_vm0, %v6955_v34 }
0x2024   :  { %8129 = vmatprep.mubr.msk.f32.mxu1 %vm116_vm0, %v6956_v27 }
0x2027   :  { %8130 = vmatmul.mubr.msk.f32.gmra.mrb[112].mxu1 %vm116_vm0, %v6957_v33 }
0x2028   :  { %8176 = vmatprep.mubr.msk.f32.mxu1 %vm320_vm4, %v6999_v43 }
0x20ee   :  { %v8122_v20 = vpop.f32.mrb[106].mxu1 }
0x20ef   :  { %v6053_v18 = vadd.f32 %v8122_v20, %v5925_v41  ;;  %v6047_v56 = vpop.f32.mrb[107].mxu1 }
0x20f0   :  { %v6048_v1 = vadd.f32 %v6047_v56, %v5920_v15 }
0x20f1   :  { %v6087_v42 = vmul.f32 0.01, %v6053_v18 }
0x20f2   :  { %v6086_v10 = vmul.f32 0.01, %v6048_v1  ;;  %v8125_v58 = vpop.f32.mrb[108].mxu1 }
0x20f3   :  { %v6095_v60 = vmax.f32 %v6053_v18, %v6087_v42  ;;  %v6063_v8 = vadd.f32 %v8125_v58, %v5935_v13  ;;  %v6057_v6 = vpop.f32.mrb[109].mxu1 }
0x20f4   :  { %v6094_v50 = vmax.f32 %v6048_v1, %v6086_v10  ;;  %v6058_v40 = vadd.f32 %v6057_v6, %v5930_v28  ;;  %v6146_v28 = vpop.permute.xlu0 %6145  ;;  %v6141_v1 = vpop.permute.xlu1 %6140 }
0x20f5   :  { %v6089_v29 = vmul.f32 0.01, %v6063_v8 }
0x20f6   :  { %v6088_v55 = vmul.f32 0.01, %v6058_v40  ;;  %v8128_v7 = vpop.f32.mrb[110].mxu1  ;;  %v8539_v46 = vpack.c.bf16 %v6095_v60, %v6094_v50 }
0x20f7   :  { %v6097_v52 = vmax.f32 %v6063_v8, %v6089_v29  ;;  %v6073_v21 = vadd.f32 %v8128_v7, %v5945_v49  ;;  %v6067_v45 = vpop.f32.mrb[111].mxu1 }
0x20f8   :  { %v6096_v38 = vmax.f32 %v6058_v40, %v6088_v55  ;;  %v6068_v32 = vadd.f32 %v6067_v45, %v5940_v51  ;;  %8540 = vmatprep.subr.bf16.mxu0 %v8539_v46  ;;  %v6156_v29 = vpop.permute.xlu0 %6155 }
0x20f9   :  { %v6091_v17 = vmul.f32 0.01, %v6073_v21  ;;  %8542 = vmatpush3.bf16.msra.mxu0 %v8539_v46 }
0x20fa   :  { %v6090_v30 = vmul.f32 0.01, %v6068_v32  ;;  %v8131_v61 = vpop.f32.mrb[112].mxu1  ;;  %v8543_v57 = vpack.c.bf16 %v6097_v52, %v6096_v38  ;;  %v6151_v52 = vpop.permute.xlu1 %6150 }
0x20fb   :  { %v6099_v37 = vmax.f32 %v6073_v21, %v6091_v17  ;;  %v6083_v14 = vadd.f32 %v8131_v61, %v5955_v63  ;;  %v6077_v2 = vpop.f32.mrb[113].mxu1 }
0x20fc   :  { %v6098_v36 = vmax.f32 %v6068_v32, %v6090_v30  ;;  %v6078_v39 = vadd.f32 %v6077_v2, %v5950_v5  ;;  %8544 = vmatprep.subr.bf16.mxu0 %v8543_v57 }
0x20fd   :  { %v6093_v31 = vmul.f32 0.01, %v6083_v14  ;;  %8546 = vmatpush3.bf16.msra.mxu0 %v8543_v57 }
0x20fe   :  { %v6092_v11 = vmul.f32 0.01, %v6078_v39  ;;  %v8547_v53 = vpack.c.bf16 %v6099_v37, %v6098_v36  ;;  %v6310_v36 = vpop.permute.xlu1 %6309 }
0x20ff   :  { %v6101_v16 = vmax.f32 %v6083_v14, %v6093_v31  ;;  %v7000_v14 = vld [vmem:[%s10990_s6 + $0x58] sm:$0xff] }
0x2100   :  { %v6100_v25 = vmax.f32 %v6078_v39, %v6092_v11  ;;  %8548 = vmatprep.subr.bf16.mxu0 %v8547_v53 }
0x2101   :  { %8550 = vmatpush3.bf16.msra.mxu0 %v8547_v53 }
0x2102   :  { %v8551_v47 = vpack.c.bf16 %v6101_v16, %v6100_v25  ;;  %v6315_v25 = vpop.permute.xlu0 %6314 }
0x2104   :  { %8552 = vmatprep.subr.bf16.mxu0 %v8551_v47 }
0x2105   :  { %8554 = vmatpush3.bf16.msra.mxu0 %v8551_v47 }
0x2108   :  { %8149 = vmatmul.mubr.msk.f32.vlgmr.msra.gmra.mrb[96].mxu0 %vm320_vm4, %v6976_v19 }
0x2109   :  { %8151 = vmatprep.mubr.msk.f32.mxu0 %vm320_vm4, %v6977_v12 }
0x210c   :  { %8152 = vmatmul.mubr.msk.f32.gmra.mrb[98].mxu0 %vm320_vm4, %v6978_v9 }
0x210d   :  { %8154 = vmatprep.mubr.msk.f32.mxu0 %vm320_vm4, %v6979_v26 }
0x2110   :  { %8155 = vmatmul.mubr.msk.f32.gmra.mrb[100].mxu0 %vm320_vm4, %v6980_v4 }
0x2111   :  { %8157 = vmatprep.mubr.msk.f32.mxu0 %vm320_vm4, %v6981_v54 }
0x2114   :  { %8158 = vmatmul.mubr.msk.f32.gmra.mrb[102].mxu0 %vm320_vm4, %v6982_v24 }
0x21db   :  { %v8150_v23 = vpop.f32.mrb[96].mxu0 }
0x21dc   :  { %v6254_v35 = vadd.f32 %v8150_v23, %v6126_v62  ;;  %v6248_v34 = vpop.f32.mrb[97].mxu0 }
0x21dd   :  { %v6249_v27 = vadd.f32 %v6248_v34, %v6121_v22 }
0x21de   :  { %v6288_v33 = vmul.f32 0.01, %v6254_v35 }
0x21df   :  { %v6287_v48 = vmul.f32 0.01, %v6249_v27  ;;  %v8153_v41 = vpop.f32.mrb[98].mxu0 }
0x21e0   :  { %v6296_v15 = vmax.f32 %v6254_v35, %v6288_v33  ;;  %v6264_v13 = vadd.f32 %v8153_v41, %v6136_v59  ;;  %v6258_v20 = vpop.f32.mrb[99].mxu0 }
0x21e1   :  { %v6295_v18 = vmax.f32 %v6249_v27, %v6287_v48  ;;  %v6259_v56 = vadd.f32 %v6258_v20, %v6131_v3 }
0x21e2   :  { %v6290_v42 = vmul.f32 0.01, %v6264_v13 }
0x21e3   :  { %v6289_v10 = vmul.f32 0.01, %v6259_v56  ;;  %v8156_v58 = vpop.f32.mrb[100].mxu0  ;;  %v8555_v60 = vpack.c.bf16 %v6296_v15, %v6295_v18 }
0x21e4   :  { %v6298_v8 = vmax.f32 %v6264_v13, %v6290_v42  ;;  %v6274_v6 = vadd.f32 %v8156_v58, %v6146_v28  ;;  %v6268_v49 = vpop.f32.mrb[101].mxu0 }
0x21e5   :  { %v6297_v50 = vmax.f32 %v6259_v56, %v6289_v10  ;;  %v6269_v40 = vadd.f32 %v6268_v49, %v6141_v1  ;;  %8556 = vmatprep.subr.bf16.mxu1 %v8555_v60 }
0x21e6   :  { %v6292_v51 = vmul.f32 0.01, %v6274_v6  ;;  %8558 = vmatpush3.bf16.msra.mxu1 %v8555_v60 }
0x21e7   :  { %v6291_v55 = vmul.f32 0.01, %v6269_v40  ;;  %v8159_v7 = vpop.f32.mrb[102].mxu0  ;;  %v8559_v46 = vpack.c.bf16 %v6298_v8, %v6297_v50 }
0x21e8   :  { %v6300_v21 = vmax.f32 %v6274_v6, %v6292_v51  ;;  %v6284_v45 = vadd.f32 %v8159_v7, %v6156_v29  ;;  %v6278_v38 = vpop.f32.mrb[103].mxu0 }
0x21e9   :  { %v6299_v32 = vmax.f32 %v6269_v40, %v6291_v55  ;;  %v6279_v17 = vadd.f32 %v6278_v38, %v6151_v52  ;;  %8560 = vmatprep.subr.bf16.mxu1 %v8559_v46 }
0x21ea   :  { %v6294_v63 = vmul.f32 0.01, %v6284_v45  ;;  %8562 = vmatpush3.bf16.msra.mxu1 %v8559_v46 }
0x21eb   :  { %v6293_v30 = vmul.f32 0.01, %v6279_v17  ;;  %v8563_v61 = vpack.c.bf16 %v6300_v21, %v6299_v32 }
0x21ec   :  { %v6302_v57 = vmax.f32 %v6284_v45, %v6294_v63 }
0x21ed   :  { %v6301_v5 = vmax.f32 %v6279_v17, %v6293_v30  ;;  %8564 = vmatprep.subr.bf16.mxu1 %v8563_v61 }
0x21ee   :  { %8566 = vmatpush3.bf16.msra.mxu1 %v8563_v61 }
0x21ef   :  { %v8567_v37 = vpack.c.bf16 %v6302_v57, %v6301_v5 }
0x21f1   :  { %8568 = vmatprep.subr.bf16.mxu1 %v8567_v37 }
0x21f2   :  { %8570 = vmatpush3.bf16.msra.mxu1 %v8567_v37 }
0x21f5   :  { %8177 = vmatmul.mubr.msk.f32.vlgmr.msra.gmra.mrb[114].mxu1 %vm320_vm4, %v7000_v14 }
0x22c8   :  { %v8178_v2 = vpop.f32.mrb[114].mxu1 }
0x22c9   :  { %v6389_v39 = vpop.f32.mrb[115].mxu1  ;;  %v6395_v47 = vadd.f32 %v8178_v2, %v6315_v25 }
0x22ca   :  { %v6390_v31 = vadd.f32 %v6389_v39, %v6310_v36 }
0x22cc   :  { %8623 = vtanh.f32 %v6390_v31 }
0x22d6   :  { %v8624_v11 = vpop.eup %8623 }
0x22d7   :  { %v6399_v53 = vmul.f32 1.442695, %v8624_v11 }
0x22d9   :  { %8625 = vpow2.f32 %v6399_v53 }
0x22e3   :  { %v8626_v16 = vpop.eup %8625 }
0x22e4   :  { %v6401_v19 = vmul.f32 %v8626_v16, %v10896_v0 }
0x22e6   :  { %v6402_v12 = vadd.f32 %v6401_v19, %v6395_v47 }
0x22e8   :  { %v6403_v9 = vsel %vm8734_vm3, %v10896_v0, %v6402_v12 }
0x22e9   :  { %6404 = vst [vmem:[%s10994_s14] sm:$0xff] %v6403_v9 }

</bundles_post_ra>
